<compile_context>
chip_gen: v5e
topology: v5e:2x2
jax: 0.10.0
libtpu: 0.0.40
codegen_flags: <defaults>
</compile_context>

<pallas_src>
import functools
import math

import jax
import jax.numpy as jnp
from jax import lax
from jax.experimental import pallas as pl
from jax.experimental.pallas import tpu as pltpu

MXU_DTYPE = jnp.bfloat16        # operand dtype for every MXU matmul (f32 accum)
LN_EPS = 1e-6                   # LayerNormalization eps (added to std)
VMEM_LIMIT = 48 * 1024 * 1024   # explicit scoped-VMEM budget for every call


def _cparams(n_axes):
    return pltpu.CompilerParams(
        dimension_semantics=("parallel",) * n_axes,
        vmem_limit_bytes=VMEM_LIMIT)


def _row_tile(m, cap=256):
    """Largest MXU-friendly row tile that divides m (fallback: full m)."""
    for t in (cap, 128):
        if t <= m and m % t == 0:
            return t
    return m


# ----------------------------------------------------------------------------
# In-kernel helpers (everything f32 except MXU operands)
# ----------------------------------------------------------------------------

def _layer_norm(x, alpha, bias, eps):
    """alpha * (x - mean) / (std + eps) + bias; unbiased std over last dim.
    The 1/(std+eps) goes to the EUP via approx reciprocal."""
    mean = jnp.mean(x, axis=-1, keepdims=True)
    diff = x - mean
    var = jnp.sum(diff * diff, axis=-1, keepdims=True) / (x.shape[-1] - 1)
    inv = pl.reciprocal(jnp.sqrt(var) + eps, approx=True)
    return alpha * diff * inv + bias


def _mha_core(x, hq, hkv, mask_bias,
              wq_ref, bq_ref, wk_ref, bk_ref, wv_ref, bv_ref,
              wo_ref, bo_ref, num_heads):
    """Multi-head attention with the residual fused.

    x:   (Sq, D) residual rows        hq:  (Sq, D) normalized query source
    hkv: (Sk, D) key/value source     mask_bias: (Sq, Sk) additive 0/-1e9
    wq/wk/wv/wo refs: (D, D) bf16; bq/bk/bv/bo refs: (1, D) f32.
    Full-width Q/K/V + output projections; per-head only the small
    score/context matmuls (statically unrolled over heads).
    """
    Sq, D = hq.shape
    dk = D // num_heads
    scale = 1.0 / math.sqrt(dk)

    hq_m = hq.astype(MXU_DTYPE)
    hk_m = hkv.astype(MXU_DTYPE)
    # Full-width projections (MXU fed at native width), f32 accumulation.
    q = (jnp.dot(hq_m, wq_ref[...], preferred_element_type=jnp.float32)
         + bq_ref[...]) * scale                       # scale Q once, not per head
    k = jnp.dot(hk_m, wk_ref[...], preferred_element_type=jnp.float32) + bk_ref[...]
    v = jnp.dot(hk_m, wv_ref[...], preferred_element_type=jnp.float32) + bv_ref[...]

    ctx_parts = []
    for h in range(num_heads):                        # statically unrolled
        sl = slice(h * dk, (h + 1) * dk)
        qh = q[:, sl].astype(MXU_DTYPE)               # (Sq, dk)
        kh = k[:, sl].astype(MXU_DTYPE)               # (Sk, dk)
        vh = v[:, sl].astype(MXU_DTYPE)               # (Sk, dk)
        s = lax.dot_general(qh, kh, (((1,), (1,)), ((), ())),
                            preferred_element_type=jnp.float32)   # (Sq, Sk)
        s = s + mask_bias                             # hoisted additive mask
        e = jnp.exp(s - jnp.max(s, axis=-1, keepdims=True))
        p = e * pl.reciprocal(jnp.sum(e, axis=-1, keepdims=True), approx=True)
        ctx_parts.append(jnp.dot(p.astype(MXU_DTYPE), vh,
                                 preferred_element_type=jnp.float32))  # (Sq, dk)
    ctx = jnp.concatenate(ctx_parts, axis=-1)         # (Sq, D): concat heads
    y = jnp.dot(ctx.astype(MXU_DTYPE), wo_ref[...],
                preferred_element_type=jnp.float32) + bo_ref[...]
    return x + y


# ----------------------------------------------------------------------------
# Fused sublayer kernels
# ----------------------------------------------------------------------------

def _attn_kernel(xq_ref, kv_ref, m_ref, lna_ref, lnb_ref,
                 wq_ref, bq_ref, wk_ref, bk_ref, wv_ref, bv_ref,
                 wo_ref, bo_ref, o_ref, *, num_heads, eps, normalize_kv):
    """x + MHA(LN(x), kv, mask).  Self-attn: kv = x (normalized in-kernel);
    cross-attn: kv = encoder_output (NOT normalized)."""
    xq = xq_ref[0].astype(jnp.float32)                       # (tq, D)
    hq = _layer_norm(xq, lna_ref[...], lnb_ref[...], eps)
    kv = kv_ref[0].astype(jnp.float32)                       # (Sk, D)
    hkv = _layer_norm(kv, lna_ref[...], lnb_ref[...], eps) if normalize_kv else kv
    mask_bias = jnp.where(m_ref[0] == 0, jnp.float32(-1e9), jnp.float32(0.0))
    y = _mha_core(xq, hq, hkv, mask_bias,
                  wq_ref, bq_ref, wk_ref, bk_ref, wv_ref, bv_ref,
                  wo_ref, bo_ref, num_heads)
    o_ref[0] = y.astype(o_ref.dtype)


def _ffn_kernel(*refs, eps, fuse_final_ln):
    """x + W2(relu(W1(LN3(x)))), optionally followed by the decoder-final LN."""
    if fuse_final_ln:
        (x_ref, lna_ref, lnb_ref, w1_ref, b1_ref, w2_ref, b2_ref,
         fa_ref, fb_ref, o_ref) = refs
    else:
        (x_ref, lna_ref, lnb_ref, w1_ref, b1_ref, w2_ref, b2_ref, o_ref) = refs
    x = x_ref[...].astype(jnp.float32)
    h = _layer_norm(x, lna_ref[...], lnb_ref[...], eps)
    f = jnp.dot(h.astype(MXU_DTYPE), w1_ref[...],
                preferred_element_type=jnp.float32) + b1_ref[...]
    f = jnp.maximum(f, 0.0)
    y = x + jnp.dot(f.astype(MXU_DTYPE), w2_ref[...],
                    preferred_element_type=jnp.float32) + b2_ref[...]
    if fuse_final_ln:
        y = _layer_norm(y, fa_ref[...], fb_ref[...], eps)
    o_ref[...] = y.astype(o_ref.dtype)


def _layernorm_kernel(x_ref, a_ref, b_ref, o_ref, *, eps):
    x = x_ref[...].astype(jnp.float32)
    o_ref[...] = _layer_norm(x, a_ref[...], b_ref[...], eps).astype(o_ref.dtype)


# ----------------------------------------------------------------------------
# pallas_call wrappers
# ----------------------------------------------------------------------------

def attention_sublayer(x, kv_src, mask, p, ln_a, ln_b, num_heads,
                       *, normalize_kv, eps=LN_EPS):
    B, Sq, D = x.shape
    Sk = kv_src.shape[1]
    tq = _row_tile(Sq)
    kernel = functools.partial(_attn_kernel, num_heads=num_heads, eps=eps,
                               normalize_kv=normalize_kv)
    vec = pl.BlockSpec((1, D), lambda b, q: (0, 0))          # (1, D) broadcast rows
    mat = pl.BlockSpec((D, D), lambda b, q: (0, 0))          # dense bf16 weights
    return pl.pallas_call(
        kernel,
        out_shape=jax.ShapeDtypeStruct((B, Sq, D), x.dtype),
        grid=(B, Sq // tq),
        in_specs=[
            pl.BlockSpec((1, tq, D), lambda b, q: (b, q, 0)),   # x query/residual rows
            pl.BlockSpec((1, Sk, D), lambda b, q: (b, 0, 0)),   # key/value source (full Sk)
            pl.BlockSpec((1, tq, Sk), lambda b, q: (b, q, 0)),  # mask rows
            vec, vec,                                           # LN alpha / bias
            mat, vec, mat, vec, mat, vec,                       # Wq/bq, Wk/bk, Wv/bv
            mat, vec,                                           # Wo / bo
        ],
        out_specs=pl.BlockSpec((1, tq, D), lambda b, q: (b, q, 0)),
        compiler_params=_cparams(2),
    )(x, kv_src, mask, ln_a, ln_b,
      p["wq"], p["bq"], p["wk"], p["bk"], p["wv"], p["bv"], p["wo"], p["bo"])


def ffn_sublayer(x2d, ln_a, ln_b, w1, b1, w2, b2, final_ln=None, eps=LN_EPS):
    M, D = x2d.shape
    DFF = w1.shape[1]
    tm = _row_tile(M)
    fuse = final_ln is not None
    kernel = functools.partial(_ffn_kernel, eps=eps, fuse_final_ln=fuse)
    in_specs = [
        pl.BlockSpec((tm, D), lambda i: (i, 0)),
        pl.BlockSpec((1, D), lambda i: (0, 0)),     # ln3 alpha
        pl.BlockSpec((1, D), lambda i: (0, 0)),     # ln3 bias
        pl.BlockSpec((D, DFF), lambda i: (0, 0)),   # W1 (bf16)
        pl.BlockSpec((1, DFF), lambda i: (0, 0)),   # b1
        pl.BlockSpec((DFF, D), lambda i: (0, 0)),   # W2 (bf16)
        pl.BlockSpec((1, D), lambda i: (0, 0)),     # b2
    ]
    args = [x2d, ln_a, ln_b, w1, b1, w2, b2]
    if fuse:
        in_specs += [pl.BlockSpec((1, D), lambda i: (0, 0)),
                     pl.BlockSpec((1, D), lambda i: (0, 0))]
        args += [final_ln[0], final_ln[1]]
    return pl.pallas_call(
        kernel,
        out_shape=jax.ShapeDtypeStruct((M, D), x2d.dtype),
        grid=(M // tm,),
        in_specs=in_specs,
        out_specs=pl.BlockSpec((tm, D), lambda i: (i, 0)),
        compiler_params=_cparams(1),
    )(*args)


def layernorm(x2d, alpha, bias, eps=LN_EPS):
    """Standalone final LN (only used when the decoder has zero layers)."""
    M, D = x2d.shape
    tm = _row_tile(M)
    return pl.pallas_call(
        functools.partial(_layernorm_kernel, eps=eps),
        out_shape=jax.ShapeDtypeStruct((M, D), x2d.dtype),
        grid=(M // tm,),
        in_specs=[pl.BlockSpec((tm, D), lambda i: (i, 0)),
                  pl.BlockSpec((1, D), lambda i: (0, 0)),
                  pl.BlockSpec((1, D), lambda i: (0, 0))],
        out_specs=pl.BlockSpec((tm, D), lambda i: (i, 0)),
        compiler_params=_cparams(1),
    )(x2d, alpha, bias)


# ----------------------------------------------------------------------------
# Decoder forward (3 fused pallas_calls per layer; final LN fused in last FFN)
# ----------------------------------------------------------------------------

def decoder_forward(x, encoder_output, src_mask, tgt_mask, params, num_heads):
    B, S, D = x.shape
    layers = params["layers"]
    n_layers = len(layers)
    for li, lp in enumerate(layers):
        x = attention_sublayer(x, x, tgt_mask, lp["self_attn"],
                               lp["ln1_a"], lp["ln1_b"], num_heads,
                               normalize_kv=True)
        x = attention_sublayer(x, encoder_output, src_mask, lp["cross_attn"],
                               lp["ln2_a"], lp["ln2_b"], num_heads,
                               normalize_kv=False)
        final_ln = ((params["norm_a"], params["norm_b"])
                    if li == n_layers - 1 else None)
        x = ffn_sublayer(x.reshape(B * S, D), lp["ln3_a"], lp["ln3_b"],
                         lp["ff_w1"], lp["ff_b1"], lp["ff_w2"], lp["ff_b2"],
                         final_ln=final_ln).reshape(B, S, D)
    if n_layers == 0:
        x = layernorm(x.reshape(B * S, D), params["norm_a"],
                      params["norm_b"]).reshape(B, S, D)
    return x


# ----------------------------------------------------------------------------
# Parameter construction / one-time layout prep
# ----------------------------------------------------------------------------

def make_params(key, num_layers, d_model, d_ff):
    def dense(k, din, dout):
        kw, kb = jax.random.split(k)
        return (0.02 * jax.random.normal(kw, (din, dout), jnp.float32),
                0.02 * jax.random.normal(kb, (dout,), jnp.float32))

    layers = []
    for _ in range(num_layers):
        key, *ks = jax.random.split(key, 11)
        wq, bq = dense(ks[0], d_model, d_model)
        wk, bk = dense(ks[1], d_model, d_model)
        wv, bv = dense(ks[2], d_model, d_model)
        wo, bo = dense(ks[3], d_model, d_model)
        cwq, cbq = dense(ks[4], d_model, d_model)
        cwk, cbk = dense(ks[5], d_model, d_model)
        cwv, cbv = dense(ks[6], d_model, d_model)
        cwo, cbo = dense(ks[7], d_model, d_model)
        w1, b1 = dense(ks[8], d_model, d_ff)
        w2, b2 = dense(ks[9], d_ff, d_model)
        layers.append(dict(
            self_attn=dict(wq=wq, bq=bq, wk=wk, bk=bk, wv=wv, bv=bv, wo=wo, bo=bo),
            cross_attn=dict(wq=cwq, bq=cbq, wk=cwk, bk=cbk, wv=cwv, bv=cbv, wo=cwo, bo=cbo),
            ff_w1=w1, ff_b1=b1, ff_w2=w2, ff_b2=b2,
            ln1_a=jnp.ones((d_model,), jnp.float32), ln1_b=jnp.zeros((d_model,), jnp.float32),
            ln2_a=jnp.ones((d_model,), jnp.float32), ln2_b=jnp.zeros((d_model,), jnp.float32),
            ln3_a=jnp.ones((d_model,), jnp.float32), ln3_b=jnp.zeros((d_model,), jnp.float32),
        ))
    return dict(
        layers=layers,
        norm_a=jnp.ones((d_model,), jnp.float32),
        norm_b=jnp.zeros((d_model,), jnp.float32),
    )


def prepare_params(raw, mxu_dtype=MXU_DTYPE):
    """One-time layout/dtype prep hoisted out of the per-layer wrappers:
    bf16 MXU weights, biases & LN params as lane-dense (1, D)/(1, DFF) rows."""
    def row(v):
        return v.reshape(1, -1).astype(jnp.float32)

    def attn(p):
        return dict(
            wq=p["wq"].astype(mxu_dtype), bq=row(p["bq"]),
            wk=p["wk"].astype(mxu_dtype), bk=row(p["bk"]),
            wv=p["wv"].astype(mxu_dtype), bv=row(p["bv"]),
            wo=p["wo"].astype(mxu_dtype), bo=row(p["bo"]))

    layers = []
    for lp in raw["layers"]:
        layers.append(dict(
            self_attn=attn(lp["self_attn"]),
            cross_attn=attn(lp["cross_attn"]),
            ff_w1=lp["ff_w1"].astype(mxu_dtype), ff_b1=row(lp["ff_b1"]),
            ff_w2=lp["ff_w2"].astype(mxu_dtype), ff_b2=row(lp["ff_b2"]),
            ln1_a=row(lp["ln1_a"]), ln1_b=row(lp["ln1_b"]),
            ln2_a=row(lp["ln2_a"]), ln2_b=row(lp["ln2_b"]),
            ln3_a=row(lp["ln3_a"]), ln3_b=row(lp["ln3_b"])))
    return dict(layers=layers, norm_a=row(raw["norm_a"]), norm_b=row(raw["norm_b"]))


if __name__ == "__main__":
    B, S, D, H, DFF, NLAYERS = 2, 8, 32, 4, 64, 2
    assert D % H == 0

    key = jax.random.PRNGKey(0)
    k_p, k_x, k_e = jax.random.split(key, 3)

    params = prepare_params(make_params(k_p, NLAYERS, D, DFF))
    x = jax.random.normal(k_x, (B, S, D), jnp.float32)            # decoder input
    encoder_output = jax.random.normal(k_e, (B, S, D), jnp.float32)

    # tgt_mask: causal (B, S, S); src_mask: all-visible (B, S, S)
    causal = jnp.tril(jnp.ones((S, S), jnp.float32))
    tgt_mask = jnp.broadcast_to(causal, (B, S, S))
    src_mask = jnp.ones((B, S, S), jnp.float32)

    fwd = jax.jit(functools.partial(decoder_forward, num_heads=H))
    out = fwd(x, encoder_output, src_mask, tgt_mask, params)
    jax.block_until_ready(out)
    assert out.shape == (B, S, D)
    print("KERNEL_OK")
</pallas_src>

<mosaic_0001>
module attributes {stable_mosaic.version = 11 : i64} {
  func.func @_ffn_kernel(%arg0: i32, %arg1: memref<16x32xf32, #tpu.memory_space<vmem>>, %arg2: memref<1x32xf32, #tpu.memory_space<vmem>>, %arg3: memref<1x32xf32, #tpu.memory_space<vmem>>, %arg4: memref<32x64xbf16, #tpu.memory_space<vmem>>, %arg5: memref<1x64xf32, #tpu.memory_space<vmem>>, %arg6: memref<64x32xbf16, #tpu.memory_space<vmem>>, %arg7: memref<1x32xf32, #tpu.memory_space<vmem>>, %arg8: memref<16x32xf32, #tpu.memory_space<vmem>>) attributes {dimension_semantics = [#tpu.dimension_semantics<parallel>], iteration_bounds = array<i64: 1>, scalar_prefetch = 0 : i64, scratch_operands = 0 : i64, tpu.core_type = #tpu.core_type<tc>, window_params = [{transform_indices = @transform_0, window_bounds = array<i64: 16, 32>}, {pipeline_mode = #tpu.pipeline_mode<synchronous>, transform_indices = @transform_1, window_bounds = array<i64: 1, 32>}, {pipeline_mode = #tpu.pipeline_mode<synchronous>, transform_indices = @transform_2, window_bounds = array<i64: 1, 32>}, {pipeline_mode = #tpu.pipeline_mode<synchronous>, transform_indices = @transform_3, window_bounds = array<i64: 32, 64>}, {pipeline_mode = #tpu.pipeline_mode<synchronous>, transform_indices = @transform_4, window_bounds = array<i64: 1, 64>}, {pipeline_mode = #tpu.pipeline_mode<synchronous>, transform_indices = @transform_5, window_bounds = array<i64: 64, 32>}, {pipeline_mode = #tpu.pipeline_mode<synchronous>, transform_indices = @transform_6, window_bounds = array<i64: 1, 32>}, {transform_indices = @transform_7, window_bounds = array<i64: 16, 32>}]} {
    %c0 = arith.constant 0 : index
    %c0_0 = arith.constant 0 : index
    %0 = vector.load %arg1[%c0, %c0_0] : memref<16x32xf32, #tpu.memory_space<vmem>>, vector<16x32xf32>
    %c0_1 = arith.constant 0 : index
    %c0_2 = arith.constant 0 : index
    %1 = vector.load %arg2[%c0_1, %c0_2] : memref<1x32xf32, #tpu.memory_space<vmem>>, vector<1x32xf32>
    %c0_3 = arith.constant 0 : index
    %c0_4 = arith.constant 0 : index
    %2 = vector.load %arg3[%c0_3, %c0_4] : memref<1x32xf32, #tpu.memory_space<vmem>>, vector<1x32xf32>
    %cst = arith.constant dense<0.000000e+00> : vector<16xf32>
    %3 = vector.multi_reduction <add>, %0, %cst [1] : vector<16x32xf32> to vector<16xf32>
    %4 = vector.shape_cast %3 : vector<16xf32> to vector<16x1xf32>
    %cst_5 = arith.constant 3.200000e+01 : f32
    %5 = vector.broadcast %cst_5 : f32 to vector<16x1xf32>
    %6 = arith.divf %4, %5 : vector<16x1xf32>
    %7 = vector.broadcast %6 : vector<16x1xf32> to vector<16x32xf32>
    %8 = arith.subf %0, %7 : vector<16x32xf32>
    %9 = arith.mulf %8, %8 : vector<16x32xf32>
    %cst_6 = arith.constant dense<0.000000e+00> : vector<16xf32>
    %10 = vector.multi_reduction <add>, %9, %cst_6 [1] : vector<16x32xf32> to vector<16xf32>
    %11 = vector.shape_cast %10 : vector<16xf32> to vector<16x1xf32>
    %cst_7 = arith.constant 3.100000e+01 : f32
    %12 = vector.broadcast %cst_7 : f32 to vector<16x1xf32>
    %13 = arith.divf %11, %12 : vector<16x1xf32>
    %14 = math.sqrt %13 : vector<16x1xf32>
    %cst_8 = arith.constant 9.99999997E-7 : f32
    %15 = vector.broadcast %cst_8 : f32 to vector<16x1xf32>
    %16 = arith.addf %14, %15 : vector<16x1xf32>
    %17 = tpu.reciprocal %16 {approx = true} : vector<16x1xf32> -> vector<16x1xf32>
    %18 = vector.broadcast %1 : vector<1x32xf32> to vector<16x32xf32>
    %19 = arith.mulf %18, %8 : vector<16x32xf32>
    %20 = vector.broadcast %17 : vector<16x1xf32> to vector<16x32xf32>
    %21 = arith.mulf %19, %20 : vector<16x32xf32>
    %22 = vector.broadcast %2 : vector<1x32xf32> to vector<16x32xf32>
    %23 = arith.addf %21, %22 : vector<16x32xf32>
    %24 = arith.truncf %23 : vector<16x32xf32> to vector<16x32xbf16>
    %c0_9 = arith.constant 0 : index
    %c0_10 = arith.constant 0 : index
    %25 = vector.load %arg4[%c0_9, %c0_10] : memref<32x64xbf16, #tpu.memory_space<vmem>>, vector<32x64xbf16>
    %cst_11 = arith.constant dense<0.000000e+00> : vector<16x64xf32>
    %26 = tpu.matmul %24, %25, %cst_11 {dimension_numbers = #tpu.dot_dimension_numbers<[1], [0], [0], [1], [0, 0, 1, 1], [], []>} : vector<16x32xbf16>, vector<32x64xbf16>, vector<16x64xf32> -> vector<16x64xf32>
    %c0_12 = arith.constant 0 : index
    %c0_13 = arith.constant 0 : index
    %27 = vector.load %arg5[%c0_12, %c0_13] : memref<1x64xf32, #tpu.memory_space<vmem>>, vector<1x64xf32>
    %28 = vector.broadcast %27 : vector<1x64xf32> to vector<16x64xf32>
    %29 = arith.addf %26, %28 : vector<16x64xf32>
    %cst_14 = arith.constant 0.000000e+00 : f32
    %30 = vector.broadcast %cst_14 : f32 to vector<16x64xf32>
    %31 = arith.maximumf %29, %30 : vector<16x64xf32>
    %32 = arith.truncf %31 : vector<16x64xf32> to vector<16x64xbf16>
    %c0_15 = arith.constant 0 : index
    %c0_16 = arith.constant 0 : index
    %33 = vector.load %arg6[%c0_15, %c0_16] : memref<64x32xbf16, #tpu.memory_space<vmem>>, vector<64x32xbf16>
    %cst_17 = arith.constant dense<0.000000e+00> : vector<16x32xf32>
    %34 = tpu.matmul %32, %33, %cst_17 {dimension_numbers = #tpu.dot_dimension_numbers<[1], [0], [0], [1], [0, 0, 1, 1], [], []>} : vector<16x64xbf16>, vector<64x32xbf16>, vector<16x32xf32> -> vector<16x32xf32>
    %35 = arith.addf %0, %34 : vector<16x32xf32>
    %c0_18 = arith.constant 0 : index
    %c0_19 = arith.constant 0 : index
    %36 = vector.load %arg7[%c0_18, %c0_19] : memref<1x32xf32, #tpu.memory_space<vmem>>, vector<1x32xf32>
    %37 = vector.broadcast %36 : vector<1x32xf32> to vector<16x32xf32>
    %38 = arith.addf %35, %37 : vector<16x32xf32>
    %c0_20 = arith.constant 0 : index
    %c0_21 = arith.constant 0 : index
    %39 = vector.load %arg8[%c0_20, %c0_21] : memref<16x32xf32, #tpu.memory_space<vmem>>, vector<16x32xf32>
    tpu.vector_store %arg8[%c0_20, %c0_21], %38 {strides = array<i32>} : memref<16x32xf32, #tpu.memory_space<vmem>>, vector<16x32xf32>,
    return
  }
  func.func @transform_0(%arg0: i32) -> (i32, i32) {
    %c0_i32 = arith.constant 0 : i32
    %c0_i32_0 = arith.constant 0 : i32
    return %arg0, %c0_i32 : i32, i32
  }
  func.func @transform_1(%arg0: i32) -> (i32, i32) {
    %c0_i32 = arith.constant 0 : i32
    %c0_i32_0 = arith.constant 0 : i32
    %c0_i32_1 = arith.constant 0 : i32
    return %c0_i32, %c0_i32_0 : i32, i32
  }
  func.func @transform_2(%arg0: i32) -> (i32, i32) {
    %c0_i32 = arith.constant 0 : i32
    %c0_i32_0 = arith.constant 0 : i32
    %c0_i32_1 = arith.constant 0 : i32
    return %c0_i32, %c0_i32_0 : i32, i32
  }
  func.func @transform_3(%arg0: i32) -> (i32, i32) {
    %c0_i32 = arith.constant 0 : i32
    %c0_i32_0 = arith.constant 0 : i32
    %c0_i32_1 = arith.constant 0 : i32
    return %c0_i32, %c0_i32_0 : i32, i32
  }
  func.func @transform_4(%arg0: i32) -> (i32, i32) {
    %c0_i32 = arith.constant 0 : i32
    %c0_i32_0 = arith.constant 0 : i32
    %c0_i32_1 = arith.constant 0 : i32
    return %c0_i32, %c0_i32_0 : i32, i32
  }
  func.func @transform_5(%arg0: i32) -> (i32, i32) {
    %c0_i32 = arith.constant 0 : i32
    %c0_i32_0 = arith.constant 0 : i32
    %c0_i32_1 = arith.constant 0 : i32
    return %c0_i32, %c0_i32_0 : i32, i32
  }
  func.func @transform_6(%arg0: i32) -> (i32, i32) {
    %c0_i32 = arith.constant 0 : i32
    %c0_i32_0 = arith.constant 0 : i32
    %c0_i32_1 = arith.constant 0 : i32
    return %c0_i32, %c0_i32_0 : i32, i32
  }
  func.func @transform_7(%arg0: i32) -> (i32, i32) {
    %c0_i32 = arith.constant 0 : i32
    %c0_i32_0 = arith.constant 0 : i32
    return %arg0, %c0_i32 : i32, i32
  }
}

module attributes {stable_mosaic.version = 11 : i64} {
  func.func @_attn_kernel(%arg0: i32, %arg1: i32, %arg2: memref<1x8x32xf32, #tpu.memory_space<vmem>>, %arg3: memref<1x8x32xf32, #tpu.memory_space<vmem>>, %arg4: memref<1x8x8xf32, #tpu.memory_space<vmem>>, %arg5: memref<1x32xf32, #tpu.memory_space<vmem>>, %arg6: memref<1x32xf32, #tpu.memory_space<vmem>>, %arg7: memref<32x32xbf16, #tpu.memory_space<vmem>>, %arg8: memref<1x32xf32, #tpu.memory_space<vmem>>, %arg9: memref<32x32xbf16, #tpu.memory_space<vmem>>, %arg10: memref<1x32xf32, #tpu.memory_space<vmem>>, %arg11: memref<32x32xbf16, #tpu.memory_space<vmem>>, %arg12: memref<1x32xf32, #tpu.memory_space<vmem>>, %arg13: memref<32x32xbf16, #tpu.memory_space<vmem>>, %arg14: memref<1x32xf32, #tpu.memory_space<vmem>>, %arg15: memref<1x8x32xf32, #tpu.memory_space<vmem>>) attributes {dimension_semantics = [#tpu.dimension_semantics<parallel>, #tpu.dimension_semantics<parallel>], iteration_bounds = array<i64: 2, 1>, scalar_prefetch = 0 : i64, scratch_operands = 0 : i64, tpu.core_type = #tpu.core_type<tc>, window_params = [{transform_indices = @transform_0, window_bounds = array<i64: 1, 8, 32>}, {transform_indices = @transform_1, window_bounds = array<i64: 1, 8, 32>}, {transform_indices = @transform_2, window_bounds = array<i64: 1, 8, 8>}, {pipeline_mode = #tpu.pipeline_mode<synchronous>, transform_indices = @transform_3, window_bounds = array<i64: 1, 32>}, {pipeline_mode = #tpu.pipeline_mode<synchronous>, transform_indices = @transform_4, window_bounds = array<i64: 1, 32>}, {pipeline_mode = #tpu.pipeline_mode<synchronous>, transform_indices = @transform_5, window_bounds = array<i64: 32, 32>}, {pipeline_mode = #tpu.pipeline_mode<synchronous>, transform_indices = @transform_6, window_bounds = array<i64: 1, 32>}, {pipeline_mode = #tpu.pipeline_mode<synchronous>, transform_indices = @transform_7, window_bounds = array<i64: 32, 32>}, {pipeline_mode = #tpu.pipeline_mode<synchronous>, transform_indices = @transform_8, window_bounds = array<i64: 1, 32>}, {pipeline_mode = #tpu.pipeline_mode<synchronous>, transform_indices = @transform_9, window_bounds = array<i64: 32, 32>}, {pipeline_mode = #tpu.pipeline_mode<synchronous>, transform_indices = @transform_10, window_bounds = array<i64: 1, 32>}, {pipeline_mode = #tpu.pipeline_mode<synchronous>, transform_indices = @transform_11, window_bounds = array<i64: 32, 32>}, {pipeline_mode = #tpu.pipeline_mode<synchronous>, transform_indices = @transform_12, window_bounds = array<i64: 1, 32>}, {transform_indices = @transform_13, window_bounds = array<i64: 1, 8, 32>}]} {
    %c0 = arith.constant 0 : index
    %c0_0 = arith.constant 0 : index
    %c0_1 = arith.constant 0 : index
    %0 = vector.load %arg2[%c0, %c0_0, %c0_1] : memref<1x8x32xf32, #tpu.memory_space<vmem>>, vector<1x8x32xf32>
    %1 = vector.shape_cast %0 : vector<1x8x32xf32> to vector<8x32xf32>
    %c0_2 = arith.constant 0 : index
    %c0_3 = arith.constant 0 : index
    %2 = vector.load %arg5[%c0_2, %c0_3] : memref<1x32xf32, #tpu.memory_space<vmem>>, vector<1x32xf32>
    %c0_4 = arith.constant 0 : index
    %c0_5 = arith.constant 0 : index
    %3 = vector.load %arg6[%c0_4, %c0_5] : memref<1x32xf32, #tpu.memory_space<vmem>>, vector<1x32xf32>
    %cst = arith.constant dense<0.000000e+00> : vector<8xf32>
    %4 = vector.multi_reduction <add>, %1, %cst [1] : vector<8x32xf32> to vector<8xf32>
    %5 = vector.shape_cast %4 : vector<8xf32> to vector<8x1xf32>
    %cst_6 = arith.constant 3.200000e+01 : f32
    %6 = vector.broadcast %cst_6 : f32 to vector<8x1xf32>
    %7 = arith.divf %5, %6 : vector<8x1xf32>
    %8 = vector.broadcast %7 : vector<8x1xf32> to vector<8x32xf32>
    %9 = arith.subf %1, %8 : vector<8x32xf32>
    %10 = arith.mulf %9, %9 : vector<8x32xf32>
    %cst_7 = arith.constant dense<0.000000e+00> : vector<8xf32>
    %11 = vector.multi_reduction <add>, %10, %cst_7 [1] : vector<8x32xf32> to vector<8xf32>
    %12 = vector.shape_cast %11 : vector<8xf32> to vector<8x1xf32>
    %cst_8 = arith.constant 3.100000e+01 : f32
    %13 = vector.broadcast %cst_8 : f32 to vector<8x1xf32>
    %14 = arith.divf %12, %13 : vector<8x1xf32>
    %15 = math.sqrt %14 : vector<8x1xf32>
    %cst_9 = arith.constant 9.99999997E-7 : f32
    %16 = vector.broadcast %cst_9 : f32 to vector<8x1xf32>
    %17 = arith.addf %15, %16 : vector<8x1xf32>
    %18 = tpu.reciprocal %17 {approx = true} : vector<8x1xf32> -> vector<8x1xf32>
    %19 = vector.broadcast %2 : vector<1x32xf32> to vector<8x32xf32>
    %20 = arith.mulf %19, %9 : vector<8x32xf32>
    %21 = vector.broadcast %18 : vector<8x1xf32> to vector<8x32xf32>
    %22 = arith.mulf %20, %21 : vector<8x32xf32>
    %23 = vector.broadcast %3 : vector<1x32xf32> to vector<8x32xf32>
    %24 = arith.addf %22, %23 : vector<8x32xf32>
    %c0_10 = arith.constant 0 : index
    %c0_11 = arith.constant 0 : index
    %c0_12 = arith.constant 0 : index
    %25 = vector.load %arg3[%c0_10, %c0_11, %c0_12] : memref<1x8x32xf32, #tpu.memory_space<vmem>>, vector<1x8x32xf32>
    %26 = vector.shape_cast %25 : vector<1x8x32xf32> to vector<8x32xf32>
    %c0_13 = arith.constant 0 : index
    %c0_14 = arith.constant 0 : index
    %c0_15 = arith.constant 0 : index
    %27 = vector.load %arg4[%c0_13, %c0_14, %c0_15] : memref<1x8x8xf32, #tpu.memory_space<vmem>>, vector<1x8x8xf32>
    %28 = vector.shape_cast %27 : vector<1x8x8xf32> to vector<8x8xf32>
    %cst_16 = arith.constant 0.000000e+00 : f32
    %29 = vector.broadcast %cst_16 : f32 to vector<8x8xf32>
    %30 = arith.cmpf oeq, %28, %29 : vector<8x8xf32>
    %cst_17 = arith.constant -1.000000e+09 : f32
    %cst_18 = arith.constant 0.000000e+00 : f32
    %31 = vector.broadcast %cst_17 : f32 to vector<8x8xf32>
    %32 = vector.broadcast %cst_18 : f32 to vector<8x8xf32>
    %33 = arith.select %30, %31, %32 : vector<8x8xi1>, vector<8x8xf32>
    %34 = arith.truncf %24 : vector<8x32xf32> to vector<8x32xbf16>
    %35 = arith.truncf %26 : vector<8x32xf32> to vector<8x32xbf16>
    %c0_19 = arith.constant 0 : index
    %c0_20 = arith.constant 0 : index
    %36 = vector.load %arg7[%c0_19, %c0_20] : memref<32x32xbf16, #tpu.memory_space<vmem>>, vector<32x32xbf16>
    %cst_21 = arith.constant dense<0.000000e+00> : vector<8x32xf32>
    %37 = tpu.matmul %34, %36, %cst_21 {dimension_numbers = #tpu.dot_dimension_numbers<[1], [0], [0], [1], [0, 0, 1, 1], [], []>} : vector<8x32xbf16>, vector<32x32xbf16>, vector<8x32xf32> -> vector<8x32xf32>
    %c0_22 = arith.constant 0 : index
    %c0_23 = arith.constant 0 : index
    %38 = vector.load %arg8[%c0_22, %c0_23] : memref<1x32xf32, #tpu.memory_space<vmem>>, vector<1x32xf32>
    %39 = vector.broadcast %38 : vector<1x32xf32> to vector<8x32xf32>
    %40 = arith.addf %37, %39 : vector<8x32xf32>
    %cst_24 = arith.constant 0.353553385 : f32
    %41 = vector.broadcast %cst_24 : f32 to vector<8x32xf32>
    %42 = arith.mulf %40, %41 : vector<8x32xf32>
    %c0_25 = arith.constant 0 : index
    %c0_26 = arith.constant 0 : index
    %43 = vector.load %arg9[%c0_25, %c0_26] : memref<32x32xbf16, #tpu.memory_space<vmem>>, vector<32x32xbf16>
    %cst_27 = arith.constant dense<0.000000e+00> : vector<8x32xf32>
    %44 = tpu.matmul %35, %43, %cst_27 {dimension_numbers = #tpu.dot_dimension_numbers<[1], [0], [0], [1], [0, 0, 1, 1], [], []>} : vector<8x32xbf16>, vector<32x32xbf16>, vector<8x32xf32> -> vector<8x32xf32>
    %c0_28 = arith.constant 0 : index
    %c0_29 = arith.constant 0 : index
    %45 = vector.load %arg10[%c0_28, %c0_29] : memref<1x32xf32, #tpu.memory_space<vmem>>, vector<1x32xf32>
    %46 = vector.broadcast %45 : vector<1x32xf32> to vector<8x32xf32>
    %47 = arith.addf %44, %46 : vector<8x32xf32>
    %c0_30 = arith.constant 0 : index
    %c0_31 = arith.constant 0 : index
    %48 = vector.load %arg11[%c0_30, %c0_31] : memref<32x32xbf16, #tpu.memory_space<vmem>>, vector<32x32xbf16>
    %cst_32 = arith.constant dense<0.000000e+00> : vector<8x32xf32>
    %49 = tpu.matmul %35, %48, %cst_32 {dimension_numbers = #tpu.dot_dimension_numbers<[1], [0], [0], [1], [0, 0, 1, 1], [], []>} : vector<8x32xbf16>, vector<32x32xbf16>, vector<8x32xf32> -> vector<8x32xf32>
    %c0_33 = arith.constant 0 : index
    %c0_34 = arith.constant 0 : index
    %50 = vector.load %arg12[%c0_33, %c0_34] : memref<1x32xf32, #tpu.memory_space<vmem>>, vector<1x32xf32>
    %51 = vector.broadcast %50 : vector<1x32xf32> to vector<8x32xf32>
    %52 = arith.addf %49, %51 : vector<8x32xf32>
    %53 = vector.extract_strided_slice %42 {offsets = [0, 0], sizes = [8, 8], strides = [1, 1]} : vector<8x32xf32> to vector<8x8xf32>
    %54 = arith.truncf %53 : vector<8x8xf32> to vector<8x8xbf16>
    %55 = vector.extract_strided_slice %47 {offsets = [0, 0], sizes = [8, 8], strides = [1, 1]} : vector<8x32xf32> to vector<8x8xf32>
    %56 = arith.truncf %55 : vector<8x8xf32> to vector<8x8xbf16>
    %57 = vector.extract_strided_slice %52 {offsets = [0, 0], sizes = [8, 8], strides = [1, 1]} : vector<8x32xf32> to vector<8x8xf32>
    %58 = arith.truncf %57 : vector<8x8xf32> to vector<8x8xbf16>
    %cst_35 = arith.constant dense<0.000000e+00> : vector<8x8xf32>
    %59 = tpu.matmul %54, %56, %cst_35 {dimension_numbers = #tpu.dot_dimension_numbers<[1], [1], [0], [0], [0, 0, 1, 0], [], []>} : vector<8x8xbf16>, vector<8x8xbf16>, vector<8x8xf32> -> vector<8x8xf32>
    %60 = arith.addf %59, %33 : vector<8x8xf32>
    %cst_36 = arith.constant dense<0xFF800000> : vector<8xf32>
    %61 = vector.multi_reduction <maximumf>, %60, %cst_36 [1] : vector<8x8xf32> to vector<8xf32>
    %62 = vector.shape_cast %61 : vector<8xf32> to vector<8x1xf32>
    %63 = vector.broadcast %62 : vector<8x1xf32> to vector<8x8xf32>
    %64 = arith.subf %60, %63 : vector<8x8xf32>
    %65 = math.exp %64 : vector<8x8xf32>
    %cst_37 = arith.constant dense<0.000000e+00> : vector<8xf32>
    %66 = vector.multi_reduction <add>, %65, %cst_37 [1] : vector<8x8xf32> to vector<8xf32>
    %67 = vector.shape_cast %66 : vector<8xf32> to vector<8x1xf32>
    %68 = tpu.reciprocal %67 {approx = true} : vector<8x1xf32> -> vector<8x1xf32>
    %69 = vector.broadcast %68 : vector<8x1xf32> to vector<8x8xf32>
    %70 = arith.mulf %65, %69 : vector<8x8xf32>
    %71 = arith.truncf %70 : vector<8x8xf32> to vector<8x8xbf16>
    %cst_38 = arith.constant dense<0.000000e+00> : vector<8x8xf32>
    %72 = tpu.matmul %71, %58, %cst_38 {dimension_numbers = #tpu.dot_dimension_numbers<[1], [0], [0], [1], [0, 0, 1, 1], [], []>} : vector<8x8xbf16>, vector<8x8xbf16>, vector<8x8xf32> -> vector<8x8xf32>
    %73 = vector.extract_strided_slice %42 {offsets = [0, 8], sizes = [8, 8], strides = [1, 1]} : vector<8x32xf32> to vector<8x8xf32>
    %74 = arith.truncf %73 : vector<8x8xf32> to vector<8x8xbf16>
    %75 = vector.extract_strided_slice %47 {offsets = [0, 8], sizes = [8, 8], strides = [1, 1]} : vector<8x32xf32> to vector<8x8xf32>
    %76 = arith.truncf %75 : vector<8x8xf32> to vector<8x8xbf16>
    %77 = vector.extract_strided_slice %52 {offsets = [0, 8], sizes = [8, 8], strides = [1, 1]} : vector<8x32xf32> to vector<8x8xf32>
    %78 = arith.truncf %77 : vector<8x8xf32> to vector<8x8xbf16>
    %cst_39 = arith.constant dense<0.000000e+00> : vector<8x8xf32>
    %79 = tpu.matmul %74, %76, %cst_39 {dimension_numbers = #tpu.dot_dimension_numbers<[1], [1], [0], [0], [0, 0, 1, 0], [], []>} : vector<8x8xbf16>, vector<8x8xbf16>, vector<8x8xf32> -> vector<8x8xf32>
    %80 = arith.addf %79, %33 : vector<8x8xf32>
    %cst_40 = arith.constant dense<0xFF800000> : vector<8xf32>
    %81 = vector.multi_reduction <maximumf>, %80, %cst_40 [1] : vector<8x8xf32> to vector<8xf32>
    %82 = vector.shape_cast %81 : vector<8xf32> to vector<8x1xf32>
    %83 = vector.broadcast %82 : vector<8x1xf32> to vector<8x8xf32>
    %84 = arith.subf %80, %83 : vector<8x8xf32>
    %85 = math.exp %84 : vector<8x8xf32>
    %cst_41 = arith.constant dense<0.000000e+00> : vector<8xf32>
    %86 = vector.multi_reduction <add>, %85, %cst_41 [1] : vector<8x8xf32> to vector<8xf32>
    %87 = vector.shape_cast %86 : vector<8xf32> to vector<8x1xf32>
    %88 = tpu.reciprocal %87 {approx = true} : vector<8x1xf32> -> vector<8x1xf32>
    %89 = vector.broadcast %88 : vector<8x1xf32> to vector<8x8xf32>
    %90 = arith.mulf %85, %89 : vector<8x8xf32>
    %91 = arith.truncf %90 : vector<8x8xf32> to vector<8x8xbf16>
    %cst_42 = arith.constant dense<0.000000e+00> : vector<8x8xf32>
    %92 = tpu.matmul %91, %78, %cst_42 {dimension_numbers = #tpu.dot_dimension_numbers<[1], [0], [0], [1], [0, 0, 1, 1], [], []>} : vector<8x8xbf16>, vector<8x8xbf16>, vector<8x8xf32> -> vector<8x8xf32>
    %93 = vector.extract_strided_slice %42 {offsets = [0, 16], sizes = [8, 8], strides = [1, 1]} : vector<8x32xf32> to vector<8x8xf32>
    %94 = arith.truncf %93 : vector<8x8xf32> to vector<8x8xbf16>
    %95 = vector.extract_strided_slice %47 {offsets = [0, 16], sizes = [8, 8], strides = [1, 1]} : vector<8x32xf32> to vector<8x8xf32>
    %96 = arith.truncf %95 : vector<8x8xf32> to vector<8x8xbf16>
    %97 = vector.extract_strided_slice %52 {offsets = [0, 16], sizes = [8, 8], strides = [1, 1]} : vector<8x32xf32> to vector<8x8xf32>
    %98 = arith.truncf %97 : vector<8x8xf32> to vector<8x8xbf16>
    %cst_43 = arith.constant dense<0.000000e+00> : vector<8x8xf32>
    %99 = tpu.matmul %94, %96, %cst_43 {dimension_numbers = #tpu.dot_dimension_numbers<[1], [1], [0], [0], [0, 0, 1, 0], [], []>} : vector<8x8xbf16>, vector<8x8xbf16>, vector<8x8xf32> -> vector<8x8xf32>
    %100 = arith.addf %99, %33 : vector<8x8xf32>
    %cst_44 = arith.constant dense<0xFF800000> : vector<8xf32>
    %101 = vector.multi_reduction <maximumf>, %100, %cst_44 [1] : vector<8x8xf32> to vector<8xf32>
    %102 = vector.shape_cast %101 : vector<8xf32> to vector<8x1xf32>
    %103 = vector.broadcast %102 : vector<8x1xf32> to vector<8x8xf32>
    %104 = arith.subf %100, %103 : vector<8x8xf32>
    %105 = math.exp %104 : vector<8x8xf32>
    %cst_45 = arith.constant dense<0.000000e+00> : vector<8xf32>
    %106 = vector.multi_reduction <add>, %105, %cst_45 [1] : vector<8x8xf32> to vector<8xf32>
    %107 = vector.shape_cast %106 : vector<8xf32> to vector<8x1xf32>
    %108 = tpu.reciprocal %107 {approx = true} : vector<8x1xf32> -> vector<8x1xf32>
    %109 = vector.broadcast %108 : vector<8x1xf32> to vector<8x8xf32>
    %110 = arith.mulf %105, %109 : vector<8x8xf32>
    %111 = arith.truncf %110 : vector<8x8xf32> to vector<8x8xbf16>
    %cst_46 = arith.constant dense<0.000000e+00> : vector<8x8xf32>
    %112 = tpu.matmul %111, %98, %cst_46 {dimension_numbers = #tpu.dot_dimension_numbers<[1], [0], [0], [1], [0, 0, 1, 1], [], []>} : vector<8x8xbf16>, vector<8x8xbf16>, vector<8x8xf32> -> vector<8x8xf32>
    %113 = vector.extract_strided_slice %42 {offsets = [0, 24], sizes = [8, 8], strides = [1, 1]} : vector<8x32xf32> to vector<8x8xf32>
    %114 = arith.truncf %113 : vector<8x8xf32> to vector<8x8xbf16>
    %115 = vector.extract_strided_slice %47 {offsets = [0, 24], sizes = [8, 8], strides = [1, 1]} : vector<8x32xf32> to vector<8x8xf32>
    %116 = arith.truncf %115 : vector<8x8xf32> to vector<8x8xbf16>
    %117 = vector.extract_strided_slice %52 {offsets = [0, 24], sizes = [8, 8], strides = [1, 1]} : vector<8x32xf32> to vector<8x8xf32>
    %118 = arith.truncf %117 : vector<8x8xf32> to vector<8x8xbf16>
    %cst_47 = arith.constant dense<0.000000e+00> : vector<8x8xf32>
    %119 = tpu.matmul %114, %116, %cst_47 {dimension_numbers = #tpu.dot_dimension_numbers<[1], [1], [0], [0], [0, 0, 1, 0], [], []>} : vector<8x8xbf16>, vector<8x8xbf16>, vector<8x8xf32> -> vector<8x8xf32>
    %120 = arith.addf %119, %33 : vector<8x8xf32>
    %cst_48 = arith.constant dense<0xFF800000> : vector<8xf32>
    %121 = vector.multi_reduction <maximumf>, %120, %cst_48 [1] : vector<8x8xf32> to vector<8xf32>
    %122 = vector.shape_cast %121 : vector<8xf32> to vector<8x1xf32>
    %123 = vector.broadcast %122 : vector<8x1xf32> to vector<8x8xf32>
    %124 = arith.subf %120, %123 : vector<8x8xf32>
    %125 = math.exp %124 : vector<8x8xf32>
    %cst_49 = arith.constant dense<0.000000e+00> : vector<8xf32>
    %126 = vector.multi_reduction <add>, %125, %cst_49 [1] : vector<8x8xf32> to vector<8xf32>
    %127 = vector.shape_cast %126 : vector<8xf32> to vector<8x1xf32>
    %128 = tpu.reciprocal %127 {approx = true} : vector<8x1xf32> -> vector<8x1xf32>
    %129 = vector.broadcast %128 : vector<8x1xf32> to vector<8x8xf32>
    %130 = arith.mulf %125, %129 : vector<8x8xf32>
    %131 = arith.truncf %130 : vector<8x8xf32> to vector<8x8xbf16>
    %cst_50 = arith.constant dense<0.000000e+00> : vector<8x8xf32>
    %132 = tpu.matmul %131, %118, %cst_50 {dimension_numbers = #tpu.dot_dimension_numbers<[1], [0], [0], [1], [0, 0, 1, 1], [], []>} : vector<8x8xbf16>, vector<8x8xbf16>, vector<8x8xf32> -> vector<8x8xf32>
    %133 = tpu.concatenate %72, %92, %112, %132 in 1 : vector<8x8xf32>, vector<8x8xf32>, vector<8x8xf32>, vector<8x8xf32> -> vector<8x32xf32>
    %134 = arith.truncf %133 : vector<8x32xf32> to vector<8x32xbf16>
    %c0_51 = arith.constant 0 : index
    %c0_52 = arith.constant 0 : index
    %135 = vector.load %arg13[%c0_51, %c0_52] : memref<32x32xbf16, #tpu.memory_space<vmem>>, vector<32x32xbf16>
    %cst_53 = arith.constant dense<0.000000e+00> : vector<8x32xf32>
    %136 = tpu.matmul %134, %135, %cst_53 {dimension_numbers = #tpu.dot_dimension_numbers<[1], [0], [0], [1], [0, 0, 1, 1], [], []>} : vector<8x32xbf16>, vector<32x32xbf16>, vector<8x32xf32> -> vector<8x32xf32>
    %c0_54 = arith.constant 0 : index
    %c0_55 = arith.constant 0 : index
    %137 = vector.load %arg14[%c0_54, %c0_55] : memref<1x32xf32, #tpu.memory_space<vmem>>, vector<1x32xf32>
    %138 = vector.broadcast %137 : vector<1x32xf32> to vector<8x32xf32>
    %139 = arith.addf %136, %138 : vector<8x32xf32>
    %140 = arith.addf %1, %139 : vector<8x32xf32>
    %c0_56 = arith.constant 0 : index
    %c0_57 = arith.constant 0 : index
    %c0_58 = arith.constant 0 : index
    %141 = vector.load %arg15[%c0_56, %c0_57, %c0_58] : memref<1x8x32xf32, #tpu.memory_space<vmem>>, vector<1x8x32xf32>
    %142 = vector.shape_cast %141 : vector<1x8x32xf32> to vector<8x32xf32>
    %143 = vector.shape_cast %140 : vector<8x32xf32> to vector<1x8x32xf32>
    tpu.vector_store %arg15[%c0_56, %c0_57, %c0_58], %143 {strides = array<i32>} : memref<1x8x32xf32, #tpu.memory_space<vmem>>, vector<1x8x32xf32>,
    return
  }
  func.func @transform_0(%arg0: i32, %arg1: i32) -> (i32, i32, i32) {
    %c0_i32 = arith.constant 0 : i32
    %c0_i32_0 = arith.constant 0 : i32
    return %arg0, %arg1, %c0_i32 : i32, i32, i32
  }
  func.func @transform_1(%arg0: i32, %arg1: i32) -> (i32, i32, i32) {
    %c0_i32 = arith.constant 0 : i32
    %c0_i32_0 = arith.constant 0 : i32
    %c0_i32_1 = arith.constant 0 : i32
    return %arg0, %c0_i32, %c0_i32_0 : i32, i32, i32
  }
  func.func @transform_2(%arg0: i32, %arg1: i32) -> (i32, i32, i32) {
    %c0_i32 = arith.constant 0 : i32
    %c0_i32_0 = arith.constant 0 : i32
    return %arg0, %arg1, %c0_i32 : i32, i32, i32
  }
  func.func @transform_3(%arg0: i32, %arg1: i32) -> (i32, i32) {
    %c0_i32 = arith.constant 0 : i32
    %c0_i32_0 = arith.constant 0 : i32
    %c0_i32_1 = arith.constant 0 : i32
    return %c0_i32, %c0_i32_0 : i32, i32
  }
  func.func @transform_4(%arg0: i32, %arg1: i32) -> (i32, i32) {
    %c0_i32 = arith.constant 0 : i32
    %c0_i32_0 = arith.constant 0 : i32
    %c0_i32_1 = arith.constant 0 : i32
    return %c0_i32, %c0_i32_0 : i32, i32
  }
  func.func @transform_5(%arg0: i32, %arg1: i32) -> (i32, i32) {
    %c0_i32 = arith.constant 0 : i32
    %c0_i32_0 = arith.constant 0 : i32
    %c0_i32_1 = arith.constant 0 : i32
    return %c0_i32, %c0_i32_0 : i32, i32
  }
  func.func @transform_6(%arg0: i32, %arg1: i32) -> (i32, i32) {
    %c0_i32 = arith.constant 0 : i32
    %c0_i32_0 = arith.constant 0 : i32
    %c0_i32_1 = arith.constant 0 : i32
    return %c0_i32, %c0_i32_0 : i32, i32
  }
  func.func @transform_7(%arg0: i32, %arg1: i32) -> (i32, i32) {
    %c0_i32 = arith.constant 0 : i32
    %c0_i32_0 = arith.constant 0 : i32
    %c0_i32_1 = arith.constant 0 : i32
    return %c0_i32, %c0_i32_0 : i32, i32
  }
  func.func @transform_8(%arg0: i32, %arg1: i32) -> (i32, i32) {
    %c0_i32 = arith.constant 0 : i32
    %c0_i32_0 = arith.constant 0 : i32
    %c0_i32_1 = arith.constant 0 : i32
    return %c0_i32, %c0_i32_0 : i32, i32
  }
  func.func @transform_9(%arg0: i32, %arg1: i32) -> (i32, i32) {
    %c0_i32 = arith.constant 0 : i32
    %c0_i32_0 = arith.constant 0 : i32
    %c0_i32_1 = arith.constant 0 : i32
    return %c0_i32, %c0_i32_0 : i32, i32
  }
  func.func @transform_10(%arg0: i32, %arg1: i32) -> (i32, i32) {
    %c0_i32 = arith.constant 0 : i32
    %c0_i32_0 = arith.constant 0 : i32
    %c0_i32_1 = arith.constant 0 : i32
    return %c0_i32, %c0_i32_0 : i32, i32
  }
  func.func @transform_11(%arg0: i32, %arg1: i32) -> (i32, i32) {
    %c0_i32 = arith.constant 0 : i32
    %c0_i32_0 = arith.constant 0 : i32
    %c0_i32_1 = arith.constant 0 : i32
    return %c0_i32, %c0_i32_0 : i32, i32
  }
  func.func @transform_12(%arg0: i32, %arg1: i32) -> (i32, i32) {
    %c0_i32 = arith.constant 0 : i32
    %c0_i32_0 = arith.constant 0 : i32
    %c0_i32_1 = arith.constant 0 : i32
    return %c0_i32, %c0_i32_0 : i32, i32
  }
  func.func @transform_13(%arg0: i32, %arg1: i32) -> (i32, i32, i32) {
    %c0_i32 = arith.constant 0 : i32
    %c0_i32_0 = arith.constant 0 : i32
    return %arg0, %arg1, %c0_i32 : i32, i32, i32
  }
}

module attributes {stable_mosaic.version = 11 : i64} {
  func.func @_attn_kernel(%arg0: i32, %arg1: i32, %arg2: memref<1x8x32xf32, #tpu.memory_space<vmem>>, %arg3: memref<1x8x32xf32, #tpu.memory_space<vmem>>, %arg4: memref<1x8x8xf32, #tpu.memory_space<vmem>>, %arg5: memref<1x32xf32, #tpu.memory_space<vmem>>, %arg6: memref<1x32xf32, #tpu.memory_space<vmem>>, %arg7: memref<32x32xbf16, #tpu.memory_space<vmem>>, %arg8: memref<1x32xf32, #tpu.memory_space<vmem>>, %arg9: memref<32x32xbf16, #tpu.memory_space<vmem>>, %arg10: memref<1x32xf32, #tpu.memory_space<vmem>>, %arg11: memref<32x32xbf16, #tpu.memory_space<vmem>>, %arg12: memref<1x32xf32, #tpu.memory_space<vmem>>, %arg13: memref<32x32xbf16, #tpu.memory_space<vmem>>, %arg14: memref<1x32xf32, #tpu.memory_space<vmem>>, %arg15: memref<1x8x32xf32, #tpu.memory_space<vmem>>) attributes {dimension_semantics = [#tpu.dimension_semantics<parallel>, #tpu.dimension_semantics<parallel>], iteration_bounds = array<i64: 2, 1>, scalar_prefetch = 0 : i64, scratch_operands = 0 : i64, tpu.core_type = #tpu.core_type<tc>, window_params = [{transform_indices = @transform_0, window_bounds = array<i64: 1, 8, 32>}, {transform_indices = @transform_1, window_bounds = array<i64: 1, 8, 32>}, {transform_indices = @transform_2, window_bounds = array<i64: 1, 8, 8>}, {pipeline_mode = #tpu.pipeline_mode<synchronous>, transform_indices = @transform_3, window_bounds = array<i64: 1, 32>}, {pipeline_mode = #tpu.pipeline_mode<synchronous>, transform_indices = @transform_4, window_bounds = array<i64: 1, 32>}, {pipeline_mode = #tpu.pipeline_mode<synchronous>, transform_indices = @transform_5, window_bounds = array<i64: 32, 32>}, {pipeline_mode = #tpu.pipeline_mode<synchronous>, transform_indices = @transform_6, window_bounds = array<i64: 1, 32>}, {pipeline_mode = #tpu.pipeline_mode<synchronous>, transform_indices = @transform_7, window_bounds = array<i64: 32, 32>}, {pipeline_mode = #tpu.pipeline_mode<synchronous>, transform_indices = @transform_8, window_bounds = array<i64: 1, 32>}, {pipeline_mode = #tpu.pipeline_mode<synchronous>, transform_indices = @transform_9, window_bounds = array<i64: 32, 32>}, {pipeline_mode = #tpu.pipeline_mode<synchronous>, transform_indices = @transform_10, window_bounds = array<i64: 1, 32>}, {pipeline_mode = #tpu.pipeline_mode<synchronous>, transform_indices = @transform_11, window_bounds = array<i64: 32, 32>}, {pipeline_mode = #tpu.pipeline_mode<synchronous>, transform_indices = @transform_12, window_bounds = array<i64: 1, 32>}, {transform_indices = @transform_13, window_bounds = array<i64: 1, 8, 32>}]} {
    %c0 = arith.constant 0 : index
    %c0_0 = arith.constant 0 : index
    %c0_1 = arith.constant 0 : index
    %0 = vector.load %arg2[%c0, %c0_0, %c0_1] : memref<1x8x32xf32, #tpu.memory_space<vmem>>, vector<1x8x32xf32>
    %1 = vector.shape_cast %0 : vector<1x8x32xf32> to vector<8x32xf32>
    %c0_2 = arith.constant 0 : index
    %c0_3 = arith.constant 0 : index
    %2 = vector.load %arg5[%c0_2, %c0_3] : memref<1x32xf32, #tpu.memory_space<vmem>>, vector<1x32xf32>
    %c0_4 = arith.constant 0 : index
    %c0_5 = arith.constant 0 : index
    %3 = vector.load %arg6[%c0_4, %c0_5] : memref<1x32xf32, #tpu.memory_space<vmem>>, vector<1x32xf32>
    %cst = arith.constant dense<0.000000e+00> : vector<8xf32>
    %4 = vector.multi_reduction <add>, %1, %cst [1] : vector<8x32xf32> to vector<8xf32>
    %5 = vector.shape_cast %4 : vector<8xf32> to vector<8x1xf32>
    %cst_6 = arith.constant 3.200000e+01 : f32
    %6 = vector.broadcast %cst_6 : f32 to vector<8x1xf32>
    %7 = arith.divf %5, %6 : vector<8x1xf32>
    %8 = vector.broadcast %7 : vector<8x1xf32> to vector<8x32xf32>
    %9 = arith.subf %1, %8 : vector<8x32xf32>
    %10 = arith.mulf %9, %9 : vector<8x32xf32>
    %cst_7 = arith.constant dense<0.000000e+00> : vector<8xf32>
    %11 = vector.multi_reduction <add>, %10, %cst_7 [1] : vector<8x32xf32> to vector<8xf32>
    %12 = vector.shape_cast %11 : vector<8xf32> to vector<8x1xf32>
    %cst_8 = arith.constant 3.100000e+01 : f32
    %13 = vector.broadcast %cst_8 : f32 to vector<8x1xf32>
    %14 = arith.divf %12, %13 : vector<8x1xf32>
    %15 = math.sqrt %14 : vector<8x1xf32>
    %cst_9 = arith.constant 9.99999997E-7 : f32
    %16 = vector.broadcast %cst_9 : f32 to vector<8x1xf32>
    %17 = arith.addf %15, %16 : vector<8x1xf32>
    %18 = tpu.reciprocal %17 {approx = true} : vector<8x1xf32> -> vector<8x1xf32>
    %19 = vector.broadcast %2 : vector<1x32xf32> to vector<8x32xf32>
    %20 = arith.mulf %19, %9 : vector<8x32xf32>
    %21 = vector.broadcast %18 : vector<8x1xf32> to vector<8x32xf32>
    %22 = arith.mulf %20, %21 : vector<8x32xf32>
    %23 = vector.broadcast %3 : vector<1x32xf32> to vector<8x32xf32>
    %24 = arith.addf %22, %23 : vector<8x32xf32>
    %c0_10 = arith.constant 0 : index
    %c0_11 = arith.constant 0 : index
    %c0_12 = arith.constant 0 : index
    %25 = vector.load %arg3[%c0_10, %c0_11, %c0_12] : memref<1x8x32xf32, #tpu.memory_space<vmem>>, vector<1x8x32xf32>
    %26 = vector.shape_cast %25 : vector<1x8x32xf32> to vector<8x32xf32>
    %c0_13 = arith.constant 0 : index
    %c0_14 = arith.constant 0 : index
    %27 = vector.load %arg5[%c0_13, %c0_14] : memref<1x32xf32, #tpu.memory_space<vmem>>, vector<1x32xf32>
    %c0_15 = arith.constant 0 : index
    %c0_16 = arith.constant 0 : index
    %28 = vector.load %arg6[%c0_15, %c0_16] : memref<1x32xf32, #tpu.memory_space<vmem>>, vector<1x32xf32>
    %cst_17 = arith.constant dense<0.000000e+00> : vector<8xf32>
    %29 = vector.multi_reduction <add>, %26, %cst_17 [1] : vector<8x32xf32> to vector<8xf32>
    %30 = vector.shape_cast %29 : vector<8xf32> to vector<8x1xf32>
    %cst_18 = arith.constant 3.200000e+01 : f32
    %31 = vector.broadcast %cst_18 : f32 to vector<8x1xf32>
    %32 = arith.divf %30, %31 : vector<8x1xf32>
    %33 = vector.broadcast %32 : vector<8x1xf32> to vector<8x32xf32>
    %34 = arith.subf %26, %33 : vector<8x32xf32>
    %35 = arith.mulf %34, %34 : vector<8x32xf32>
    %cst_19 = arith.constant dense<0.000000e+00> : vector<8xf32>
    %36 = vector.multi_reduction <add>, %35, %cst_19 [1] : vector<8x32xf32> to vector<8xf32>
    %37 = vector.shape_cast %36 : vector<8xf32> to vector<8x1xf32>
    %cst_20 = arith.constant 3.100000e+01 : f32
    %38 = vector.broadcast %cst_20 : f32 to vector<8x1xf32>
    %39 = arith.divf %37, %38 : vector<8x1xf32>
    %40 = math.sqrt %39 : vector<8x1xf32>
    %cst_21 = arith.constant 9.99999997E-7 : f32
    %41 = vector.broadcast %cst_21 : f32 to vector<8x1xf32>
    %42 = arith.addf %40, %41 : vector<8x1xf32>
    %43 = tpu.reciprocal %42 {approx = true} : vector<8x1xf32> -> vector<8x1xf32>
    %44 = vector.broadcast %27 : vector<1x32xf32> to vector<8x32xf32>
    %45 = arith.mulf %44, %34 : vector<8x32xf32>
    %46 = vector.broadcast %43 : vector<8x1xf32> to vector<8x32xf32>
    %47 = arith.mulf %45, %46 : vector<8x32xf32>
    %48 = vector.broadcast %28 : vector<1x32xf32> to vector<8x32xf32>
    %49 = arith.addf %47, %48 : vector<8x32xf32>
    %c0_22 = arith.constant 0 : index
    %c0_23 = arith.constant 0 : index
    %c0_24 = arith.constant 0 : index
    %50 = vector.load %arg4[%c0_22, %c0_23, %c0_24] : memref<1x8x8xf32, #tpu.memory_space<vmem>>, vector<1x8x8xf32>
    %51 = vector.shape_cast %50 : vector<1x8x8xf32> to vector<8x8xf32>
    %cst_25 = arith.constant 0.000000e+00 : f32
    %52 = vector.broadcast %cst_25 : f32 to vector<8x8xf32>
    %53 = arith.cmpf oeq, %51, %52 : vector<8x8xf32>
    %cst_26 = arith.constant -1.000000e+09 : f32
    %cst_27 = arith.constant 0.000000e+00 : f32
    %54 = vector.broadcast %cst_26 : f32 to vector<8x8xf32>
    %55 = vector.broadcast %cst_27 : f32 to vector<8x8xf32>
    %56 = arith.select %53, %54, %55 : vector<8x8xi1>, vector<8x8xf32>
    %57 = arith.truncf %24 : vector<8x32xf32> to vector<8x32xbf16>
    %58 = arith.truncf %49 : vector<8x32xf32> to vector<8x32xbf16>
    %c0_28 = arith.constant 0 : index
    %c0_29 = arith.constant 0 : index
    %59 = vector.load %arg7[%c0_28, %c0_29] : memref<32x32xbf16, #tpu.memory_space<vmem>>, vector<32x32xbf16>
    %cst_30 = arith.constant dense<0.000000e+00> : vector<8x32xf32>
    %60 = tpu.matmul %57, %59, %cst_30 {dimension_numbers = #tpu.dot_dimension_numbers<[1], [0], [0], [1], [0, 0, 1, 1], [], []>} : vector<8x32xbf16>, vector<32x32xbf16>, vector<8x32xf32> -> vector<8x32xf32>
    %c0_31 = arith.constant 0 : index
    %c0_32 = arith.constant 0 : index
    %61 = vector.load %arg8[%c0_31, %c0_32] : memref<1x32xf32, #tpu.memory_space<vmem>>, vector<1x32xf32>
    %62 = vector.broadcast %61 : vector<1x32xf32> to vector<8x32xf32>
    %63 = arith.addf %60, %62 : vector<8x32xf32>
    %cst_33 = arith.constant 0.353553385 : f32
    %64 = vector.broadcast %cst_33 : f32 to vector<8x32xf32>
    %65 = arith.mulf %63, %64 : vector<8x32xf32>
    %c0_34 = arith.constant 0 : index
    %c0_35 = arith.constant 0 : index
    %66 = vector.load %arg9[%c0_34, %c0_35] : memref<32x32xbf16, #tpu.memory_space<vmem>>, vector<32x32xbf16>
    %cst_36 = arith.constant dense<0.000000e+00> : vector<8x32xf32>
    %67 = tpu.matmul %58, %66, %cst_36 {dimension_numbers = #tpu.dot_dimension_numbers<[1], [0], [0], [1], [0, 0, 1, 1], [], []>} : vector<8x32xbf16>, vector<32x32xbf16>, vector<8x32xf32> -> vector<8x32xf32>
    %c0_37 = arith.constant 0 : index
    %c0_38 = arith.constant 0 : index
    %68 = vector.load %arg10[%c0_37, %c0_38] : memref<1x32xf32, #tpu.memory_space<vmem>>, vector<1x32xf32>
    %69 = vector.broadcast %68 : vector<1x32xf32> to vector<8x32xf32>
    %70 = arith.addf %67, %69 : vector<8x32xf32>
    %c0_39 = arith.constant 0 : index
    %c0_40 = arith.constant 0 : index
    %71 = vector.load %arg11[%c0_39, %c0_40] : memref<32x32xbf16, #tpu.memory_space<vmem>>, vector<32x32xbf16>
    %cst_41 = arith.constant dense<0.000000e+00> : vector<8x32xf32>
    %72 = tpu.matmul %58, %71, %cst_41 {dimension_numbers = #tpu.dot_dimension_numbers<[1], [0], [0], [1], [0, 0, 1, 1], [], []>} : vector<8x32xbf16>, vector<32x32xbf16>, vector<8x32xf32> -> vector<8x32xf32>
    %c0_42 = arith.constant 0 : index
    %c0_43 = arith.constant 0 : index
    %73 = vector.load %arg12[%c0_42, %c0_43] : memref<1x32xf32, #tpu.memory_space<vmem>>, vector<1x32xf32>
    %74 = vector.broadcast %73 : vector<1x32xf32> to vector<8x32xf32>
    %75 = arith.addf %72, %74 : vector<8x32xf32>
    %76 = vector.extract_strided_slice %65 {offsets = [0, 0], sizes = [8, 8], strides = [1, 1]} : vector<8x32xf32> to vector<8x8xf32>
    %77 = arith.truncf %76 : vector<8x8xf32> to vector<8x8xbf16>
    %78 = vector.extract_strided_slice %70 {offsets = [0, 0], sizes = [8, 8], strides = [1, 1]} : vector<8x32xf32> to vector<8x8xf32>
    %79 = arith.truncf %78 : vector<8x8xf32> to vector<8x8xbf16>
    %80 = vector.extract_strided_slice %75 {offsets = [0, 0], sizes = [8, 8], strides = [1, 1]} : vector<8x32xf32> to vector<8x8xf32>
    %81 = arith.truncf %80 : vector<8x8xf32> to vector<8x8xbf16>
    %cst_44 = arith.constant dense<0.000000e+00> : vector<8x8xf32>
    %82 = tpu.matmul %77, %79, %cst_44 {dimension_numbers = #tpu.dot_dimension_numbers<[1], [1], [0], [0], [0, 0, 1, 0], [], []>} : vector<8x8xbf16>, vector<8x8xbf16>, vector<8x8xf32> -> vector<8x8xf32>
    %83 = arith.addf %82, %56 : vector<8x8xf32>
    %cst_45 = arith.constant dense<0xFF800000> : vector<8xf32>
    %84 = vector.multi_reduction <maximumf>, %83, %cst_45 [1] : vector<8x8xf32> to vector<8xf32>
    %85 = vector.shape_cast %84 : vector<8xf32> to vector<8x1xf32>
    %86 = vector.broadcast %85 : vector<8x1xf32> to vector<8x8xf32>
    %87 = arith.subf %83, %86 : vector<8x8xf32>
    %88 = math.exp %87 : vector<8x8xf32>
    %cst_46 = arith.constant dense<0.000000e+00> : vector<8xf32>
    %89 = vector.multi_reduction <add>, %88, %cst_46 [1] : vector<8x8xf32> to vector<8xf32>
    %90 = vector.shape_cast %89 : vector<8xf32> to vector<8x1xf32>
    %91 = tpu.reciprocal %90 {approx = true} : vector<8x1xf32> -> vector<8x1xf32>
    %92 = vector.broadcast %91 : vector<8x1xf32> to vector<8x8xf32>
    %93 = arith.mulf %88, %92 : vector<8x8xf32>
    %94 = arith.truncf %93 : vector<8x8xf32> to vector<8x8xbf16>
    %cst_47 = arith.constant dense<0.000000e+00> : vector<8x8xf32>
    %95 = tpu.matmul %94, %81, %cst_47 {dimension_numbers = #tpu.dot_dimension_numbers<[1], [0], [0], [1], [0, 0, 1, 1], [], []>} : vector<8x8xbf16>, vector<8x8xbf16>, vector<8x8xf32> -> vector<8x8xf32>
    %96 = vector.extract_strided_slice %65 {offsets = [0, 8], sizes = [8, 8], strides = [1, 1]} : vector<8x32xf32> to vector<8x8xf32>
    %97 = arith.truncf %96 : vector<8x8xf32> to vector<8x8xbf16>
    %98 = vector.extract_strided_slice %70 {offsets = [0, 8], sizes = [8, 8], strides = [1, 1]} : vector<8x32xf32> to vector<8x8xf32>
    %99 = arith.truncf %98 : vector<8x8xf32> to vector<8x8xbf16>
    %100 = vector.extract_strided_slice %75 {offsets = [0, 8], sizes = [8, 8], strides = [1, 1]} : vector<8x32xf32> to vector<8x8xf32>
    %101 = arith.truncf %100 : vector<8x8xf32> to vector<8x8xbf16>
    %cst_48 = arith.constant dense<0.000000e+00> : vector<8x8xf32>
    %102 = tpu.matmul %97, %99, %cst_48 {dimension_numbers = #tpu.dot_dimension_numbers<[1], [1], [0], [0], [0, 0, 1, 0], [], []>} : vector<8x8xbf16>, vector<8x8xbf16>, vector<8x8xf32> -> vector<8x8xf32>
    %103 = arith.addf %102, %56 : vector<8x8xf32>
    %cst_49 = arith.constant dense<0xFF800000> : vector<8xf32>
    %104 = vector.multi_reduction <maximumf>, %103, %cst_49 [1] : vector<8x8xf32> to vector<8xf32>
    %105 = vector.shape_cast %104 : vector<8xf32> to vector<8x1xf32>
    %106 = vector.broadcast %105 : vector<8x1xf32> to vector<8x8xf32>
    %107 = arith.subf %103, %106 : vector<8x8xf32>
    %108 = math.exp %107 : vector<8x8xf32>
    %cst_50 = arith.constant dense<0.000000e+00> : vector<8xf32>
    %109 = vector.multi_reduction <add>, %108, %cst_50 [1] : vector<8x8xf32> to vector<8xf32>
    %110 = vector.shape_cast %109 : vector<8xf32> to vector<8x1xf32>
    %111 = tpu.reciprocal %110 {approx = true} : vector<8x1xf32> -> vector<8x1xf32>
    %112 = vector.broadcast %111 : vector<8x1xf32> to vector<8x8xf32>
    %113 = arith.mulf %108, %112 : vector<8x8xf32>
    %114 = arith.truncf %113 : vector<8x8xf32> to vector<8x8xbf16>
    %cst_51 = arith.constant dense<0.000000e+00> : vector<8x8xf32>
    %115 = tpu.matmul %114, %101, %cst_51 {dimension_numbers = #tpu.dot_dimension_numbers<[1], [0], [0], [1], [0, 0, 1, 1], [], []>} : vector<8x8xbf16>, vector<8x8xbf16>, vector<8x8xf32> -> vector<8x8xf32>
    %116 = vector.extract_strided_slice %65 {offsets = [0, 16], sizes = [8, 8], strides = [1, 1]} : vector<8x32xf32> to vector<8x8xf32>
    %117 = arith.truncf %116 : vector<8x8xf32> to vector<8x8xbf16>
    %118 = vector.extract_strided_slice %70 {offsets = [0, 16], sizes = [8, 8], strides = [1, 1]} : vector<8x32xf32> to vector<8x8xf32>
    %119 = arith.truncf %118 : vector<8x8xf32> to vector<8x8xbf16>
    %120 = vector.extract_strided_slice %75 {offsets = [0, 16], sizes = [8, 8], strides = [1, 1]} : vector<8x32xf32> to vector<8x8xf32>
    %121 = arith.truncf %120 : vector<8x8xf32> to vector<8x8xbf16>
    %cst_52 = arith.constant dense<0.000000e+00> : vector<8x8xf32>
    %122 = tpu.matmul %117, %119, %cst_52 {dimension_numbers = #tpu.dot_dimension_numbers<[1], [1], [0], [0], [0, 0, 1, 0], [], []>} : vector<8x8xbf16>, vector<8x8xbf16>, vector<8x8xf32> -> vector<8x8xf32>
    %123 = arith.addf %122, %56 : vector<8x8xf32>
    %cst_53 = arith.constant dense<0xFF800000> : vector<8xf32>
    %124 = vector.multi_reduction <maximumf>, %123, %cst_53 [1] : vector<8x8xf32> to vector<8xf32>
    %125 = vector.shape_cast %124 : vector<8xf32> to vector<8x1xf32>
    %126 = vector.broadcast %125 : vector<8x1xf32> to vector<8x8xf32>
    %127 = arith.subf %123, %126 : vector<8x8xf32>
    %128 = math.exp %127 : vector<8x8xf32>
    %cst_54 = arith.constant dense<0.000000e+00> : vector<8xf32>
    %129 = vector.multi_reduction <add>, %128, %cst_54 [1] : vector<8x8xf32> to vector<8xf32>
    %130 = vector.shape_cast %129 : vector<8xf32> to vector<8x1xf32>
    %131 = tpu.reciprocal %130 {approx = true} : vector<8x1xf32> -> vector<8x1xf32>
    %132 = vector.broadcast %131 : vector<8x1xf32> to vector<8x8xf32>
    %133 = arith.mulf %128, %132 : vector<8x8xf32>
    %134 = arith.truncf %133 : vector<8x8xf32> to vector<8x8xbf16>
    %cst_55 = arith.constant dense<0.000000e+00> : vector<8x8xf32>
    %135 = tpu.matmul %134, %121, %cst_55 {dimension_numbers = #tpu.dot_dimension_numbers<[1], [0], [0], [1], [0, 0, 1, 1], [], []>} : vector<8x8xbf16>, vector<8x8xbf16>, vector<8x8xf32> -> vector<8x8xf32>
    %136 = vector.extract_strided_slice %65 {offsets = [0, 24], sizes = [8, 8], strides = [1, 1]} : vector<8x32xf32> to vector<8x8xf32>
    %137 = arith.truncf %136 : vector<8x8xf32> to vector<8x8xbf16>
    %138 = vector.extract_strided_slice %70 {offsets = [0, 24], sizes = [8, 8], strides = [1, 1]} : vector<8x32xf32> to vector<8x8xf32>
    %139 = arith.truncf %138 : vector<8x8xf32> to vector<8x8xbf16>
    %140 = vector.extract_strided_slice %75 {offsets = [0, 24], sizes = [8, 8], strides = [1, 1]} : vector<8x32xf32> to vector<8x8xf32>
    %141 = arith.truncf %140 : vector<8x8xf32> to vector<8x8xbf16>
    %cst_56 = arith.constant dense<0.000000e+00> : vector<8x8xf32>
    %142 = tpu.matmul %137, %139, %cst_56 {dimension_numbers = #tpu.dot_dimension_numbers<[1], [1], [0], [0], [0, 0, 1, 0], [], []>} : vector<8x8xbf16>, vector<8x8xbf16>, vector<8x8xf32> -> vector<8x8xf32>
    %143 = arith.addf %142, %56 : vector<8x8xf32>
    %cst_57 = arith.constant dense<0xFF800000> : vector<8xf32>
    %144 = vector.multi_reduction <maximumf>, %143, %cst_57 [1] : vector<8x8xf32> to vector<8xf32>
    %145 = vector.shape_cast %144 : vector<8xf32> to vector<8x1xf32>
    %146 = vector.broadcast %145 : vector<8x1xf32> to vector<8x8xf32>
    %147 = arith.subf %143, %146 : vector<8x8xf32>
    %148 = math.exp %147 : vector<8x8xf32>
    %cst_58 = arith.constant dense<0.000000e+00> : vector<8xf32>
    %149 = vector.multi_reduction <add>, %148, %cst_58 [1] : vector<8x8xf32> to vector<8xf32>
    %150 = vector.shape_cast %149 : vector<8xf32> to vector<8x1xf32>
    %151 = tpu.reciprocal %150 {approx = true} : vector<8x1xf32> -> vector<8x1xf32>
    %152 = vector.broadcast %151 : vector<8x1xf32> to vector<8x8xf32>
    %153 = arith.mulf %148, %152 : vector<8x8xf32>
    %154 = arith.truncf %153 : vector<8x8xf32> to vector<8x8xbf16>
    %cst_59 = arith.constant dense<0.000000e+00> : vector<8x8xf32>
    %155 = tpu.matmul %154, %141, %cst_59 {dimension_numbers = #tpu.dot_dimension_numbers<[1], [0], [0], [1], [0, 0, 1, 1], [], []>} : vector<8x8xbf16>, vector<8x8xbf16>, vector<8x8xf32> -> vector<8x8xf32>
    %156 = tpu.concatenate %95, %115, %135, %155 in 1 : vector<8x8xf32>, vector<8x8xf32>, vector<8x8xf32>, vector<8x8xf32> -> vector<8x32xf32>
    %157 = arith.truncf %156 : vector<8x32xf32> to vector<8x32xbf16>
    %c0_60 = arith.constant 0 : index
    %c0_61 = arith.constant 0 : index
    %158 = vector.load %arg13[%c0_60, %c0_61] : memref<32x32xbf16, #tpu.memory_space<vmem>>, vector<32x32xbf16>
    %cst_62 = arith.constant dense<0.000000e+00> : vector<8x32xf32>
    %159 = tpu.matmul %157, %158, %cst_62 {dimension_numbers = #tpu.dot_dimension_numbers<[1], [0], [0], [1], [0, 0, 1, 1], [], []>} : vector<8x32xbf16>, vector<32x32xbf16>, vector<8x32xf32> -> vector<8x32xf32>
    %c0_63 = arith.constant 0 : index
    %c0_64 = arith.constant 0 : index
    %160 = vector.load %arg14[%c0_63, %c0_64] : memref<1x32xf32, #tpu.memory_space<vmem>>, vector<1x32xf32>
    %161 = vector.broadcast %160 : vector<1x32xf32> to vector<8x32xf32>
    %162 = arith.addf %159, %161 : vector<8x32xf32>
    %163 = arith.addf %1, %162 : vector<8x32xf32>
    %c0_65 = arith.constant 0 : index
    %c0_66 = arith.constant 0 : index
    %c0_67 = arith.constant 0 : index
    %164 = vector.load %arg15[%c0_65, %c0_66, %c0_67] : memref<1x8x32xf32, #tpu.memory_space<vmem>>, vector<1x8x32xf32>
    %165 = vector.shape_cast %164 : vector<1x8x32xf32> to vector<8x32xf32>
    %166 = vector.shape_cast %163 : vector<8x32xf32> to vector<1x8x32xf32>
    tpu.vector_store %arg15[%c0_65, %c0_66, %c0_67], %166 {strides = array<i32>} : memref<1x8x32xf32, #tpu.memory_space<vmem>>, vector<1x8x32xf32>,
    return
  }
  func.func @transform_0(%arg0: i32, %arg1: i32) -> (i32, i32, i32) {
    %c0_i32 = arith.constant 0 : i32
    %c0_i32_0 = arith.constant 0 : i32
    return %arg0, %arg1, %c0_i32 : i32, i32, i32
  }
  func.func @transform_1(%arg0: i32, %arg1: i32) -> (i32, i32, i32) {
    %c0_i32 = arith.constant 0 : i32
    %c0_i32_0 = arith.constant 0 : i32
    %c0_i32_1 = arith.constant 0 : i32
    return %arg0, %c0_i32, %c0_i32_0 : i32, i32, i32
  }
  func.func @transform_2(%arg0: i32, %arg1: i32) -> (i32, i32, i32) {
    %c0_i32 = arith.constant 0 : i32
    %c0_i32_0 = arith.constant 0 : i32
    return %arg0, %arg1, %c0_i32 : i32, i32, i32
  }
  func.func @transform_3(%arg0: i32, %arg1: i32) -> (i32, i32) {
    %c0_i32 = arith.constant 0 : i32
    %c0_i32_0 = arith.constant 0 : i32
    %c0_i32_1 = arith.constant 0 : i32
    return %c0_i32, %c0_i32_0 : i32, i32
  }
  func.func @transform_4(%arg0: i32, %arg1: i32) -> (i32, i32) {
    %c0_i32 = arith.constant 0 : i32
    %c0_i32_0 = arith.constant 0 : i32
    %c0_i32_1 = arith.constant 0 : i32
    return %c0_i32, %c0_i32_0 : i32, i32
  }
  func.func @transform_5(%arg0: i32, %arg1: i32) -> (i32, i32) {
    %c0_i32 = arith.constant 0 : i32
    %c0_i32_0 = arith.constant 0 : i32
    %c0_i32_1 = arith.constant 0 : i32
    return %c0_i32, %c0_i32_0 : i32, i32
  }
  func.func @transform_6(%arg0: i32, %arg1: i32) -> (i32, i32) {
    %c0_i32 = arith.constant 0 : i32
    %c0_i32_0 = arith.constant 0 : i32
    %c0_i32_1 = arith.constant 0 : i32
    return %c0_i32, %c0_i32_0 : i32, i32
  }
  func.func @transform_7(%arg0: i32, %arg1: i32) -> (i32, i32) {
    %c0_i32 = arith.constant 0 : i32
    %c0_i32_0 = arith.constant 0 : i32
    %c0_i32_1 = arith.constant 0 : i32
    return %c0_i32, %c0_i32_0 : i32, i32
  }
  func.func @transform_8(%arg0: i32, %arg1: i32) -> (i32, i32) {
    %c0_i32 = arith.constant 0 : i32
    %c0_i32_0 = arith.constant 0 : i32
    %c0_i32_1 = arith.constant 0 : i32
    return %c0_i32, %c0_i32_0 : i32, i32
  }
  func.func @transform_9(%arg0: i32, %arg1: i32) -> (i32, i32) {
    %c0_i32 = arith.constant 0 : i32
    %c0_i32_0 = arith.constant 0 : i32
    %c0_i32_1 = arith.constant 0 : i32
    return %c0_i32, %c0_i32_0 : i32, i32
  }
  func.func @transform_10(%arg0: i32, %arg1: i32) -> (i32, i32) {
    %c0_i32 = arith.constant 0 : i32
    %c0_i32_0 = arith.constant 0 : i32
    %c0_i32_1 = arith.constant 0 : i32
    return %c0_i32, %c0_i32_0 : i32, i32
  }
  func.func @transform_11(%arg0: i32, %arg1: i32) -> (i32, i32) {
    %c0_i32 = arith.constant 0 : i32
    %c0_i32_0 = arith.constant 0 : i32
    %c0_i32_1 = arith.constant 0 : i32
    return %c0_i32, %c0_i32_0 : i32, i32
  }
  func.func @transform_12(%arg0: i32, %arg1: i32) -> (i32, i32) {
    %c0_i32 = arith.constant 0 : i32
    %c0_i32_0 = arith.constant 0 : i32
    %c0_i32_1 = arith.constant 0 : i32
    return %c0_i32, %c0_i32_0 : i32, i32
  }
  func.func @transform_13(%arg0: i32, %arg1: i32) -> (i32, i32, i32) {
    %c0_i32 = arith.constant 0 : i32
    %c0_i32_0 = arith.constant 0 : i32
    return %arg0, %arg1, %c0_i32 : i32, i32, i32
  }
}

module attributes {stable_mosaic.version = 11 : i64} {
  func.func @_attn_kernel(%arg0: i32, %arg1: i32, %arg2: memref<1x8x32xf32, #tpu.memory_space<vmem>>, %arg3: memref<1x8x32xf32, #tpu.memory_space<vmem>>, %arg4: memref<1x8x8xf32, #tpu.memory_space<vmem>>, %arg5: memref<1x32xf32, #tpu.memory_space<vmem>>, %arg6: memref<1x32xf32, #tpu.memory_space<vmem>>, %arg7: memref<32x32xbf16, #tpu.memory_space<vmem>>, %arg8: memref<1x32xf32, #tpu.memory_space<vmem>>, %arg9: memref<32x32xbf16, #tpu.memory_space<vmem>>, %arg10: memref<1x32xf32, #tpu.memory_space<vmem>>, %arg11: memref<32x32xbf16, #tpu.memory_space<vmem>>, %arg12: memref<1x32xf32, #tpu.memory_space<vmem>>, %arg13: memref<32x32xbf16, #tpu.memory_space<vmem>>, %arg14: memref<1x32xf32, #tpu.memory_space<vmem>>, %arg15: memref<1x8x32xf32, #tpu.memory_space<vmem>>) attributes {dimension_semantics = [#tpu.dimension_semantics<parallel>, #tpu.dimension_semantics<parallel>], iteration_bounds = array<i64: 2, 1>, scalar_prefetch = 0 : i64, scratch_operands = 0 : i64, tpu.core_type = #tpu.core_type<tc>, window_params = [{transform_indices = @transform_0, window_bounds = array<i64: 1, 8, 32>}, {transform_indices = @transform_1, window_bounds = array<i64: 1, 8, 32>}, {transform_indices = @transform_2, window_bounds = array<i64: 1, 8, 8>}, {pipeline_mode = #tpu.pipeline_mode<synchronous>, transform_indices = @transform_3, window_bounds = array<i64: 1, 32>}, {pipeline_mode = #tpu.pipeline_mode<synchronous>, transform_indices = @transform_4, window_bounds = array<i64: 1, 32>}, {pipeline_mode = #tpu.pipeline_mode<synchronous>, transform_indices = @transform_5, window_bounds = array<i64: 32, 32>}, {pipeline_mode = #tpu.pipeline_mode<synchronous>, transform_indices = @transform_6, window_bounds = array<i64: 1, 32>}, {pipeline_mode = #tpu.pipeline_mode<synchronous>, transform_indices = @transform_7, window_bounds = array<i64: 32, 32>}, {pipeline_mode = #tpu.pipeline_mode<synchronous>, transform_indices = @transform_8, window_bounds = array<i64: 1, 32>}, {pipeline_mode = #tpu.pipeline_mode<synchronous>, transform_indices = @transform_9, window_bounds = array<i64: 32, 32>}, {pipeline_mode = #tpu.pipeline_mode<synchronous>, transform_indices = @transform_10, window_bounds = array<i64: 1, 32>}, {pipeline_mode = #tpu.pipeline_mode<synchronous>, transform_indices = @transform_11, window_bounds = array<i64: 32, 32>}, {pipeline_mode = #tpu.pipeline_mode<synchronous>, transform_indices = @transform_12, window_bounds = array<i64: 1, 32>}, {transform_indices = @transform_13, window_bounds = array<i64: 1, 8, 32>}]} {
    %c0 = arith.constant 0 : index
    %c0_0 = arith.constant 0 : index
    %c0_1 = arith.constant 0 : index
    %0 = vector.load %arg2[%c0, %c0_0, %c0_1] : memref<1x8x32xf32, #tpu.memory_space<vmem>>, vector<1x8x32xf32>
    %1 = vector.shape_cast %0 : vector<1x8x32xf32> to vector<8x32xf32>
    %c0_2 = arith.constant 0 : index
    %c0_3 = arith.constant 0 : index
    %2 = vector.load %arg5[%c0_2, %c0_3] : memref<1x32xf32, #tpu.memory_space<vmem>>, vector<1x32xf32>
    %c0_4 = arith.constant 0 : index
    %c0_5 = arith.constant 0 : index
    %3 = vector.load %arg6[%c0_4, %c0_5] : memref<1x32xf32, #tpu.memory_space<vmem>>, vector<1x32xf32>
    %cst = arith.constant dense<0.000000e+00> : vector<8xf32>
    %4 = vector.multi_reduction <add>, %1, %cst [1] : vector<8x32xf32> to vector<8xf32>
    %5 = vector.shape_cast %4 : vector<8xf32> to vector<8x1xf32>
    %cst_6 = arith.constant 3.200000e+01 : f32
    %6 = vector.broadcast %cst_6 : f32 to vector<8x1xf32>
    %7 = arith.divf %5, %6 : vector<8x1xf32>
    %8 = vector.broadcast %7 : vector<8x1xf32> to vector<8x32xf32>
    %9 = arith.subf %1, %8 : vector<8x32xf32>
    %10 = arith.mulf %9, %9 : vector<8x32xf32>
    %cst_7 = arith.constant dense<0.000000e+00> : vector<8xf32>
    %11 = vector.multi_reduction <add>, %10, %cst_7 [1] : vector<8x32xf32> to vector<8xf32>
    %12 = vector.shape_cast %11 : vector<8xf32> to vector<8x1xf32>
    %cst_8 = arith.constant 3.100000e+01 : f32
    %13 = vector.broadcast %cst_8 : f32 to vector<8x1xf32>
    %14 = arith.divf %12, %13 : vector<8x1xf32>
    %15 = math.sqrt %14 : vector<8x1xf32>
    %cst_9 = arith.constant 9.99999997E-7 : f32
    %16 = vector.broadcast %cst_9 : f32 to vector<8x1xf32>
    %17 = arith.addf %15, %16 : vector<8x1xf32>
    %18 = tpu.reciprocal %17 {approx = true} : vector<8x1xf32> -> vector<8x1xf32>
    %19 = vector.broadcast %2 : vector<1x32xf32> to vector<8x32xf32>
    %20 = arith.mulf %19, %9 : vector<8x32xf32>
    %21 = vector.broadcast %18 : vector<8x1xf32> to vector<8x32xf32>
    %22 = arith.mulf %20, %21 : vector<8x32xf32>
    %23 = vector.broadcast %3 : vector<1x32xf32> to vector<8x32xf32>
    %24 = arith.addf %22, %23 : vector<8x32xf32>
    %c0_10 = arith.constant 0 : index
    %c0_11 = arith.constant 0 : index
    %c0_12 = arith.constant 0 : index
    %25 = vector.load %arg3[%c0_10, %c0_11, %c0_12] : memref<1x8x32xf32, #tpu.memory_space<vmem>>, vector<1x8x32xf32>
    %26 = vector.shape_cast %25 : vector<1x8x32xf32> to vector<8x32xf32>
    %c0_13 = arith.constant 0 : index
    %c0_14 = arith.constant 0 : index
    %27 = vector.load %arg5[%c0_13, %c0_14] : memref<1x32xf32, #tpu.memory_space<vmem>>, vector<1x32xf32>
    %c0_15 = arith.constant 0 : index
    %c0_16 = arith.constant 0 : index
    %28 = vector.load %arg6[%c0_15, %c0_16] : memref<1x32xf32, #tpu.memory_space<vmem>>, vector<1x32xf32>
    %cst_17 = arith.constant dense<0.000000e+00> : vector<8xf32>
    %29 = vector.multi_reduction <add>, %26, %cst_17 [1] : vector<8x32xf32> to vector<8xf32>
    %30 = vector.shape_cast %29 : vector<8xf32> to vector<8x1xf32>
    %cst_18 = arith.constant 3.200000e+01 : f32
    %31 = vector.broadcast %cst_18 : f32 to vector<8x1xf32>
    %32 = arith.divf %30, %31 : vector<8x1xf32>
    %33 = vector.broadcast %32 : vector<8x1xf32> to vector<8x32xf32>
    %34 = arith.subf %26, %33 : vector<8x32xf32>
    %35 = arith.mulf %34, %34 : vector<8x32xf32>
    %cst_19 = arith.constant dense<0.000000e+00> : vector<8xf32>
    %36 = vector.multi_reduction <add>, %35, %cst_19 [1] : vector<8x32xf32> to vector<8xf32>
    %37 = vector.shape_cast %36 : vector<8xf32> to vector<8x1xf32>
    %cst_20 = arith.constant 3.100000e+01 : f32
    %38 = vector.broadcast %cst_20 : f32 to vector<8x1xf32>
    %39 = arith.divf %37, %38 : vector<8x1xf32>
    %40 = math.sqrt %39 : vector<8x1xf32>
    %cst_21 = arith.constant 9.99999997E-7 : f32
    %41 = vector.broadcast %cst_21 : f32 to vector<8x1xf32>
    %42 = arith.addf %40, %41 : vector<8x1xf32>
    %43 = tpu.reciprocal %42 {approx = true} : vector<8x1xf32> -> vector<8x1xf32>
    %44 = vector.broadcast %27 : vector<1x32xf32> to vector<8x32xf32>
    %45 = arith.mulf %44, %34 : vector<8x32xf32>
    %46 = vector.broadcast %43 : vector<8x1xf32> to vector<8x32xf32>
    %47 = arith.mulf %45, %46 : vector<8x32xf32>
    %48 = vector.broadcast %28 : vector<1x32xf32> to vector<8x32xf32>
    %49 = arith.addf %47, %48 : vector<8x32xf32>
    %c0_22 = arith.constant 0 : index
    %c0_23 = arith.constant 0 : index
    %c0_24 = arith.constant 0 : index
    %50 = vector.load %arg4[%c0_22, %c0_23, %c0_24] : memref<1x8x8xf32, #tpu.memory_space<vmem>>, vector<1x8x8xf32>
    %51 = vector.shape_cast %50 : vector<1x8x8xf32> to vector<8x8xf32>
    %cst_25 = arith.constant 0.000000e+00 : f32
    %52 = vector.broadcast %cst_25 : f32 to vector<8x8xf32>
    %53 = arith.cmpf oeq, %51, %52 : vector<8x8xf32>
    %cst_26 = arith.constant -1.000000e+09 : f32
    %cst_27 = arith.constant 0.000000e+00 : f32
    %54 = vector.broadcast %cst_26 : f32 to vector<8x8xf32>
    %55 = vector.broadcast %cst_27 : f32 to vector<8x8xf32>
    %56 = arith.select %53, %54, %55 : vector<8x8xi1>, vector<8x8xf32>
    %57 = arith.truncf %24 : vector<8x32xf32> to vector<8x32xbf16>
    %58 = arith.truncf %49 : vector<8x32xf32> to vector<8x32xbf16>
    %c0_28 = arith.constant 0 : index
    %c0_29 = arith.constant 0 : index
    %59 = vector.load %arg7[%c0_28, %c0_29] : memref<32x32xbf16, #tpu.memory_space<vmem>>, vector<32x32xbf16>
    %cst_30 = arith.constant dense<0.000000e+00> : vector<8x32xf32>
    %60 = tpu.matmul %57, %59, %cst_30 {dimension_numbers = #tpu.dot_dimension_numbers<[1], [0], [0], [1], [0, 0, 1, 1], [], []>} : vector<8x32xbf16>, vector<32x32xbf16>, vector<8x32xf32> -> vector<8x32xf32>
    %c0_31 = arith.constant 0 : index
    %c0_32 = arith.constant 0 : index
    %61 = vector.load %arg8[%c0_31, %c0_32] : memref<1x32xf32, #tpu.memory_space<vmem>>, vector<1x32xf32>
    %62 = vector.broadcast %61 : vector<1x32xf32> to vector<8x32xf32>
    %63 = arith.addf %60, %62 : vector<8x32xf32>
    %cst_33 = arith.constant 0.353553385 : f32
    %64 = vector.broadcast %cst_33 : f32 to vector<8x32xf32>
    %65 = arith.mulf %63, %64 : vector<8x32xf32>
    %c0_34 = arith.constant 0 : index
    %c0_35 = arith.constant 0 : index
    %66 = vector.load %arg9[%c0_34, %c0_35] : memref<32x32xbf16, #tpu.memory_space<vmem>>, vector<32x32xbf16>
    %cst_36 = arith.constant dense<0.000000e+00> : vector<8x32xf32>
    %67 = tpu.matmul %58, %66, %cst_36 {dimension_numbers = #tpu.dot_dimension_numbers<[1], [0], [0], [1], [0, 0, 1, 1], [], []>} : vector<8x32xbf16>, vector<32x32xbf16>, vector<8x32xf32> -> vector<8x32xf32>
    %c0_37 = arith.constant 0 : index
    %c0_38 = arith.constant 0 : index
    %68 = vector.load %arg10[%c0_37, %c0_38] : memref<1x32xf32, #tpu.memory_space<vmem>>, vector<1x32xf32>
    %69 = vector.broadcast %68 : vector<1x32xf32> to vector<8x32xf32>
    %70 = arith.addf %67, %69 : vector<8x32xf32>
    %c0_39 = arith.constant 0 : index
    %c0_40 = arith.constant 0 : index
    %71 = vector.load %arg11[%c0_39, %c0_40] : memref<32x32xbf16, #tpu.memory_space<vmem>>, vector<32x32xbf16>
    %cst_41 = arith.constant dense<0.000000e+00> : vector<8x32xf32>
    %72 = tpu.matmul %58, %71, %cst_41 {dimension_numbers = #tpu.dot_dimension_numbers<[1], [0], [0], [1], [0, 0, 1, 1], [], []>} : vector<8x32xbf16>, vector<32x32xbf16>, vector<8x32xf32> -> vector<8x32xf32>
    %c0_42 = arith.constant 0 : index
    %c0_43 = arith.constant 0 : index
    %73 = vector.load %arg12[%c0_42, %c0_43] : memref<1x32xf32, #tpu.memory_space<vmem>>, vector<1x32xf32>
    %74 = vector.broadcast %73 : vector<1x32xf32> to vector<8x32xf32>
    %75 = arith.addf %72, %74 : vector<8x32xf32>
    %76 = vector.extract_strided_slice %65 {offsets = [0, 0], sizes = [8, 8], strides = [1, 1]} : vector<8x32xf32> to vector<8x8xf32>
    %77 = arith.truncf %76 : vector<8x8xf32> to vector<8x8xbf16>
    %78 = vector.extract_strided_slice %70 {offsets = [0, 0], sizes = [8, 8], strides = [1, 1]} : vector<8x32xf32> to vector<8x8xf32>
    %79 = arith.truncf %78 : vector<8x8xf32> to vector<8x8xbf16>
    %80 = vector.extract_strided_slice %75 {offsets = [0, 0], sizes = [8, 8], strides = [1, 1]} : vector<8x32xf32> to vector<8x8xf32>
    %81 = arith.truncf %80 : vector<8x8xf32> to vector<8x8xbf16>
    %cst_44 = arith.constant dense<0.000000e+00> : vector<8x8xf32>
    %82 = tpu.matmul %77, %79, %cst_44 {dimension_numbers = #tpu.dot_dimension_numbers<[1], [1], [0], [0], [0, 0, 1, 0], [], []>} : vector<8x8xbf16>, vector<8x8xbf16>, vector<8x8xf32> -> vector<8x8xf32>
    %83 = arith.addf %82, %56 : vector<8x8xf32>
    %cst_45 = arith.constant dense<0xFF800000> : vector<8xf32>
    %84 = vector.multi_reduction <maximumf>, %83, %cst_45 [1] : vector<8x8xf32> to vector<8xf32>
    %85 = vector.shape_cast %84 : vector<8xf32> to vector<8x1xf32>
    %86 = vector.broadcast %85 : vector<8x1xf32> to vector<8x8xf32>
    %87 = arith.subf %83, %86 : vector<8x8xf32>
    %88 = math.exp %87 : vector<8x8xf32>
    %cst_46 = arith.constant dense<0.000000e+00> : vector<8xf32>
    %89 = vector.multi_reduction <add>, %88, %cst_46 [1] : vector<8x8xf32> to vector<8xf32>
    %90 = vector.shape_cast %89 : vector<8xf32> to vector<8x1xf32>
    %91 = tpu.reciprocal %90 {approx = true} : vector<8x1xf32> -> vector<8x1xf32>
    %92 = vector.broadcast %91 : vector<8x1xf32> to vector<8x8xf32>
    %93 = arith.mulf %88, %92 : vector<8x8xf32>
    %94 = arith.truncf %93 : vector<8x8xf32> to vector<8x8xbf16>
    %cst_47 = arith.constant dense<0.000000e+00> : vector<8x8xf32>
    %95 = tpu.matmul %94, %81, %cst_47 {dimension_numbers = #tpu.dot_dimension_numbers<[1], [0], [0], [1], [0, 0, 1, 1], [], []>} : vector<8x8xbf16>, vector<8x8xbf16>, vector<8x8xf32> -> vector<8x8xf32>
    %96 = vector.extract_strided_slice %65 {offsets = [0, 8], sizes = [8, 8], strides = [1, 1]} : vector<8x32xf32> to vector<8x8xf32>
    %97 = arith.truncf %96 : vector<8x8xf32> to vector<8x8xbf16>
    %98 = vector.extract_strided_slice %70 {offsets = [0, 8], sizes = [8, 8], strides = [1, 1]} : vector<8x32xf32> to vector<8x8xf32>
    %99 = arith.truncf %98 : vector<8x8xf32> to vector<8x8xbf16>
    %100 = vector.extract_strided_slice %75 {offsets = [0, 8], sizes = [8, 8], strides = [1, 1]} : vector<8x32xf32> to vector<8x8xf32>
    %101 = arith.truncf %100 : vector<8x8xf32> to vector<8x8xbf16>
    %cst_48 = arith.constant dense<0.000000e+00> : vector<8x8xf32>
    %102 = tpu.matmul %97, %99, %cst_48 {dimension_numbers = #tpu.dot_dimension_numbers<[1], [1], [0], [0], [0, 0, 1, 0], [], []>} : vector<8x8xbf16>, vector<8x8xbf16>, vector<8x8xf32> -> vector<8x8xf32>
    %103 = arith.addf %102, %56 : vector<8x8xf32>
    %cst_49 = arith.constant dense<0xFF800000> : vector<8xf32>
    %104 = vector.multi_reduction <maximumf>, %103, %cst_49 [1] : vector<8x8xf32> to vector<8xf32>
    %105 = vector.shape_cast %104 : vector<8xf32> to vector<8x1xf32>
    %106 = vector.broadcast %105 : vector<8x1xf32> to vector<8x8xf32>
    %107 = arith.subf %103, %106 : vector<8x8xf32>
    %108 = math.exp %107 : vector<8x8xf32>
    %cst_50 = arith.constant dense<0.000000e+00> : vector<8xf32>
    %109 = vector.multi_reduction <add>, %108, %cst_50 [1] : vector<8x8xf32> to vector<8xf32>
    %110 = vector.shape_cast %109 : vector<8xf32> to vector<8x1xf32>
    %111 = tpu.reciprocal %110 {approx = true} : vector<8x1xf32> -> vector<8x1xf32>
    %112 = vector.broadcast %111 : vector<8x1xf32> to vector<8x8xf32>
    %113 = arith.mulf %108, %112 : vector<8x8xf32>
    %114 = arith.truncf %113 : vector<8x8xf32> to vector<8x8xbf16>
    %cst_51 = arith.constant dense<0.000000e+00> : vector<8x8xf32>
    %115 = tpu.matmul %114, %101, %cst_51 {dimension_numbers = #tpu.dot_dimension_numbers<[1], [0], [0], [1], [0, 0, 1, 1], [], []>} : vector<8x8xbf16>, vector<8x8xbf16>, vector<8x8xf32> -> vector<8x8xf32>
    %116 = vector.extract_strided_slice %65 {offsets = [0, 16], sizes = [8, 8], strides = [1, 1]} : vector<8x32xf32> to vector<8x8xf32>
    %117 = arith.truncf %116 : vector<8x8xf32> to vector<8x8xbf16>
    %118 = vector.extract_strided_slice %70 {offsets = [0, 16], sizes = [8, 8], strides = [1, 1]} : vector<8x32xf32> to vector<8x8xf32>
    %119 = arith.truncf %118 : vector<8x8xf32> to vector<8x8xbf16>
    %120 = vector.extract_strided_slice %75 {offsets = [0, 16], sizes = [8, 8], strides = [1, 1]} : vector<8x32xf32> to vector<8x8xf32>
    %121 = arith.truncf %120 : vector<8x8xf32> to vector<8x8xbf16>
    %cst_52 = arith.constant dense<0.000000e+00> : vector<8x8xf32>
    %122 = tpu.matmul %117, %119, %cst_52 {dimension_numbers = #tpu.dot_dimension_numbers<[1], [1], [0], [0], [0, 0, 1, 0], [], []>} : vector<8x8xbf16>, vector<8x8xbf16>, vector<8x8xf32> -> vector<8x8xf32>
    %123 = arith.addf %122, %56 : vector<8x8xf32>
    %cst_53 = arith.constant dense<0xFF800000> : vector<8xf32>
    %124 = vector.multi_reduction <maximumf>, %123, %cst_53 [1] : vector<8x8xf32> to vector<8xf32>
    %125 = vector.shape_cast %124 : vector<8xf32> to vector<8x1xf32>
    %126 = vector.broadcast %125 : vector<8x1xf32> to vector<8x8xf32>
    %127 = arith.subf %123, %126 : vector<8x8xf32>
    %128 = math.exp %127 : vector<8x8xf32>
    %cst_54 = arith.constant dense<0.000000e+00> : vector<8xf32>
    %129 = vector.multi_reduction <add>, %128, %cst_54 [1] : vector<8x8xf32> to vector<8xf32>
    %130 = vector.shape_cast %129 : vector<8xf32> to vector<8x1xf32>
    %131 = tpu.reciprocal %130 {approx = true} : vector<8x1xf32> -> vector<8x1xf32>
    %132 = vector.broadcast %131 : vector<8x1xf32> to vector<8x8xf32>
    %133 = arith.mulf %128, %132 : vector<8x8xf32>
    %134 = arith.truncf %133 : vector<8x8xf32> to vector<8x8xbf16>
    %cst_55 = arith.constant dense<0.000000e+00> : vector<8x8xf32>
    %135 = tpu.matmul %134, %121, %cst_55 {dimension_numbers = #tpu.dot_dimension_numbers<[1], [0], [0], [1], [0, 0, 1, 1], [], []>} : vector<8x8xbf16>, vector<8x8xbf16>, vector<8x8xf32> -> vector<8x8xf32>
    %136 = vector.extract_strided_slice %65 {offsets = [0, 24], sizes = [8, 8], strides = [1, 1]} : vector<8x32xf32> to vector<8x8xf32>
    %137 = arith.truncf %136 : vector<8x8xf32> to vector<8x8xbf16>
    %138 = vector.extract_strided_slice %70 {offsets = [0, 24], sizes = [8, 8], strides = [1, 1]} : vector<8x32xf32> to vector<8x8xf32>
    %139 = arith.truncf %138 : vector<8x8xf32> to vector<8x8xbf16>
    %140 = vector.extract_strided_slice %75 {offsets = [0, 24], sizes = [8, 8], strides = [1, 1]} : vector<8x32xf32> to vector<8x8xf32>
    %141 = arith.truncf %140 : vector<8x8xf32> to vector<8x8xbf16>
    %cst_56 = arith.constant dense<0.000000e+00> : vector<8x8xf32>
    %142 = tpu.matmul %137, %139, %cst_56 {dimension_numbers = #tpu.dot_dimension_numbers<[1], [1], [0], [0], [0, 0, 1, 0], [], []>} : vector<8x8xbf16>, vector<8x8xbf16>, vector<8x8xf32> -> vector<8x8xf32>
    %143 = arith.addf %142, %56 : vector<8x8xf32>
    %cst_57 = arith.constant dense<0xFF800000> : vector<8xf32>
    %144 = vector.multi_reduction <maximumf>, %143, %cst_57 [1] : vector<8x8xf32> to vector<8xf32>
    %145 = vector.shape_cast %144 : vector<8xf32> to vector<8x1xf32>
    %146 = vector.broadcast %145 : vector<8x1xf32> to vector<8x8xf32>
    %147 = arith.subf %143, %146 : vector<8x8xf32>
    %148 = math.exp %147 : vector<8x8xf32>
    %cst_58 = arith.constant dense<0.000000e+00> : vector<8xf32>
    %149 = vector.multi_reduction <add>, %148, %cst_58 [1] : vector<8x8xf32> to vector<8xf32>
    %150 = vector.shape_cast %149 : vector<8xf32> to vector<8x1xf32>
    %151 = tpu.reciprocal %150 {approx = true} : vector<8x1xf32> -> vector<8x1xf32>
    %152 = vector.broadcast %151 : vector<8x1xf32> to vector<8x8xf32>
    %153 = arith.mulf %148, %152 : vector<8x8xf32>
    %154 = arith.truncf %153 : vector<8x8xf32> to vector<8x8xbf16>
    %cst_59 = arith.constant dense<0.000000e+00> : vector<8x8xf32>
    %155 = tpu.matmul %154, %141, %cst_59 {dimension_numbers = #tpu.dot_dimension_numbers<[1], [0], [0], [1], [0, 0, 1, 1], [], []>} : vector<8x8xbf16>, vector<8x8xbf16>, vector<8x8xf32> -> vector<8x8xf32>
    %156 = tpu.concatenate %95, %115, %135, %155 in 1 : vector<8x8xf32>, vector<8x8xf32>, vector<8x8xf32>, vector<8x8xf32> -> vector<8x32xf32>
    %157 = arith.truncf %156 : vector<8x32xf32> to vector<8x32xbf16>
    %c0_60 = arith.constant 0 : index
    %c0_61 = arith.constant 0 : index
    %158 = vector.load %arg13[%c0_60, %c0_61] : memref<32x32xbf16, #tpu.memory_space<vmem>>, vector<32x32xbf16>
    %cst_62 = arith.constant dense<0.000000e+00> : vector<8x32xf32>
    %159 = tpu.matmul %157, %158, %cst_62 {dimension_numbers = #tpu.dot_dimension_numbers<[1], [0], [0], [1], [0, 0, 1, 1], [], []>} : vector<8x32xbf16>, vector<32x32xbf16>, vector<8x32xf32> -> vector<8x32xf32>
    %c0_63 = arith.constant 0 : index
    %c0_64 = arith.constant 0 : index
    %160 = vector.load %arg14[%c0_63, %c0_64] : memref<1x32xf32, #tpu.memory_space<vmem>>, vector<1x32xf32>
    %161 = vector.broadcast %160 : vector<1x32xf32> to vector<8x32xf32>
    %162 = arith.addf %159, %161 : vector<8x32xf32>
    %163 = arith.addf %1, %162 : vector<8x32xf32>
    %c0_65 = arith.constant 0 : index
    %c0_66 = arith.constant 0 : index
    %c0_67 = arith.constant 0 : index
    %164 = vector.load %arg15[%c0_65, %c0_66, %c0_67] : memref<1x8x32xf32, #tpu.memory_space<vmem>>, vector<1x8x32xf32>
    %165 = vector.shape_cast %164 : vector<1x8x32xf32> to vector<8x32xf32>
    %166 = vector.shape_cast %163 : vector<8x32xf32> to vector<1x8x32xf32>
    tpu.vector_store %arg15[%c0_65, %c0_66, %c0_67], %166 {strides = array<i32>} : memref<1x8x32xf32, #tpu.memory_space<vmem>>, vector<1x8x32xf32>,
    return
  }
  func.func @transform_0(%arg0: i32, %arg1: i32) -> (i32, i32, i32) {
    %c0_i32 = arith.constant 0 : i32
    %c0_i32_0 = arith.constant 0 : i32
    return %arg0, %arg1, %c0_i32 : i32, i32, i32
  }
  func.func @transform_1(%arg0: i32, %arg1: i32) -> (i32, i32, i32) {
    %c0_i32 = arith.constant 0 : i32
    %c0_i32_0 = arith.constant 0 : i32
    %c0_i32_1 = arith.constant 0 : i32
    return %arg0, %c0_i32, %c0_i32_0 : i32, i32, i32
  }
  func.func @transform_2(%arg0: i32, %arg1: i32) -> (i32, i32, i32) {
    %c0_i32 = arith.constant 0 : i32
    %c0_i32_0 = arith.constant 0 : i32
    return %arg0, %arg1, %c0_i32 : i32, i32, i32
  }
  func.func @transform_3(%arg0: i32, %arg1: i32) -> (i32, i32) {
    %c0_i32 = arith.constant 0 : i32
    %c0_i32_0 = arith.constant 0 : i32
    %c0_i32_1 = arith.constant 0 : i32
    return %c0_i32, %c0_i32_0 : i32, i32
  }
  func.func @transform_4(%arg0: i32, %arg1: i32) -> (i32, i32) {
    %c0_i32 = arith.constant 0 : i32
    %c0_i32_0 = arith.constant 0 : i32
    %c0_i32_1 = arith.constant 0 : i32
    return %c0_i32, %c0_i32_0 : i32, i32
  }
  func.func @transform_5(%arg0: i32, %arg1: i32) -> (i32, i32) {
    %c0_i32 = arith.constant 0 : i32
    %c0_i32_0 = arith.constant 0 : i32
    %c0_i32_1 = arith.constant 0 : i32
    return %c0_i32, %c0_i32_0 : i32, i32
  }
  func.func @transform_6(%arg0: i32, %arg1: i32) -> (i32, i32) {
    %c0_i32 = arith.constant 0 : i32
    %c0_i32_0 = arith.constant 0 : i32
    %c0_i32_1 = arith.constant 0 : i32
    return %c0_i32, %c0_i32_0 : i32, i32
  }
  func.func @transform_7(%arg0: i32, %arg1: i32) -> (i32, i32) {
    %c0_i32 = arith.constant 0 : i32
    %c0_i32_0 = arith.constant 0 : i32
    %c0_i32_1 = arith.constant 0 : i32
    return %c0_i32, %c0_i32_0 : i32, i32
  }
  func.func @transform_8(%arg0: i32, %arg1: i32) -> (i32, i32) {
    %c0_i32 = arith.constant 0 : i32
    %c0_i32_0 = arith.constant 0 : i32
    %c0_i32_1 = arith.constant 0 : i32
    return %c0_i32, %c0_i32_0 : i32, i32
  }
  func.func @transform_9(%arg0: i32, %arg1: i32) -> (i32, i32) {
    %c0_i32 = arith.constant 0 : i32
    %c0_i32_0 = arith.constant 0 : i32
    %c0_i32_1 = arith.constant 0 : i32
    return %c0_i32, %c0_i32_0 : i32, i32
  }
  func.func @transform_10(%arg0: i32, %arg1: i32) -> (i32, i32) {
    %c0_i32 = arith.constant 0 : i32
    %c0_i32_0 = arith.constant 0 : i32
    %c0_i32_1 = arith.constant 0 : i32
    return %c0_i32, %c0_i32_0 : i32, i32
  }
  func.func @transform_11(%arg0: i32, %arg1: i32) -> (i32, i32) {
    %c0_i32 = arith.constant 0 : i32
    %c0_i32_0 = arith.constant 0 : i32
    %c0_i32_1 = arith.constant 0 : i32
    return %c0_i32, %c0_i32_0 : i32, i32
  }
  func.func @transform_12(%arg0: i32, %arg1: i32) -> (i32, i32) {
    %c0_i32 = arith.constant 0 : i32
    %c0_i32_0 = arith.constant 0 : i32
    %c0_i32_1 = arith.constant 0 : i32
    return %c0_i32, %c0_i32_0 : i32, i32
  }
  func.func @transform_13(%arg0: i32, %arg1: i32) -> (i32, i32, i32) {
    %c0_i32 = arith.constant 0 : i32
    %c0_i32_0 = arith.constant 0 : i32
    return %arg0, %arg1, %c0_i32 : i32, i32, i32
  }
}

module attributes {stable_mosaic.version = 11 : i64} {
  func.func @_ffn_kernel(%arg0: i32, %arg1: memref<16x32xf32, #tpu.memory_space<vmem>>, %arg2: memref<1x32xf32, #tpu.memory_space<vmem>>, %arg3: memref<1x32xf32, #tpu.memory_space<vmem>>, %arg4: memref<32x64xbf16, #tpu.memory_space<vmem>>, %arg5: memref<1x64xf32, #tpu.memory_space<vmem>>, %arg6: memref<64x32xbf16, #tpu.memory_space<vmem>>, %arg7: memref<1x32xf32, #tpu.memory_space<vmem>>, %arg8: memref<1x32xf32, #tpu.memory_space<vmem>>, %arg9: memref<1x32xf32, #tpu.memory_space<vmem>>, %arg10: memref<16x32xf32, #tpu.memory_space<vmem>>) attributes {dimension_semantics = [#tpu.dimension_semantics<parallel>], iteration_bounds = array<i64: 1>, scalar_prefetch = 0 : i64, scratch_operands = 0 : i64, tpu.core_type = #tpu.core_type<tc>, window_params = [{transform_indices = @transform_0, window_bounds = array<i64: 16, 32>}, {pipeline_mode = #tpu.pipeline_mode<synchronous>, transform_indices = @transform_1, window_bounds = array<i64: 1, 32>}, {pipeline_mode = #tpu.pipeline_mode<synchronous>, transform_indices = @transform_2, window_bounds = array<i64: 1, 32>}, {pipeline_mode = #tpu.pipeline_mode<synchronous>, transform_indices = @transform_3, window_bounds = array<i64: 32, 64>}, {pipeline_mode = #tpu.pipeline_mode<synchronous>, transform_indices = @transform_4, window_bounds = array<i64: 1, 64>}, {pipeline_mode = #tpu.pipeline_mode<synchronous>, transform_indices = @transform_5, window_bounds = array<i64: 64, 32>}, {pipeline_mode = #tpu.pipeline_mode<synchronous>, transform_indices = @transform_6, window_bounds = array<i64: 1, 32>}, {pipeline_mode = #tpu.pipeline_mode<synchronous>, transform_indices = @transform_7, window_bounds = array<i64: 1, 32>}, {pipeline_mode = #tpu.pipeline_mode<synchronous>, transform_indices = @transform_8, window_bounds = array<i64: 1, 32>}, {transform_indices = @transform_9, window_bounds = array<i64: 16, 32>}]} {
    %c0 = arith.constant 0 : index
    %c0_0 = arith.constant 0 : index
    %0 = vector.load %arg1[%c0, %c0_0] : memref<16x32xf32, #tpu.memory_space<vmem>>, vector<16x32xf32>
    %c0_1 = arith.constant 0 : index
    %c0_2 = arith.constant 0 : index
    %1 = vector.load %arg2[%c0_1, %c0_2] : memref<1x32xf32, #tpu.memory_space<vmem>>, vector<1x32xf32>
    %c0_3 = arith.constant 0 : index
    %c0_4 = arith.constant 0 : index
    %2 = vector.load %arg3[%c0_3, %c0_4] : memref<1x32xf32, #tpu.memory_space<vmem>>, vector<1x32xf32>
    %cst = arith.constant dense<0.000000e+00> : vector<16xf32>
    %3 = vector.multi_reduction <add>, %0, %cst [1] : vector<16x32xf32> to vector<16xf32>
    %4 = vector.shape_cast %3 : vector<16xf32> to vector<16x1xf32>
    %cst_5 = arith.constant 3.200000e+01 : f32
    %5 = vector.broadcast %cst_5 : f32 to vector<16x1xf32>
    %6 = arith.divf %4, %5 : vector<16x1xf32>
    %7 = vector.broadcast %6 : vector<16x1xf32> to vector<16x32xf32>
    %8 = arith.subf %0, %7 : vector<16x32xf32>
    %9 = arith.mulf %8, %8 : vector<16x32xf32>
    %cst_6 = arith.constant dense<0.000000e+00> : vector<16xf32>
    %10 = vector.multi_reduction <add>, %9, %cst_6 [1] : vector<16x32xf32> to vector<16xf32>
    %11 = vector.shape_cast %10 : vector<16xf32> to vector<16x1xf32>
    %cst_7 = arith.constant 3.100000e+01 : f32
    %12 = vector.broadcast %cst_7 : f32 to vector<16x1xf32>
    %13 = arith.divf %11, %12 : vector<16x1xf32>
    %14 = math.sqrt %13 : vector<16x1xf32>
    %cst_8 = arith.constant 9.99999997E-7 : f32
    %15 = vector.broadcast %cst_8 : f32 to vector<16x1xf32>
    %16 = arith.addf %14, %15 : vector<16x1xf32>
    %17 = tpu.reciprocal %16 {approx = true} : vector<16x1xf32> -> vector<16x1xf32>
    %18 = vector.broadcast %1 : vector<1x32xf32> to vector<16x32xf32>
    %19 = arith.mulf %18, %8 : vector<16x32xf32>
    %20 = vector.broadcast %17 : vector<16x1xf32> to vector<16x32xf32>
    %21 = arith.mulf %19, %20 : vector<16x32xf32>
    %22 = vector.broadcast %2 : vector<1x32xf32> to vector<16x32xf32>
    %23 = arith.addf %21, %22 : vector<16x32xf32>
    %24 = arith.truncf %23 : vector<16x32xf32> to vector<16x32xbf16>
    %c0_9 = arith.constant 0 : index
    %c0_10 = arith.constant 0 : index
    %25 = vector.load %arg4[%c0_9, %c0_10] : memref<32x64xbf16, #tpu.memory_space<vmem>>, vector<32x64xbf16>
    %cst_11 = arith.constant dense<0.000000e+00> : vector<16x64xf32>
    %26 = tpu.matmul %24, %25, %cst_11 {dimension_numbers = #tpu.dot_dimension_numbers<[1], [0], [0], [1], [0, 0, 1, 1], [], []>} : vector<16x32xbf16>, vector<32x64xbf16>, vector<16x64xf32> -> vector<16x64xf32>
    %c0_12 = arith.constant 0 : index
    %c0_13 = arith.constant 0 : index
    %27 = vector.load %arg5[%c0_12, %c0_13] : memref<1x64xf32, #tpu.memory_space<vmem>>, vector<1x64xf32>
    %28 = vector.broadcast %27 : vector<1x64xf32> to vector<16x64xf32>
    %29 = arith.addf %26, %28 : vector<16x64xf32>
    %cst_14 = arith.constant 0.000000e+00 : f32
    %30 = vector.broadcast %cst_14 : f32 to vector<16x64xf32>
    %31 = arith.maximumf %29, %30 : vector<16x64xf32>
    %32 = arith.truncf %31 : vector<16x64xf32> to vector<16x64xbf16>
    %c0_15 = arith.constant 0 : index
    %c0_16 = arith.constant 0 : index
    %33 = vector.load %arg6[%c0_15, %c0_16] : memref<64x32xbf16, #tpu.memory_space<vmem>>, vector<64x32xbf16>
    %cst_17 = arith.constant dense<0.000000e+00> : vector<16x32xf32>
    %34 = tpu.matmul %32, %33, %cst_17 {dimension_numbers = #tpu.dot_dimension_numbers<[1], [0], [0], [1], [0, 0, 1, 1], [], []>} : vector<16x64xbf16>, vector<64x32xbf16>, vector<16x32xf32> -> vector<16x32xf32>
    %35 = arith.addf %0, %34 : vector<16x32xf32>
    %c0_18 = arith.constant 0 : index
    %c0_19 = arith.constant 0 : index
    %36 = vector.load %arg7[%c0_18, %c0_19] : memref<1x32xf32, #tpu.memory_space<vmem>>, vector<1x32xf32>
    %37 = vector.broadcast %36 : vector<1x32xf32> to vector<16x32xf32>
    %38 = arith.addf %35, %37 : vector<16x32xf32>
    %c0_20 = arith.constant 0 : index
    %c0_21 = arith.constant 0 : index
    %39 = vector.load %arg8[%c0_20, %c0_21] : memref<1x32xf32, #tpu.memory_space<vmem>>, vector<1x32xf32>
    %c0_22 = arith.constant 0 : index
    %c0_23 = arith.constant 0 : index
    %40 = vector.load %arg9[%c0_22, %c0_23] : memref<1x32xf32, #tpu.memory_space<vmem>>, vector<1x32xf32>
    %cst_24 = arith.constant dense<0.000000e+00> : vector<16xf32>
    %41 = vector.multi_reduction <add>, %38, %cst_24 [1] : vector<16x32xf32> to vector<16xf32>
    %42 = vector.shape_cast %41 : vector<16xf32> to vector<16x1xf32>
    %cst_25 = arith.constant 3.200000e+01 : f32
    %43 = vector.broadcast %cst_25 : f32 to vector<16x1xf32>
    %44 = arith.divf %42, %43 : vector<16x1xf32>
    %45 = vector.broadcast %44 : vector<16x1xf32> to vector<16x32xf32>
    %46 = arith.subf %38, %45 : vector<16x32xf32>
    %47 = arith.mulf %46, %46 : vector<16x32xf32>
    %cst_26 = arith.constant dense<0.000000e+00> : vector<16xf32>
    %48 = vector.multi_reduction <add>, %47, %cst_26 [1] : vector<16x32xf32> to vector<16xf32>
    %49 = vector.shape_cast %48 : vector<16xf32> to vector<16x1xf32>
    %cst_27 = arith.constant 3.100000e+01 : f32
    %50 = vector.broadcast %cst_27 : f32 to vector<16x1xf32>
    %51 = arith.divf %49, %50 : vector<16x1xf32>
    %52 = math.sqrt %51 : vector<16x1xf32>
    %cst_28 = arith.constant 9.99999997E-7 : f32
    %53 = vector.broadcast %cst_28 : f32 to vector<16x1xf32>
    %54 = arith.addf %52, %53 : vector<16x1xf32>
    %55 = tpu.reciprocal %54 {approx = true} : vector<16x1xf32> -> vector<16x1xf32>
    %56 = vector.broadcast %39 : vector<1x32xf32> to vector<16x32xf32>
    %57 = arith.mulf %56, %46 : vector<16x32xf32>
    %58 = vector.broadcast %55 : vector<16x1xf32> to vector<16x32xf32>
    %59 = arith.mulf %57, %58 : vector<16x32xf32>
    %60 = vector.broadcast %40 : vector<1x32xf32> to vector<16x32xf32>
    %61 = arith.addf %59, %60 : vector<16x32xf32>
    %c0_29 = arith.constant 0 : index
    %c0_30 = arith.constant 0 : index
    %62 = vector.load %arg10[%c0_29, %c0_30] : memref<16x32xf32, #tpu.memory_space<vmem>>, vector<16x32xf32>
    tpu.vector_store %arg10[%c0_29, %c0_30], %61 {strides = array<i32>} : memref<16x32xf32, #tpu.memory_space<vmem>>, vector<16x32xf32>,
    return
  }
  func.func @transform_0(%arg0: i32) -> (i32, i32) {
    %c0_i32 = arith.constant 0 : i32
    %c0_i32_0 = arith.constant 0 : i32
    return %arg0, %c0_i32 : i32, i32
  }
  func.func @transform_1(%arg0: i32) -> (i32, i32) {
    %c0_i32 = arith.constant 0 : i32
    %c0_i32_0 = arith.constant 0 : i32
    %c0_i32_1 = arith.constant 0 : i32
    return %c0_i32, %c0_i32_0 : i32, i32
  }
  func.func @transform_2(%arg0: i32) -> (i32, i32) {
    %c0_i32 = arith.constant 0 : i32
    %c0_i32_0 = arith.constant 0 : i32
    %c0_i32_1 = arith.constant 0 : i32
    return %c0_i32, %c0_i32_0 : i32, i32
  }
  func.func @transform_3(%arg0: i32) -> (i32, i32) {
    %c0_i32 = arith.constant 0 : i32
    %c0_i32_0 = arith.constant 0 : i32
    %c0_i32_1 = arith.constant 0 : i32
    return %c0_i32, %c0_i32_0 : i32, i32
  }
  func.func @transform_4(%arg0: i32) -> (i32, i32) {
    %c0_i32 = arith.constant 0 : i32
    %c0_i32_0 = arith.constant 0 : i32
    %c0_i32_1 = arith.constant 0 : i32
    return %c0_i32, %c0_i32_0 : i32, i32
  }
  func.func @transform_5(%arg0: i32) -> (i32, i32) {
    %c0_i32 = arith.constant 0 : i32
    %c0_i32_0 = arith.constant 0 : i32
    %c0_i32_1 = arith.constant 0 : i32
    return %c0_i32, %c0_i32_0 : i32, i32
  }
  func.func @transform_6(%arg0: i32) -> (i32, i32) {
    %c0_i32 = arith.constant 0 : i32
    %c0_i32_0 = arith.constant 0 : i32
    %c0_i32_1 = arith.constant 0 : i32
    return %c0_i32, %c0_i32_0 : i32, i32
  }
  func.func @transform_7(%arg0: i32) -> (i32, i32) {
    %c0_i32 = arith.constant 0 : i32
    %c0_i32_0 = arith.constant 0 : i32
    %c0_i32_1 = arith.constant 0 : i32
    return %c0_i32, %c0_i32_0 : i32, i32
  }
  func.func @transform_8(%arg0: i32) -> (i32, i32) {
    %c0_i32 = arith.constant 0 : i32
    %c0_i32_0 = arith.constant 0 : i32
    %c0_i32_1 = arith.constant 0 : i32
    return %c0_i32, %c0_i32_0 : i32, i32
  }
  func.func @transform_9(%arg0: i32) -> (i32, i32) {
    %c0_i32 = arith.constant 0 : i32
    %c0_i32_0 = arith.constant 0 : i32
    return %arg0, %c0_i32 : i32, i32
  }
}

</mosaic_0001>

<bundles_post_ra>
// kernel: decoder_forward.8
= control target key start
LH: loop header
LB: loop body
LE: loop exit
PB: predicated region body
PF: predicated region fallthrough
CT: control target
= control target key end

     0   :  { %vm31_vm0 = vcmask 261120   ;;  %v261_v4 = vmov 32.0   ;;  %v262_v24 = vmov 31.0   ;;  %vm179_vm7 = vcmask 523264   ;;  %s362_s0 = inlined_call_operand.vmem [shape: f32[16,32], index: 0, kind: input, shape index: {}]   ;;  %s363_s1 = inlined_call_operand.vmem [shape: f32[1,32], index: 1, kind: input, shape index: {}]   ;;  %s364_s2 = inlined_call_operand.vmem [shape: f32[1,32], index: 2, kind: input, shape index: {}]   ;;  %s365_s4 = inlined_call_operand.vmem [shape: f32[1,64], index: 4, kind: input, shape index: {}]   ;;  %s366_s3 = inlined_call_operand.vmem [shape: bf16[32,64], index: 3, kind: input, shape index: {}]   ;;  %s367_s6 = inlined_call_operand.vmem [shape: f32[1,32], index: 6, kind: input, shape index: {}]   ;;  %s368_s5 = inlined_call_operand.vmem [shape: bf16[64,32], index: 5, kind: input, shape index: {}]   ;;  %s369_s7 = inlined_call_operand.vmem [shape: f32[16,32], index: 7, kind: output, shape index: {}]  }
   0x1   :  { %v306_v0 = vld [vmem:[%s362_s0] sm:$0xff]  ;;  %v313_v2 = vld [vmem:[%s362_s0 + $0x8] sm:$0xff]  ;;  %249 = vrcp.f32 %v261_v4 }
   0x2   :  { %v32_v1 = vsel %vm31_vm0, %v306_v0, 0.0  ;;  %v35_v3 = vsel %vm31_vm0, %v313_v2, 0.0  ;;  %v245_v12 = vld [vmem:[%s363_s1] ss:$0 sm:$0xff]  ;;  %251 = vrcp.f32 %v262_v24  ;;  %v238_v28 = vld [vmem:[%s366_s3 + $0x8] sm:$0xff] }
   0x3   :  { %33 = vadd.xlane.f32.xlu0 %v32_v1  ;;  %136 = vmatpush.bf16.msra.mxu0 %v238_v28  ;;  %v237_v30 = vld [vmem:[%s366_s3] sm:$0xff] }
   0x4   :  { %v246_v61 = vld [vmem:[%s364_s2] ss:$0 sm:$0xff] }
   0x7   :  { %v250_v5 = vpop.eup %249  ;;  %137 = vmatpush.bf16.msra.mxu0 %v237_v30 }
   0x8   :  { %v39_v6 = vmul.f32 32.0, %v250_v5  ;;  %vm43_vm1 = vweird.f32 %v250_v5  ;;  %v252_v25 = vpop.eup %251 }
   0x9   :  { %v58_v26 = vmul.f32 31.0, %v252_v25  ;;  %vm62_vm2 = vweird.f32 %v252_v25 }
   0xa   :  { %v40_v7 = vsub.f32 1.0, %v39_v6  ;;  %v241_v6 = vld [vmem:[%s368_s5 + $0x10] sm:$0xff] }
   0xb   :  { %36 = vadd.xlane.f32.xlu0 %v35_v3  ;;  %v59_v27 = vsub.f32 1.0, %v58_v26 }
   0xc   :  { %v41_v8 = vmul.f32 %v250_v5, %v40_v7  ;;  %v240_v7 = vld [vmem:[%s368_s5 + $0x8] sm:$0xff] }
   0xd   :  { %v60_v29 = vmul.f32 %v252_v25, %v59_v27 }
   0xe   :  { %v42_v9 = vadd.f32 %v250_v5, %v41_v8  ;;  %v239_v8 = vld [vmem:[%s368_s5] sm:$0xff] }
   0xf   :  { %v61_v31 = vadd.f32 %v252_v25, %v60_v29 }
  0x10   :  { %v44_v10 = vsel %vm43_vm1, %v250_v5, %v42_v9  ;;  %v242_v5 = vld [vmem:[%s368_s5 + $0x18] sm:$0xff] }
  0x11   :  { %v63_v32 = vsel %vm62_vm2, %v252_v25, %v61_v31  ;;  %187 = vmatpush.bf16.msra.mxu1 %v242_v5 }
  0x15   :  { %188 = vmatpush.bf16.msra.mxu1 %v241_v6 }
  0x19   :  { %189 = vmatpush.bf16.msra.mxu1 %v240_v7 }
  0x1d   :  { %190 = vmatpush.bf16.msra.mxu1 %v239_v8 }
  0x76   :  { %v34_v11 = vpop.xlane.xlu0 %33 }
  0x77   :  { %v45_v13 = vmul.f32 %v44_v10, %v34_v11 }
  0x79   :  { %v47_v14 = vsub.f32 %v306_v0, %v45_v13 }
  0x7b   :  { %v97_v15 = vmul.f32 %v245_v12, %v47_v14  ;;  %v49_v16 = vmul.f32 %v47_v14, %v47_v14 }
  0x7d   :  { %v51_v17 = vsel %vm31_vm0, %v49_v16, 0.0 }
  0x7e   :  { %52 = vadd.xlane.f32.xlu1 %v51_v17  ;;  %v37_v18 = vpop.xlane.xlu0 %36  ;;  %v248_v17 = vld [vmem:[%s367_s6] ss:$0 sm:$0xff] }
  0x7f   :  { %v46_v19 = vmul.f32 %v44_v10, %v37_v18  ;;  %v247_v10 = vld [vmem:[%s365_s4] ss:$0 sm:$0xff] }
  0x81   :  { %v48_v20 = vsub.f32 %v313_v2, %v46_v19 }
  0x83   :  { %v98_v21 = vmul.f32 %v245_v12, %v48_v20  ;;  %v50_v22 = vmul.f32 %v48_v20, %v48_v20 }
  0x85   :  { %v54_v23 = vsel %vm31_vm0, %v50_v22, 0.0 }
  0x86   :  { %55 = vadd.xlane.f32.xlu1 %v54_v23 }
  0xf1   :  { %v53_v33 = vpop.xlane.xlu1 %52 }
  0xf2   :  { %v64_v34 = vmul.f32 %v63_v32, %v53_v33 }
  0xf4   :  { %253 = vrsqrt.f32 %v64_v34  ;;  %vm73_vm3 = vcmp.eq.f32.partialorder %v64_v34, inf  ;;  %v76_v47 = vand.u32 2147483648, %v64_v34  ;;  %vm75_vm4 = vcmp.eq.f32.partialorder %v64_v34, 0.0 }
  0xf9   :  { %v56_v35 = vpop.xlane.xlu1 %55 }
  0xfa   :  { %v254_v36 = vpop.eup %253  ;;  %v65_v37 = vmul.f32 %v63_v32, %v56_v35 }
  0xfb   :  { %v67_v38 = vmul.f32 %v254_v36, %v64_v34 }
  0xfc   :  { %255 = vrsqrt.f32 %v65_v37  ;;  %vm85_vm5 = vcmp.eq.f32.partialorder %v65_v37, inf  ;;  %v88_v55 = vand.u32 2147483648, %v65_v37  ;;  %vm87_vm6 = vcmp.eq.f32.partialorder %v65_v37, 0.0 }
  0xfd   :  { %v68_v39 = vmul.f32 %v254_v36, %v67_v38 }
  0xff   :  { %v69_v40 = vmul.f32 0.5, %v68_v39 }
 0x101   :  { %v70_v41 = vsub.f32 1.5, %v69_v40 }
 0x102   :  { %v256_v42 = vpop.eup %255 }
 0x103   :  { %v79_v43 = vmul.f32 %v256_v42, %v65_v37  ;;  %v71_v44 = vmul.f32 %v254_v36, %v70_v41 }
 0x105   :  { %v80_v45 = vmul.f32 %v256_v42, %v79_v43  ;;  %v72_v46 = vmul.f32 %v71_v44, %v64_v34 }
 0x107   :  { %v74_v48 = vsel %vm73_vm3, %v64_v34, %v72_v46  ;;  %v81_v49 = vmul.f32 0.5, %v80_v45 }
 0x108   :  { %v77_v50 = vsel %vm75_vm4, %v76_v47, %v74_v48 }
 0x109   :  { %v82_v51 = vsub.f32 1.5, %v81_v49  ;;  %v90_v53 = vadd.f32 1e-06, %v77_v50 }
 0x10b   :  { %v83_v52 = vmul.f32 %v256_v42, %v82_v51  ;;  %257 = vrcp.f32 %v90_v53 }
 0x10d   :  { %v84_v54 = vmul.f32 %v83_v52, %v65_v37 }
 0x10f   :  { %v86_v56 = vsel %vm85_vm5, %v65_v37, %v84_v54 }
 0x110   :  { %v89_v57 = vsel %vm87_vm6, %v88_v55, %v86_v56 }
 0x111   :  { %v91_v58 = vadd.f32 1e-06, %v89_v57  ;;  %v258_v59 = vpop.eup %257 }
 0x112   :  { %v99_v60 = vmul.f32 %v258_v59, %v97_v15 }
 0x113   :  { %259 = vrcp.f32 %v91_v58 }
 0x114   :  { %v104_v1 = vadd.f32 %v246_v61, %v99_v60 }
 0x119   :  { %v260_v62 = vpop.eup %259 }
 0x11a   :  { %v100_v63 = vmul.f32 %v260_v62, %v98_v21 }
 0x11c   :  { %v105_v3 = vadd.f32 %v246_v61, %v100_v63 }
 0x11e   :  { %v106_v4 = vpack.c.bf16 %v105_v3, %v104_v1 }
 0x120   :  { %219 = vmatmul.msk.bf16.vlgmr.msra.gmra.mxu0 %vm31_vm0, %v106_v4 }
 0x19d   :  { %v139_v9 = vpop.f32.mrf.mxu0 }
 0x19e   :  { %v140_v11 = vadd.f32 %v247_v10, %v139_v9 }
 0x1a0   :  { %v144_v14 = vmax.f32 %v140_v11, 0.0 }
 0x1a5   :  { %v141_v12 = vpop.f32.mrf.mxu0 }
 0x1a6   :  { %v142_v13 = vadd.f32 %v247_v10, %v141_v12 }
 0x1a8   :  { %v145_v15 = vmax.f32 %v142_v13, 0.0 }
 0x1aa   :  { %v146_v16 = vpack.c.bf16 %v145_v15, %v144_v14 }
 0x1ac   :  { %236 = vmatmul.msk.bf16.vlgmr.msra.gmra.mxu1 %vm179_vm7, %v146_v16 }
 0x229   :  { %v192_v18 = vpop.f32.mrf.mxu1 }
 0x22a   :  { %v197_v19 = vadd.f32 %v192_v18, %v306_v0 }
 0x22c   :  { %v203_v20 = vadd.f32 %v248_v17, %v197_v19 }
 0x22e   :  { %205 = vst.msk [vmem:[%s369_s7] sm:$0xff] %vm31_vm0, %v203_v20 }
 0x231   :  { %v194_v21 = vpop.f32.mrf.mxu1 }
 0x232   :  { %v198_v22 = vadd.f32 %v194_v21, %v313_v2 }
 0x234   :  { %v204_v23 = vadd.f32 %v248_v17, %v198_v22 }
 0x236   :  { %206 = vst.msk [vmem:[%s369_s7 + $0x8] sm:$0xff] %vm31_vm0, %v204_v23 }

// kernel: decoder_forward.7
= control target key start
LH: loop header
LB: loop body
LE: loop exit
PB: predicated region body
PF: predicated region fallthrough
CT: control target
= control target key end

     0   :  { %s2373_s0 = inlined_call_operand.vmem [shape: f32[2,8,32], index: 0, kind: input, shape index: {}]   ;;  %s2374_s1 = inlined_call_operand.hbm [shape: f32[2,8,32], index: 1, kind: input, shape index: {}]   ;;  %s2375_s2 = inlined_call_operand.hbm [shape: f32[2,8,8], index: 2, kind: input, shape index: {}]   ;;  %s2376_s3 = inlined_call_operand.vmem [shape: f32[1,32], index: 3, kind: input, shape index: {}]   ;;  %s2377_s4 = inlined_call_operand.hbm [shape: f32[1,32], index: 4, kind: input, shape index: {}]   ;;  %s2378_s5 = inlined_call_operand.hbm [shape: bf16[32,32], index: 5, kind: input, shape index: {}]   ;;  %s2379_s6 = inlined_call_operand.hbm [shape: f32[1,32], index: 6, kind: input, shape index: {}]   ;;  %s2380_s7 = inlined_call_operand.hbm [shape: bf16[32,32], index: 7, kind: input, shape index: {}]   ;;  %s2381_s8 = inlined_call_operand.hbm [shape: f32[1,32], index: 8, kind: input, shape index: {}]   ;;  %s2382_s9 = inlined_call_operand.hbm [shape: bf16[32,32], index: 9, kind: input, shape index: {}]   ;;  %s2383_s10 = inlined_call_operand.hbm [shape: f32[1,32], index: 10, kind: input, shape index: {}]   ;;  %s2384_s11 = inlined_call_operand.hbm [shape: bf16[32,32], index: 11, kind: input, shape index: {}]   ;;  %s2385_s12 = inlined_call_operand.hbm [shape: f32[1,32], index: 12, kind: input, shape index: {}]   ;;  %s2386_s13 = inlined_call_operand.vmem [shape: f32[2,8,32], index: 13, kind: output, shape index: {}]  }
   0x1   :  { %2390 = sst [smem:[#allocation28_spill]] %s2373_s0 }
   0x2   :  { %2391 = sst [smem:[#allocation29_spill]] %s2376_s3 }
   0x3   :  { %2392 = sst [smem:[#allocation30_spill]] %s2377_s4 }
   0x4   :  { %2393 = sst [smem:[#allocation31_spill]] %s2378_s5 }
   0x5   :  { %2394 = sst [smem:[#allocation32_spill]] %s2379_s6 }
   0x6   :  { %2395 = sst [smem:[#allocation33_spill]] %s2380_s7 }
   0x7   :  { %2396 = sst [smem:[#allocation34_spill]] %s2381_s8 }
   0x8   :  { %2397 = sst [smem:[#allocation35_spill]] %s2382_s9 }
   0x9   :  { %2398 = sst [smem:[#allocation36_spill]] %s2386_s13 }
   0xa   :  { %18 = vsyncpa [#allocation3], 0 }
   0xb   :  { %20 = vsyncpa [#allocation3 + $0x1], 0 }
   0xc   :  { %21 = vsyncpa [#allocation5], 0 }
   0xd   :  { %23 = vsyncpa [#allocation5 + $0x1], 0 }
   0xe   :  { %24 = vsyncpa [#allocation8], 0 }
   0xf   :  { %25 = vsyncpa [#allocation11], 0 }
  0x10   :  { %26 = vsyncpa [#allocation14], 0 }
  0x11   :  { %27 = vsyncpa [#allocation17], 0  ;;  %s2112_s25 = smov 0   ;;  %s2114_s26 = smov 0  }
  0x12   :  { %s2116_s27 = smov 0   ;;  %s2118_s28 = smov 0  }
  0x13   :  { %s2120_s29 = smov 0   ;;  %s2122_s30 = smov 0  }
  0x14 LB: > { %2399 = sst [smem:[#allocation26_spill]] %s2012_s28  ;;  %s2387_s14 = sadd.s32 4294967295, %s2020_s30   ;;  %s2020_s30 = sphi %s2122_s30, %s33_s30   ;;  %s2016_s29 = sphi %s2120_s29, %s2422_s29   ;;  %s2012_s28 = sphi %s2118_s28, %s2421_s28   ;;  %s2008_s27 = sphi %s2116_s27, %s2420_s27   ;;  %s2004_s26 = sphi %s2114_s26, %s2419_s26   ;;  %s2000_s25 = sphi %s2112_s25, %s2418_s25  }
  0x15   : > { %p1341_p0 = scmp.ge.s32.totalorder %s2020_s30, 1  ;;  %p2146_p1 = scmp.eq.s32.totalorder %s2387_s14, 0 }
  0x16   : > { %p370_p2 = scmp.lt.s32.totalorder %s2020_s30, 3  ;;  %s2401_s4 = sld [smem:[#allocation30_spill]] }
  0x17   : > { %s2022_s20 = smov [#allocation6]   ;;  %s2404_s5 = sld [smem:[#allocation31_spill]] }
  0x18   : > { %p2154_p3 = pnand %p1341_p0, %p370_p2  ;;  %s387_s21 = sshll.u32 %s2022_s20, 4  ;;  %s388_s21 = int_to_ptr.vmem [resolvable:$true] %s387_s21 }
  0x19   : > { %s2023_s16 = smov [#allocation7]   ;;  %s2024_s20 = smov 64  }
  0x1a   : > { %s2402_s19 = scalar_select %p2154_p3, 1, 0 }
  0x1b   : > { %p1464_p4 = pneg %p2154_p3  ;;  %s398_s17 = sshll.u32 %s2023_s16, 4  ;;  %s399_s17 = int_to_ptr.vmem [resolvable:$true] %s398_s17 }
  0x1c   : > { %s385_s18 = sshll.u32 %s2401_s4, 4  ;;  %2403 = sst [smem:[#allocation27_spill]] %s2402_s19  ;;  %s386_s18 = int_to_ptr.hbm [resolvable:$true] %s385_s18 }
  0x1d   : > { %s396_s24 = sshll.u32 %s2404_s5, 4  ;;  %p2165_p5 = pnand %p1464_p4, %p2146_p1  ;;  %s397_s24 = int_to_ptr.hbm [resolvable:$true] %s396_s24 }
  0x1e   : > { %s2025_s4 = smov 4   ;;  %s2406_s7 = sld [smem:[#allocation33_spill]] }
  0x1f   : > { %1467 = dma.hbm_to_vmem [thread:$0]  (!%p2165_p5), %s386_s18, 16, %s388_s21, [#allocation5]  }
  0x20   : > { %1470 = dma.hbm_to_vmem [thread:$0]  (!%p2165_p5), %s397_s24, 256, %s399_s17, [#allocation8], %s2024_s20, %s2024_s20, %s2025_s4  }
  0x21   : > { %s2026_s13 = smov [#allocation10]   ;;  %s2407_s9 = sld [smem:[#allocation35_spill]] }
  0x22   : > { %s424_s3 = sshll.u32 %s2026_s13, 4  ;;  %s2027_s18 = smov [#allocation13]   ;;  %s425_s3 = int_to_ptr.vmem [resolvable:$true] %s424_s3 }
  0x23   : > { %s450_s21 = sshll.u32 %s2027_s18, 4  ;;  %s474_s17 = sshll.u32 %s2384_s11, 4  ;;  %s451_s21 = int_to_ptr.vmem [resolvable:$true] %s450_s21  ;;  %s475_s17 = int_to_ptr.hbm [resolvable:$true] %s474_s17 }
  0x24   : > { %s422_s5 = sshll.u32 %s2406_s7, 4  ;;  %s2408_s6 = sld [smem:[#allocation32_spill]]  ;;  %s423_s5 = int_to_ptr.hbm [resolvable:$true] %s422_s5 }
  0x25   : > { %1476 = dma.hbm_to_vmem [thread:$0]  (!%p2165_p5), %s423_s5, 256, %s425_s3, [#allocation11], %s2024_s20, %s2024_s20, %s2025_s4  }
  0x26   : > { %s2028_s0 = smov [#allocation16]   ;;  %s2029_s3 = smov [#allocation9]  }
  0x27   : > { %s448_s16 = sshll.u32 %s2407_s9, 4  ;;  %s476_s28 = sshll.u32 %s2028_s0, 4  ;;  %s449_s16 = int_to_ptr.hbm [resolvable:$true] %s448_s16  ;;  %s477_s28 = int_to_ptr.vmem [resolvable:$true] %s476_s28 }
  0x28   : > { %1482 = dma.hbm_to_vmem [thread:$0]  (!%p2165_p5), %s449_s16, 256, %s451_s21, [#allocation14], %s2024_s20, %s2024_s20, %s2025_s4  }
  0x29   : > { %1488 = dma.hbm_to_vmem [thread:$0]  (!%p2165_p5), %s475_s17, 256, %s477_s28, [#allocation17], %s2024_s20, %s2024_s20, %s2025_s4  }
  0x2a   : > { %s411_s23 = sshll.u32 %s2408_s6, 4  ;;  %s413_s5 = sshll.u32 %s2029_s3, 4  ;;  %s412_s23 = int_to_ptr.hbm [resolvable:$true] %s411_s23  ;;  %s414_s5 = int_to_ptr.vmem [resolvable:$true] %s413_s5 }
  0x2b   : > { %s2409_s8 = sld [smem:[#allocation34_spill]]  ;;  %s463_s13 = sshll.u32 %s2383_s10, 4  ;;  %s464_s13 = int_to_ptr.hbm [resolvable:$true] %s463_s13 }
  0x2c   : > { %1473 = dma.hbm_to_vmem [thread:$0]  (!%p2165_p5), %s412_s23, 16, %s414_s5, [#allocation8]  }
  0x2d   : > { %s2030_s22 = smov [#allocation12]   ;;  %s2031_s4 = smov [#allocation15]  }
  0x2e   : > { %s439_s0 = sshll.u32 %s2030_s22, 4  ;;  %s465_s20 = sshll.u32 %s2031_s4, 4  ;;  %s440_s0 = int_to_ptr.vmem [resolvable:$true] %s439_s0  ;;  %s466_s20 = int_to_ptr.vmem [resolvable:$true] %s465_s20 }
  0x2f   : > { %s489_s28 = sshll.u32 %s2385_s12, 4  ;;  %s2032_s3 = smov [#allocation18]   ;;  %s490_s28 = int_to_ptr.hbm [resolvable:$true] %s489_s28 }
  0x30   : > { %1485 = dma.hbm_to_vmem [thread:$0]  (!%p2165_p5), %s464_s13, 16, %s466_s20, [#allocation14]  }
  0x31   : > { %s437_s24 = sshll.u32 %s2409_s8, 4  ;;  %s491_s5 = sshll.u32 %s2032_s3, 4  ;;  %s438_s24 = int_to_ptr.hbm [resolvable:$true] %s437_s24  ;;  %s492_s5 = int_to_ptr.vmem [resolvable:$true] %s491_s5 }
  0x32   : > { %1479 = dma.hbm_to_vmem [thread:$0]  (!%p2165_p5), %s438_s24, 16, %s440_s0, [#allocation11]  }
  0x33   : > { %1491 = dma.hbm_to_vmem [thread:$0]  (!%p2165_p5), %s490_s28, 16, %s492_s5, [#allocation17]  }
  0x34   : > { %s45_s19 = sadd.s32 1, %s2016_s29  ;;  %s80_s18 = sadd.s32 1, %s2008_s27 }
  0x35   : > { %p47_p6 = scmp.ge.s32.totalorder %s45_s19, 2  ;;  %p87_p7 = scmp.ne.s32.totalorder %s2008_s27, %s2004_s26 }
  0x36   : > { %p88_p8 = scmp.eq.s32.totalorder %s2020_s30, 0  ;;  %p93_p10 = scmp.ne.s32.totalorder %s2004_s26, %s2000_s25 }
  0x37   : > { %s2424_s19 = smov (%p47_p6, %s45_s19), 0  ;;  %p1508_p11 = scmp.lt.s32.totalorder %s2020_s30, 2 }
  0x38   : > { %p2215_p9 = por %p88_p8, %p87_p7  ;;  %s77_s16 = ssub.s32 %s2016_s29, %s2424_s19 }
  0x39   : > { %p78_p12 = scmp.eq.s32.totalorder %s77_s16, 0  ;;  %p2226_p13 = por %p2146_p1, %p93_p10 }
  0x3a   : > { %s512_s21 = sand.u32 1, %s2008_s27   ;;  %s1353_s13 = sshll.u32 %s2016_s29, 3 }
  0x3b   : > { %s2233_s22 = scalar_select %p78_p12, %s2008_s27, %s80_s18  }
  0x3c   : > { %s1352_s0 = sshll.u32 %s512_s21, 3  ;;  %s520_s17 = scalar_lea.hbm %s2374_s1, %s1353_s13 }
  0x3d   : > { %s522_s23 = sshll.u32 %s520_s17, 4  ;;  %s516_s25 = scalar_lea.vmem [#allocation2], %s1352_s0  ;;  %s523_s23 = int_to_ptr.hbm [resolvable:$true] %s522_s23 }
  0x3e   : > { %s524_s28 = sshll.u32 %s516_s25, 4  ;;  %p1493_p0 = pnand %p1508_p11, %p2215_p9  ;;  %s525_s28 = int_to_ptr.vmem [resolvable:$true] %s524_s28 }
  0x3f   : > { %s540_s16 = scalar_lea.hbm %s2375_s2, %s1353_s13  ;;  %s531_s6 = sand.u32 1, %s2020_s30  }
  0x40   : > { %s513_s18 = scalar_lea.sflag [#allocation3], %s512_s21  ;;  %s542_s7 = sshll.u32 %s540_s16, 4  ;;  %s543_s7 = int_to_ptr.hbm [resolvable:$true] %s542_s7 }
  0x41   : > { %1495 = dma.hbm_to_vmem [thread:$0]  (!%p1493_p0), %s523_s23, 128, %s525_s28, %s513_s18  }
  0x42   : > { %s535_s8 = scalar_lea.vmem [#allocation4], %s1352_s0  ;;  %s532_s4 = scalar_lea.sflag [#allocation5], %s531_s6 }
  0x43   : > { %s544_s9 = sshll.u32 %s535_s8, 4  ;;  %553 = sbr.rel (%p2154_p3) target bundleno = 1431 (0x597), region = 72  ;;  %s545_s9 = int_to_ptr.vmem [resolvable:$true] %s544_s9 }
  0x44   : > { %1498 = dma.hbm_to_vmem [thread:$0]  (!%p1493_p0), %s543_s7, 128, %s545_s9, %s532_s4  }
  0x45   : > { %s555_s24 = sand.u32 (!%p2154_p3), 1, %s2004_s26  }
  0x46   : > { %s2249_s17 = sshll.u32 (!%p2154_p3), %s555_s24, 3  ;;  %s556_s13 = scalar_lea.sflag (!%p2154_p3), [#allocation3], %s555_s24 }
  0x47   : > { %s559_s25 = scalar_lea.vmem (!%p2154_p3), [#allocation2], %s2249_s17 }
  0x48   : > { %1971 = dma.done.wait (%p2226_p13), %s556_s13, 128  }
  0x49   : > { %1973 = vsyncadd (%p2226_p13), %s556_s13, 4294967168  ;;  %s2413_s8 = sadd.s32 4294967295, %s2020_s30   ;;  %s569_s9 = scalar_lea.vmem [#allocation4], %s2249_s17 }
  0x4a   : > { %s565_s6 = sand.u32 1, %s2413_s8  }
  0x4b   : > { %s566_s7 = scalar_lea.sflag [#allocation5], %s565_s6 }
  0x4c   : > { %1975 = dma.done.wait (%p2226_p13), %s566_s7, 128  }
  0x4d   : > { %1977 = vsyncadd (%p2226_p13), %s566_s7, 4294967168 }
  0x4e   : > { %1979 = dma.done.wait (%p2146_p1), [#allocation5], 16  }
  0x4f   : > { %1981 = vsyncadd (%p2146_p1), [#allocation5], 4294967280 }
  0x50   : > { %1983 = dma.done.wait (%p2146_p1), [#allocation8], 272  }
  0x51   : > { %1985 = vsyncadd (%p2146_p1), [#allocation8], 4294967024 }
  0x52   : > { %1987 = dma.done.wait (%p2146_p1), [#allocation11], 272  }
  0x53   : > { %1989 = vsyncadd (%p2146_p1), [#allocation11], 4294967024 }
  0x54   : > { %1991 = dma.done.wait (%p2146_p1), [#allocation14], 272  }
  0x55   : > { %1993 = vsyncadd (%p2146_p1), [#allocation14], 4294967024 }
  0x56   : > { %1995 = dma.done.wait (%p2146_p1), [#allocation17], 272  }
  0x57   : > { %1997 = vsyncadd (%p2146_p1), [#allocation17], 4294967024  ;;  %s2414_s14 = sld [smem:[#allocation26_spill]]  ;;  %vm690_vm0 = vcmask 261120   ;;  %v2033_v2 = vmov 32.0   ;;  %v1419_v14 = vld [vmem:[#allocation10 + $0x8] sm:$0xff] }
  0x58   : > { %s2415_s28 = sld [smem:[#allocation28_spill]]  ;;  %1592 = vrcp.f32 %v2033_v2  ;;  %810 = vmatpush.bf16.msra.mxu1 %v1419_v14  ;;  %v1418_v15 = vld [vmem:[#allocation10] sm:$0xff]  ;;  %v2034_v16 = vmov 31.0   ;;  %v738_v17 = vld [vmem:[%s559_s25] sm:$0xff]  ;;  %s2035_s18 = smov 120   ;;  %vm853_vm5 = vcmask 64512  }
  0x59   : > { %1594 = vrcp.f32 %v2034_v16  ;;  %v2301_v18 = vpack.c.bf16 %v738_v17, %v738_v17  ;;  %v1417_v19 = vld [vmem:[#allocation7 + $0x8] sm:$0xff]  ;;  %v1416_v21 = vld [vmem:[#allocation7] sm:$0xff]  ;;  %s2416_s16 = sld [smem:[#allocation29_spill]]  ;;  %v1587_v42 = vld [vmem:[#allocation6] ss:$0 sm:$0xff]  ;;  %s2036_s4 = smov 112  }
  0x5a   : > { %773 = vmatpush.bf16.msra.mxu0 %v1417_v19  ;;  %v1588_v47 = vld [vmem:[#allocation12] ss:$0 sm:$0xff]  ;;  %s2037_s20 = smov 104   ;;  %v1589_v53 = vld [vmem:[#allocation9] ss:$0 sm:$0xff]  ;;  %vm888_vm7 = vcmask 1043456  }
  0x5b   : > { %s2039_s24 = smov 8   ;;  %s2040_s17 = smov 16   ;;  %vm1089_vm8 = vcmask 130048   ;;  %vm1091_vm9 = vcmask 195584  }
  0x5c   : > { %811 = vmatpush.bf16.msra.mxu1 %v1418_v15  ;;  %s2041_s13 = smov 24   ;;  %s2417_s6 = sld [smem:[#allocation36_spill]] }
  0x5d   : > { %p672_p2 = scmp.lt.s32.totalorder %s2414_s14, 1 }
  0x5e   : > { %v1593_v3 = vpop.eup %1592  ;;  %774 = vmatpush.bf16.msra.mxu0 %v1416_v21 }
  0x5f   : > { %s2426_s14 = smov (!%p672_p2, %s2414_s14), 1  ;;  %v695_v4 = vmul.f32 32.0, %v1593_v3  ;;  %vm699_vm1 = vweird.f32 %v1593_v3  ;;  %1387 = vmatmul.msk.bf16.vlgmr.msra.gmra.mxu1 %vm690_vm0, %v2301_v18  ;;  %v1595_v20 = vpop.eup %1594  ;;  %v1586_v40 = vld [vmem:[%s2416_s16] ss:$0 sm:$0xff] }
  0x60   : > { %s1368_s21 = sshll.u32 %s2426_s14, 3  ;;  %v708_v22 = vmul.f32 31.0, %v1595_v20  ;;  %vm712_vm2 = vweird.f32 %v1595_v20 }
  0x61   : > { %s678_s3 = scalar_lea.vmem %s2415_s28, %s1368_s21  ;;  %v696_v5 = vsub.f32 1.0, %v695_v4  ;;  %v739_v4 = vld [vmem:[%s569_s9] sm:$0xff] }
  0x62   : > { %v2293_v0 = vld [vmem:[%s678_s3] sm:$0xff]  ;;  %v709_v23 = vsub.f32 1.0, %v708_v22  ;;  %vm740_vm6 = vcmp.eq.f32.partialorder %v739_v4, 0.0  ;;  %s685_s7 = scalar_lea.vmem %s2417_s6, %s1368_s21 }
  0x63   : > { %v691_v1 = vsel %vm690_vm0, %v2293_v0, 0.0  ;;  %v697_v6 = vmul.f32 %v1593_v3, %v696_v5 }
  0x64   : > { %692 = vadd.xlane.f32.xlu0 %v691_v1  ;;  %v710_v24 = vmul.f32 %v1595_v20, %v709_v23 }
  0x65   : > { %v698_v7 = vadd.f32 %v1593_v3, %v697_v6  ;;  %v2038_v6 = vmov 0.0  }
  0x66   : > { %v711_v25 = vadd.f32 %v1595_v20, %v710_v24 }
  0x67   : > { %v700_v8 = vsel %vm699_vm1, %v1593_v3, %v698_v7  ;;  %v741_v7 = vsel %vm740_vm6, -1e+09, %v2038_v6 }
  0x68   : > { %v713_v26 = vsel %vm712_vm2, %v1595_v20, %v711_v25 }
  0xd7   : > { %v693_v9 = vpop.xlane.xlu0 %692 }
  0xd8   : > { %v701_v10 = vmul.f32 %v700_v8, %v693_v9 }
  0xda   : > { %v702_v11 = vsub.f32 %v2293_v0, %v701_v10 }
  0xdc   : > { %v703_v12 = vmul.f32 %v702_v11, %v702_v11  ;;  %v732_v41 = vmul.f32 %v1586_v40, %v702_v11  ;;  %v813_v48 = vpop.f32.mrf.mxu1 }
  0xdd   : > { %v814_v49 = vadd.f32 %v1588_v47, %v813_v48 }
  0xde   : > { %v704_v13 = vsel %vm690_vm0, %v703_v12, 0.0  ;;  %v1421_v12 = vld [vmem:[#allocation13 + $0x8] sm:$0xff] }
  0xdf   : > { %705 = vadd.xlane.f32.xlu0 %v704_v13  ;;  %v851_v50 = vpack.c.bf16 %v814_v49, %v814_v49  ;;  %843 = vmatpush.bf16.msra.mxu2 %v1421_v12  ;;  %v1420_v13 = vld [vmem:[#allocation13] sm:$0xff] }
  0xe1   : > { %909 = vrot.lane.b32.xlu1 %v851_v50, %s2035_s18  ;;  %966 = vrot.lane.b32.xlu2 %v851_v50, %s2036_s4  ;;  %v858_v52 = vsel %vm853_vm5, %v851_v50, 0 }
  0xe2   : > { %867 = vmatpush.bf16.xpose.msra.mxu3 %v858_v52 }
  0xe3   : > { %844 = vmatpush.bf16.msra.mxu2 %v1420_v13 }
  0xe4   : > { %v815_v51 = vpop.f32.mrf.mxu1 }
  0xe6   : > { %1396 = vmatmul.msk.bf16.vlgmr.msra.gmra.mxu2 %vm690_vm0, %v2301_v18 }
  0xe9   : > { %1022 = vrot.lane.b32.xlu2 %v851_v50, %s2037_s20 }
 0x13b   : > { %v967_v59 = vpop.permute.xlu2 %966 }
 0x13c   : > { %v972_v60 = vsel %vm853_vm5, %v967_v59, 0 }
 0x13d   : > { %981 = vmatpush.bf16.xpose.msrb.mxu3 %v972_v60 }
 0x143   : > { %v1023_v61 = vpop.permute.xlu2 %1022 }
 0x144   : > { %v1028_v63 = vsel %vm853_vm5, %v1023_v61, 0 }
 0x152   : > { %v706_v27 = vpop.xlane.xlu0 %705 }
 0x153   : > { %v714_v28 = vmul.f32 %v713_v26, %v706_v27  ;;  %v910_v62 = vpop.permute.xlu1 %909 }
 0x154   : > { %v915_v1 = vsel %vm853_vm5, %v910_v62, 0 }
 0x155   : > { %1596 = vrsqrt.f32 %v714_v28  ;;  %vm722_vm3 = vcmp.eq.f32.partialorder %v714_v28, inf  ;;  %v725_v36 = vand.u32 2147483648, %v714_v28  ;;  %vm724_vm4 = vcmp.eq.f32.partialorder %v714_v28, 0.0  ;;  %924 = vmatpush.bf16.xpose.msrb.mxu1 %v915_v1 }
 0x15b   : > { %v1597_v29 = vpop.eup %1596 }
 0x15c   : > { %v716_v30 = vmul.f32 %v1597_v29, %v714_v28 }
 0x15d   : > { %1037 = vmatpush.bf16.xpose.msra.mxu1 %v1028_v63 }
 0x15e   : > { %v717_v31 = vmul.f32 %v1597_v29, %v716_v30 }
 0x160   : > { %v718_v32 = vmul.f32 0.5, %v717_v31  ;;  %v1590_v31 = vld [vmem:[#allocation15] ss:$0 sm:$0xff] }
 0x162   : > { %v719_v33 = vsub.f32 1.5, %v718_v32 }
 0x164   : > { %v720_v34 = vmul.f32 %v1597_v29, %v719_v33 }
 0x166   : > { %v721_v35 = vmul.f32 %v720_v34, %v714_v28 }
 0x168   : > { %v723_v37 = vsel %vm722_vm3, %v714_v28, %v721_v35 }
 0x169   : > { %v726_v38 = vsel %vm724_vm4, %v725_v36, %v723_v37  ;;  %v846_v32 = vpop.f32.mrf.mxu2 }
 0x16a   : > { %v727_v39 = vadd.f32 1e-06, %v726_v38  ;;  %v847_v33 = vadd.f32 %v1590_v31, %v846_v32 }
 0x16c   : > { %1598 = vrcp.f32 %v727_v39  ;;  %v852_v34 = vpack.c.bf16 %v847_v33, %v847_v33 }
 0x16e   : > { %v890_v35 = vsel %vm888_vm7, %v852_v34, 0 }
 0x16f   : > { %899 = vmatpush.bf16.msrb.mxu0 %v890_v35 }
 0x171   : > { %v848_v37 = vpop.f32.mrf.mxu2 }
 0x172   : > { %v1599_v43 = vpop.eup %1598 }
 0x173   : > { %v733_v44 = vmul.f32 %v1599_v43, %v732_v41 }
 0x175   : > { %v737_v45 = vadd.f32 %v1587_v42, %v733_v44 }
 0x177   : > { %v742_v46 = vpack.c.bf16 %v737_v45, %v737_v45 }
 0x179   : > { %1378 = vmatmul.msk.bf16.vlgmr.msra.gmra.mxu0 %vm690_vm0, %v742_v46 }
 0x1f6   : > { %v776_v54 = vpop.f32.mrf.mxu0 }
 0x1f7   : > { %v777_v55 = vadd.f32 %v1589_v53, %v776_v54 }
 0x1f9   : > { %v780_v56 = vmul.f32 0.35355338, %v777_v55 }
 0x1fb   : > { %v850_v57 = vpack.c.bf16 %v780_v56, %v780_v56 }
 0x1fd   : > { %964 = vrot.lane.b32.xlu0 %v850_v57, %s2036_s4  ;;  %906 = vrot.lane.b32.xlu1 %v850_v57, %s2035_s18 }
 0x1fe   : > { %1397 = vmatmul.msk.bf16.vlgmr.msra.gmra.mxu3 %vm853_vm5, %v850_v57  ;;  %v778_v58 = vpop.f32.mrf.mxu0 }
 0x205   : > { %1020 = vrot.lane.b32.xlu1 %v850_v57, %s2037_s20 }
 0x26f   : > { %v965_v2 = vpop.permute.xlu0 %964  ;;  %v907_v3 = vpop.permute.xlu1 %906 }
 0x270   : > { %1399 = vmatmul.msk.bf16.vlgmr.msrb.gmra.mxu1 %vm853_vm5, %v907_v3  ;;  %1401 = vmatmul.msk.bf16.vlgmr.msrb.gmra.mxu3 %vm853_vm5, %v965_v2 }
 0x277   : > { %v1021_v5 = vpop.permute.xlu1 %1020 }
 0x280   : > { %1403 = vmatmul.msk.bf16.vlgmr.msra.gmra.mxu1 %vm853_vm5, %v1021_v5 }
 0x281   : > { %v869_v8 = vpop.f32.mrf.mxu3 }
 0x282   : > { %v870_v9 = vadd.f32 %v869_v8, %v741_v7 }
 0x284   : > { %v873_v10 = vsel %vm853_vm5, %v870_v9, -inf }
 0x285   : > { %874 = vmax.xlane.f32.xlu1 %v873_v10 }
 0x289   : > { %v871_v11 = vpop.f32.mrf.mxu3 }
 0x2ed   : > { %v926_v14 = vpop.f32.mrf.mxu1 }
 0x2ee   : > { %v927_v15 = vadd.f32 %v926_v14, %v741_v7 }
 0x2f0   : > { %v930_v16 = vsel %vm853_vm5, %v927_v15, -inf }
 0x2f1   : > { %931 = vmax.xlane.f32.xlu2 %v930_v16 }
 0x2f3   : > { %v983_v17 = vpop.f32.mrf.mxu3 }
 0x2f4   : > { %v984_v19 = vadd.f32 %v983_v17, %v741_v7 }
 0x2f5   : > { %v928_v20 = vpop.f32.mrf.mxu1 }
 0x2f6   : > { %v987_v22 = vsel %vm853_vm5, %v984_v19, -inf  ;;  %v1423_v20 = vld [vmem:[#allocation16 + $0x8] sm:$0xff] }
 0x2f7   : > { %1123 = vmatpush.bf16.msra.mxu3 %v1423_v20 }
 0x2f8   : > { %v875_v21 = vpop.xlane.xlu1 %874 }
 0x2f9   : > { %v876_v23 = vsub.f32 %v870_v9, %v875_v21  ;;  %988 = vmax.xlane.f32.xlu2 %v987_v22  ;;  %v1422_v21 = vld [vmem:[#allocation16] sm:$0xff] }
 0x2fb   : > { %v877_v24 = vmul.f32 1.442695, %v876_v23  ;;  %v985_v25 = vpop.f32.mrf.mxu3  ;;  %1124 = vmatpush.bf16.msra.mxu3 %v1422_v21 }
 0x2fd   : > { %1600 = vpow2.f32 %v877_v24  ;;  %v1039_v26 = vpop.f32.mrf.mxu1 }
 0x2fe   : > { %v1040_v27 = vadd.f32 %v1039_v26, %v741_v7 }
 0x300   : > { %v1043_v18 = vsel %vm853_vm5, %v1040_v27, -inf }
 0x301   : > { %1044 = vmax.xlane.f32.xlu0 %v1043_v18 }
 0x303   : > { %v1601_v28 = vpop.eup %1600 }
 0x304   : > { %v879_v29 = vsel %vm853_vm5, %v1601_v28, 0.0 }
 0x305   : > { %880 = vadd.xlane.f32.xlu1 %v879_v29  ;;  %v1041_v30 = vpop.f32.mrf.mxu1 }
 0x364   : > { %v932_v36 = vpop.xlane.xlu2 %931 }
 0x365   : > { %v933_v38 = vsub.f32 %v927_v15, %v932_v36 }
 0x367   : > { %v934_v39 = vmul.f32 1.442695, %v933_v38 }
 0x369   : > { %1602 = vpow2.f32 %v934_v39 }
 0x36c   : > { %v989_v40 = vpop.xlane.xlu2 %988 }
 0x36d   : > { %v990_v41 = vsub.f32 %v984_v19, %v989_v40 }
 0x36f   : > { %v1603_v42 = vpop.eup %1602  ;;  %v991_v43 = vmul.f32 1.442695, %v990_v41 }
 0x370   : > { %v936_v44 = vsel %vm853_vm5, %v1603_v42, 0.0 }
 0x371   : > { %1604 = vpow2.f32 %v991_v43  ;;  %937 = vadd.xlane.f32.xlu2 %v936_v44 }
 0x374   : > { %v1045_v45 = vpop.xlane.xlu0 %1044 }
 0x375   : > { %v1046_v46 = vsub.f32 %v1040_v27, %v1045_v45 }
 0x377   : > { %v1605_v47 = vpop.eup %1604  ;;  %v1047_v48 = vmul.f32 1.442695, %v1046_v46 }
 0x378   : > { %v881_v49 = vpop.xlane.xlu1 %880  ;;  %v993_v50 = vsel %vm853_vm5, %v1605_v47, 0.0 }
 0x379   : > { %1606 = vpow2.f32 %v1047_v48  ;;  %994 = vadd.xlane.f32.xlu0 %v993_v50 }
 0x37a   : > { %1608 = vrcp.f32 %v881_v49 }
 0x37f   : > { %v1607_v51 = vpop.eup %1606 }
 0x380   : > { %v1609_v52 = vpop.eup %1608  ;;  %v1049_v53 = vsel %vm853_vm5, %v1607_v51, 0.0 }
 0x381   : > { %v883_v54 = vmul.f32 %v1609_v52, %v1601_v28  ;;  %1050 = vadd.xlane.f32.xlu1 %v1049_v53  ;;  %v1591_v28 = vld [vmem:[#allocation18] ss:$0 sm:$0xff] }
 0x383   : > { %v884_v55 = vpack.c.bf16 %v883_v54, %v883_v54 }
 0x385   : > { %1398 = vmatmul.msk.bf16.vlgmr.msrb.gmra.mxu0 %vm853_vm5, %v884_v55 }
 0x389   : > { %943 = vrot.lane.b32.xlu2 %v852_v34, %s2035_s18 }
 0x38d   : > { %999 = vrot.lane.b32.xlu0 %v852_v34, %s2036_s4 }
 0x39a   : > { %1055 = vrot.lane.b32.xlu1 %v852_v34, %s2037_s20 }
 0x3e4   : > { %v938_v56 = vpop.xlane.xlu2 %937 }
 0x3e5   : > { %1610 = vrcp.f32 %v938_v56 }
 0x3eb   : > { %v1611_v57 = vpop.eup %1610 }
 0x3ec   : > { %v940_v58 = vmul.f32 %v1611_v57, %v1603_v42  ;;  %v944_v59 = vpop.permute.xlu2 %943  ;;  %v995_v62 = vpop.xlane.xlu0 %994 }
 0x3ed   : > { %v949_v60 = vsel %vm888_vm7, %v944_v59, 0  ;;  %1612 = vrcp.f32 %v995_v62 }
 0x3ee   : > { %958 = vmatpush.bf16.msrb.mxu2 %v949_v60  ;;  %v941_v61 = vpack.c.bf16 %v940_v58, %v940_v58 }
 0x3f1   : > { %1400 = vmatmul.msk.bf16.vlgmr.msrb.gmra.mxu2 %vm853_vm5, %v941_v61 }
 0x3f3   : > { %v1613_v63 = vpop.eup %1612 }
 0x3f4   : > { %v997_v1 = vmul.f32 %v1613_v63, %v1605_v47  ;;  %v1051_v2 = vpop.xlane.xlu1 %1050 }
 0x3f5   : > { %1614 = vrcp.f32 %v1051_v2 }
 0x3f6   : > { %v998_v5 = vpack.c.bf16 %v997_v1, %v997_v1 }
 0x3fb   : > { %v1615_v7 = vpop.eup %1614 }
 0x3fc   : > { %v1053_v9 = vmul.f32 %v1615_v7, %v1607_v51 }
 0x3fe   : > { %v1054_v12 = vpack.c.bf16 %v1053_v9, %v1053_v9 }
 0x3ff   : > { %v1000_v3 = vpop.permute.xlu0 %999 }
 0x400   : > { %v1005_v4 = vsel %vm888_vm7, %v1000_v3, 0 }
 0x401   : > { %1014 = vmatpush.bf16.msra.mxu0 %v1005_v4 }
 0x402   : > { %v901_v6 = vpop.f32.mrf.mxu0 }
 0x404   : > { %1402 = vmatmul.msk.bf16.vlgmr.msra.gmra.mxu0 %vm853_vm5, %v998_v5 }
 0x40a   : > { %v903_v8 = vpop.f32.mrf.mxu0 }
 0x40c   : > { %v1056_v10 = vpop.permute.xlu1 %1055 }
 0x40d   : > { %v1061_v11 = vsel %vm888_vm7, %v1056_v10, 0 }
 0x40e   : > { %1070 = vmatpush.bf16.msra.mxu2 %v1061_v11 }
 0x411   : > { %1404 = vmatmul.msk.bf16.vlgmr.msra.gmra.mxu2 %vm853_vm5, %v1054_v12 }
 0x474   : > { %v960_v13 = vpop.f32.mrf.mxu2 }
 0x475   : > { %1077 = vrot.lane.b32.xlu2 %v960_v13, %s2039_s24 }
 0x47c   : > { %v962_v14 = vpop.f32.mrf.mxu2 }
 0x481   : > { %v1016_v15 = vpop.f32.mrf.mxu0 }
 0x482   : > { %1081 = vrot.lane.b32.xlu2 %v1016_v15, %s2040_s17 }
 0x489   : > { %v1018_v16 = vpop.f32.mrf.mxu0 }
 0x494   : > { %v1072_v17 = vpop.f32.mrf.mxu2 }
 0x495   : > { %1085 = vrot.lane.b32.xlu0 %v1072_v17, %s2041_s13 }
 0x49c   : > { %v1074_v19 = vpop.f32.mrf.mxu2 }
 0x4cf   : > { %v1078_v22 = vpop.permute.xlu2 %1077 }
 0x4d0   : > { %v1088_v24 = vsel %vm853_vm5, %v901_v6, %v1078_v22 }
 0x4dc   : > { %v1082_v23 = vpop.permute.xlu2 %1081 }
 0x4dd   : > { %v1090_v25 = vsel %vm1089_vm8, %v1088_v24, %v1082_v23 }
 0x507   : > { %v1086_v26 = vpop.permute.xlu0 %1085 }
 0x508   : > { %v1092_v27 = vsel %vm1091_vm9, %v1090_v25, %v1086_v26 }
 0x509   : > { %v1093_v18 = vpack.c.bf16 %v1092_v27, %v1092_v27 }
 0x50b   : > { %1413 = vmatmul.msk.bf16.vlgmr.msra.gmra.mxu3 %vm690_vm0, %v1093_v18 }
 0x58e   : > { %v1126_v29 = vpop.f32.mrf.mxu3 }
 0x58f   : > { %v1127_v30 = vadd.f32 %v1591_v28, %v1126_v29 }
 0x591   : > { %v1130_v31 = vadd.f32 %v1127_v30, %v2293_v0 }
 0x593   : > { %1131 = vst.msk [vmem:[%s685_s7] sm:$0xff] %vm690_vm0, %v1130_v31 }
 0x596   : > { %v1128_v32 = vpop.f32.mrf.mxu3 }
 0x597 PF: > { %s33_s30 = sadd.s32 1, %s2020_s30   ;;  %s2418_s25 = smov %s2004_s26 }
 0x598   : > { %p30_p1 = scmp.ge.s32.totalorder %s33_s30, 4   ;;  %s2419_s26 = smov %s2008_s27 }
 0x599   : > { %s2420_s27 = smov %s2233_s22  ;;  %s2421_s28 = smov %s2016_s29 }
 0x59a   : > { %s2422_s29 = smov %s2424_s19  ;;  %32 = sbr.rel (!%p30_p1) target bundleno = 20 (0x14), region = 164 }
 0x59f   :  { %1157 = vsyncpa [#allocation3], 1 }
 0x5a0   :  { %1159 = vsyncpa [#allocation3 + $0x1], 1 }
 0x5a1   :  { %1160 = vsyncpa [#allocation5], 1 }
 0x5a2   :  { %1162 = vsyncpa [#allocation5 + $0x1], 1 }
 0x5a3   :  { %1163 = vsyncpa [#allocation8], 1 }
 0x5a4   :  { %1164 = vsyncpa [#allocation11], 1 }
 0x5a5   :  { %1165 = vsyncpa [#allocation14], 1 }
 0x5a6   :  { %1166 = vsyncpa [#allocation17], 1 }

// kernel: decoder_forward.6
= control target key start
LH: loop header
LB: loop body
LE: loop exit
PB: predicated region body
PF: predicated region fallthrough
CT: control target
= control target key end

     0   :  { %s2411_s0 = inlined_call_operand.hbm [shape: f32[2,8,32], index: 0, kind: input, shape index: {}, may-alias: {0,1}]   ;;  %s2412_s1 = inlined_call_operand.hbm [shape: f32[2,8,32], index: 1, kind: input, shape index: {}, may-alias: {0,1}]   ;;  %s2413_s2 = inlined_call_operand.vmem [shape: f32[2,8,8], index: 2, kind: input, shape index: {}]   ;;  %s2414_s3 = inlined_call_operand.hbm [shape: f32[1,32], index: 3, kind: input, shape index: {}]   ;;  %s2415_s4 = inlined_call_operand.hbm [shape: f32[1,32], index: 4, kind: input, shape index: {}]   ;;  %s2416_s5 = inlined_call_operand.vmem [shape: bf16[32,32], index: 5, kind: input, shape index: {}]   ;;  %s2417_s6 = inlined_call_operand.hbm [shape: f32[1,32], index: 6, kind: input, shape index: {}]   ;;  %s2418_s7 = inlined_call_operand.hbm [shape: bf16[32,32], index: 7, kind: input, shape index: {}]   ;;  %s2419_s8 = inlined_call_operand.hbm [shape: f32[1,32], index: 8, kind: input, shape index: {}]   ;;  %s2420_s9 = inlined_call_operand.hbm [shape: bf16[32,32], index: 9, kind: input, shape index: {}]   ;;  %s2421_s10 = inlined_call_operand.hbm [shape: f32[1,32], index: 10, kind: input, shape index: {}]   ;;  %s2422_s11 = inlined_call_operand.hbm [shape: bf16[32,32], index: 11, kind: input, shape index: {}]   ;;  %s2423_s12 = inlined_call_operand.hbm [shape: f32[1,32], index: 12, kind: input, shape index: {}]   ;;  %s2424_s13 = inlined_call_operand.vmem [shape: f32[2,8,32], index: 13, kind: output, shape index: {}]  }
   0x1   :  { %2428 = sst [smem:[#allocation27_spill]] %s2413_s2 }
   0x2   :  { %2429 = sst [smem:[#allocation28_spill]] %s2414_s3 }
   0x3   :  { %2430 = sst [smem:[#allocation29_spill]] %s2415_s4 }
   0x4   :  { %2431 = sst [smem:[#allocation30_spill]] %s2416_s5 }
   0x5   :  { %2432 = sst [smem:[#allocation31_spill]] %s2417_s6 }
   0x6   :  { %2433 = sst [smem:[#allocation32_spill]] %s2418_s7 }
   0x7   :  { %2434 = sst [smem:[#allocation33_spill]] %s2419_s8 }
   0x8   :  { %2435 = sst [smem:[#allocation34_spill]] %s2420_s9 }
   0x9   :  { %2436 = sst [smem:[#allocation35_spill]] %s2421_s10 }
   0xa   :  { %2437 = sst [smem:[#allocation36_spill]] %s2424_s13 }
   0xb   :  { %18 = vsyncpa [#allocation3], 0 }
   0xc   :  { %20 = vsyncpa [#allocation3 + $0x1], 0 }
   0xd   :  { %21 = vsyncpa [#allocation5], 0 }
   0xe   :  { %23 = vsyncpa [#allocation5 + $0x1], 0 }
   0xf   :  { %24 = vsyncpa [#allocation8], 0 }
  0x10   :  { %25 = vsyncpa [#allocation11], 0 }
  0x11   :  { %26 = vsyncpa [#allocation14], 0 }
  0x12   :  { %27 = vsyncpa [#allocation17], 0  ;;  %s2141_s25 = smov 0   ;;  %s2143_s26 = smov 0  }
  0x13   :  { %s2145_s27 = smov 0   ;;  %s2147_s28 = smov 0  }
  0x14   :  { %s2149_s29 = smov 0   ;;  %s2151_s30 = smov 0  }
  0x15 LB: > { %2438 = sst [smem:[#allocation26_spill]] %s2041_s28  ;;  %s2425_s14 = sadd.s32 4294967295, %s2049_s30   ;;  %s2049_s30 = sphi %s2151_s30, %s33_s30   ;;  %s2045_s29 = sphi %s2149_s29, %s2460_s29   ;;  %s2041_s28 = sphi %s2147_s28, %s2459_s28   ;;  %s2037_s27 = sphi %s2145_s27, %s2458_s27   ;;  %s2033_s26 = sphi %s2143_s26, %s2457_s26   ;;  %s2029_s25 = sphi %s2141_s25, %s2456_s25  }
  0x16   : > { %p1366_p0 = scmp.ge.s32.totalorder %s2049_s30, 1  ;;  %p2175_p1 = scmp.eq.s32.totalorder %s2425_s14, 0 }
  0x17   : > { %p370_p2 = scmp.lt.s32.totalorder %s2049_s30, 3  ;;  %s2440_s3 = sld [smem:[#allocation28_spill]] }
  0x18   : > { %s2051_s20 = smov [#allocation6]   ;;  %s2442_s4 = sld [smem:[#allocation29_spill]] }
  0x19   : > { %p2183_p3 = pnand %p1366_p0, %p370_p2  ;;  %s384_s21 = sshll.u32 %s2051_s20, 4  ;;  %s385_s21 = int_to_ptr.vmem [resolvable:$true] %s384_s21 }
  0x1a   : > { %s2444_s7 = sld [smem:[#allocation32_spill]]  ;;  %s2052_s13 = smov [#allocation7]  }
  0x1b   : > { %p1489_p4 = pneg %p2183_p3  ;;  %s396_s20 = sshll.u32 %s2052_s13, 4  ;;  %s397_s20 = int_to_ptr.vmem [resolvable:$true] %s396_s20 }
  0x1c   : > { %s2053_s22 = smov [#allocation10]   ;;  %s2445_s9 = sld [smem:[#allocation34_spill]] }
  0x1d   : > { %s382_s18 = sshll.u32 %s2440_s3, 4  ;;  %p2194_p5 = pnand %p1489_p4, %p2175_p1  ;;  %s383_s18 = int_to_ptr.hbm [resolvable:$true] %s382_s18 }
  0x1e   : > { %s394_s24 = sshll.u32 %s2442_s4, 4  ;;  %s422_s23 = sshll.u32 %s2053_s22, 4  ;;  %s395_s24 = int_to_ptr.hbm [resolvable:$true] %s394_s24  ;;  %s423_s23 = int_to_ptr.vmem [resolvable:$true] %s422_s23 }
  0x1f   : > { %1492 = dma.hbm_to_vmem [thread:$0]  (!%p2194_p5), %s383_s18, 16, %s385_s21, [#allocation5]  }
  0x20   : > { %s420_s3 = sshll.u32 %s2444_s7, 4  ;;  %s2054_s5 = smov 64   ;;  %s421_s3 = int_to_ptr.hbm [resolvable:$true] %s420_s3 }
  0x21   : > { %1495 = dma.hbm_to_vmem [thread:$0]  (!%p2194_p5), %s395_s24, 16, %s397_s20, [#allocation8]  }
  0x22   : > { %s446_s28 = sshll.u32 %s2445_s9, 4  ;;  %s2055_s16 = smov 4   ;;  %s447_s28 = int_to_ptr.hbm [resolvable:$true] %s446_s28 }
  0x23   : > { %1501 = dma.hbm_to_vmem [thread:$0]  (!%p2194_p5), %s421_s3, 256, %s423_s23, [#allocation11], %s2054_s5, %s2054_s5, %s2055_s16  }
  0x24   : > { %s2056_s13 = smov [#allocation13]   ;;  %s472_s24 = sshll.u32 %s2422_s11, 4  ;;  %s473_s24 = int_to_ptr.hbm [resolvable:$true] %s472_s24 }
  0x25   : > { %s448_s18 = sshll.u32 %s2056_s13, 4  ;;  %s2446_s6 = sld [smem:[#allocation31_spill]]  ;;  %s449_s18 = int_to_ptr.vmem [resolvable:$true] %s448_s18 }
  0x26   : > { %1507 = dma.hbm_to_vmem [thread:$0]  (!%p2194_p5), %s447_s28, 256, %s449_s18, [#allocation14], %s2054_s5, %s2054_s5, %s2055_s16  }
  0x27   : > { %s2057_s22 = smov [#allocation16]   ;;  %s2058_s3 = smov [#allocation9]  }
  0x28   : > { %s474_s7 = sshll.u32 %s2057_s22, 4  ;;  %s411_s23 = sshll.u32 %s2058_s3, 4  ;;  %s475_s7 = int_to_ptr.vmem [resolvable:$true] %s474_s7  ;;  %s412_s23 = int_to_ptr.vmem [resolvable:$true] %s411_s23 }
  0x29   : > { %1513 = dma.hbm_to_vmem [thread:$0]  (!%p2194_p5), %s473_s24, 256, %s475_s7, [#allocation17], %s2054_s5, %s2054_s5, %s2055_s16  }
  0x2a   : > { %s2447_s8 = sld [smem:[#allocation33_spill]]  ;;  %s2059_s2 = smov [#allocation12]  }
  0x2b   : > { %s409_s4 = sshll.u32 %s2446_s6, 4  ;;  %s2448_s10 = sld [smem:[#allocation35_spill]]  ;;  %s410_s4 = int_to_ptr.hbm [resolvable:$true] %s409_s4 }
  0x2c   : > { %1498 = dma.hbm_to_vmem [thread:$0]  (!%p2194_p5), %s410_s4, 16, %s412_s23, [#allocation8]  }
  0x2d   : > { %s437_s22 = sshll.u32 %s2059_s2, 4  ;;  %s2060_s5 = smov [#allocation15]   ;;  %s438_s22 = int_to_ptr.vmem [resolvable:$true] %s437_s22 }
  0x2e   : > { %s463_s7 = sshll.u32 %s2060_s5, 4  ;;  %s487_s4 = sshll.u32 %s2423_s12, 4  ;;  %s464_s7 = int_to_ptr.vmem [resolvable:$true] %s463_s7  ;;  %s488_s4 = int_to_ptr.hbm [resolvable:$true] %s487_s4 }
  0x2f   : > { %s2061_s3 = smov [#allocation18]   ;;  %s45_s13 = sadd.s32 1, %s2045_s29 }
  0x30   : > { %s435_s17 = sshll.u32 %s2447_s8, 4  ;;  %s489_s23 = sshll.u32 %s2061_s3, 4  ;;  %s436_s17 = int_to_ptr.hbm [resolvable:$true] %s435_s17  ;;  %s490_s23 = int_to_ptr.vmem [resolvable:$true] %s489_s23 }
  0x31   : > { %s461_s20 = sshll.u32 %s2448_s10, 4  ;;  %p47_p6 = scmp.ge.s32.totalorder %s45_s13, 2  ;;  %s462_s20 = int_to_ptr.hbm [resolvable:$true] %s461_s20 }
  0x32   : > { %1504 = dma.hbm_to_vmem [thread:$0]  (!%p2194_p5), %s436_s17, 16, %s438_s22, [#allocation11]  }
  0x33   : > { %1510 = dma.hbm_to_vmem [thread:$0]  (!%p2194_p5), %s462_s20, 16, %s464_s7, [#allocation14]  }
  0x34   : > { %1516 = dma.hbm_to_vmem [thread:$0]  (!%p2194_p5), %s488_s4, 16, %s490_s23, [#allocation17]  }
  0x35   : > { %s54_s21 = sadd.s32 1, %s2037_s27  ;;  %p61_p7 = scmp.ne.s32.totalorder %s2037_s27, %s2033_s26 }
  0x36   : > { %p62_p8 = scmp.eq.s32.totalorder %s2049_s30, 0  ;;  %s2462_s13 = smov (%p47_p6, %s45_s13), 0 }
  0x37   : > { %p67_p10 = scmp.ne.s32.totalorder %s2033_s26, %s2029_s25  ;;  %s49_s28 = ssub.s32 %s2045_s29, %s2462_s13 }
  0x38   : > { %p2244_p9 = por %p62_p8, %p61_p7  ;;  %p1533_p11 = scmp.lt.s32.totalorder %s2049_s30, 2 }
  0x39   : > { %p52_p12 = scmp.eq.s32.totalorder %s49_s28, 0  ;;  %p2255_p13 = por %p2175_p1, %p67_p10 }
  0x3a   : > { %s500_s18 = sand.u32 1, %s2037_s27   ;;  %s1378_s20 = sshll.u32 %s2045_s29, 3 }
  0x3b   : > { %s2262_s2 = scalar_select %p52_p12, %s2037_s27, %s54_s21  }
  0x3c   : > { %s1377_s22 = sshll.u32 %s500_s18, 3  ;;  %s509_s16 = scalar_lea.hbm %s2411_s0, %s1378_s20 }
  0x3d   : > { %s511_s24 = sshll.u32 %s509_s16, 4  ;;  %s504_s25 = scalar_lea.vmem [#allocation2], %s1377_s22  ;;  %s512_s24 = int_to_ptr.hbm [resolvable:$true] %s511_s24 }
  0x3e   : > { %s513_s4 = sshll.u32 %s504_s25, 4  ;;  %p1518_p0 = pnand %p1533_p11, %p2244_p9  ;;  %s514_s4 = int_to_ptr.vmem [resolvable:$true] %s513_s4 }
  0x3f   : > { %s528_s28 = scalar_lea.hbm %s2412_s1, %s1378_s20  ;;  %s520_s6 = sand.u32 1, %s2049_s30  }
  0x40   : > { %s501_s21 = scalar_lea.sflag [#allocation3], %s500_s18  ;;  %s530_s8 = sshll.u32 %s528_s28, 4  ;;  %s531_s8 = int_to_ptr.hbm [resolvable:$true] %s530_s8 }
  0x41   : > { %1520 = dma.hbm_to_vmem [thread:$0]  (!%p1518_p0), %s512_s24, 128, %s514_s4, %s501_s21  }
  0x42   : > { %s524_s9 = scalar_lea.vmem [#allocation4], %s1377_s22  ;;  %s521_s5 = scalar_lea.sflag [#allocation5], %s520_s6 }
  0x43   : > { %s532_s10 = sshll.u32 %s524_s9, 4  ;;  %551 = sbr.rel (%p2183_p3) target bundleno = 1406 (0x57e), region = 72  ;;  %s533_s10 = int_to_ptr.vmem [resolvable:$true] %s532_s10 }
  0x44   : > { %1523 = dma.hbm_to_vmem [thread:$0]  (!%p1518_p0), %s531_s8, 128, %s533_s10, %s521_s5  }
  0x45   : > { %s553_s17 = sand.u32 (!%p2183_p3), 1, %s2033_s26  }
  0x46   : > { %s1382_s7 = sshll.u32 (!%p2183_p3), %s553_s17, 3  ;;  %s554_s16 = scalar_lea.sflag (!%p2183_p3), [#allocation3], %s553_s17 }
  0x47   : > { %s557_s25 = scalar_lea.vmem (!%p2183_p3), [#allocation2], %s1382_s7 }
  0x48   : > { %2000 = dma.done.wait (%p2255_p13), %s554_s16, 128  }
  0x49   : > { %2002 = vsyncadd (%p2255_p13), %s554_s16, 4294967168  ;;  %s2451_s9 = sadd.s32 4294967295, %s2049_s30   ;;  %s567_s8 = scalar_lea.vmem [#allocation4], %s1382_s7 }
  0x4a   : > { %s563_s18 = sand.u32 1, %s2451_s9  }
  0x4b   : > { %s564_s6 = scalar_lea.sflag [#allocation5], %s563_s18 }
  0x4c   : > { %2004 = dma.done.wait (%p2255_p13), %s564_s6, 128  }
  0x4d   : > { %2006 = vsyncadd (%p2255_p13), %s564_s6, 4294967168 }
  0x4e   : > { %2008 = dma.done.wait (%p2175_p1), [#allocation5], 16  }
  0x4f   : > { %2010 = vsyncadd (%p2175_p1), [#allocation5], 4294967280 }
  0x50   : > { %2012 = dma.done.wait (%p2175_p1), [#allocation8], 32  }
  0x51   : > { %2014 = vsyncadd (%p2175_p1), [#allocation8], 4294967264 }
  0x52   : > { %2016 = dma.done.wait (%p2175_p1), [#allocation11], 272  }
  0x53   : > { %2018 = vsyncadd (%p2175_p1), [#allocation11], 4294967024 }
  0x54   : > { %2020 = dma.done.wait (%p2175_p1), [#allocation14], 272  }
  0x55   : > { %2022 = vsyncadd (%p2175_p1), [#allocation14], 4294967024 }
  0x56   : > { %2024 = dma.done.wait (%p2175_p1), [#allocation17], 272  }
  0x57   : > { %2026 = vsyncadd (%p2175_p1), [#allocation17], 4294967024  ;;  %vm688_vm0 = vcmask 261120   ;;  %v736_v0 = vld [vmem:[%s567_s8] sm:$0xff]  ;;  %v2309_v2 = vld [vmem:[%s557_s25] sm:$0xff]  ;;  %v2062_v4 = vmov 32.0  }
  0x58   : > { %v737_v1 = vsel %vm688_vm0, %v736_v0, 0.0  ;;  %v689_v3 = vsel %vm688_vm0, %v2309_v2, 0.0  ;;  %1617 = vrcp.f32 %v2062_v4  ;;  %v2063_v21 = vmov 31.0   ;;  %v1444_v25 = vld [vmem:[#allocation10 + $0x8] sm:$0xff]  ;;  %v1446_v26 = vld [vmem:[#allocation13 + $0x8] sm:$0xff]  ;;  %v1445_v28 = vld [vmem:[#allocation13] sm:$0xff] }
  0x59   : > { %738 = vadd.xlane.f32.xlu0 %v737_v1  ;;  %1619 = vrcp.f32 %v2063_v21  ;;  %835 = vmatpush.bf16.msra.mxu1 %v1444_v25  ;;  %v1443_v27 = vld [vmem:[#allocation10] sm:$0xff]  ;;  %s2452_s19 = sld [smem:[#allocation30_spill]]  ;;  %v1611_v55 = vld [vmem:[#allocation6] ss:$0 sm:$0xff]  ;;  %v1612_v60 = vld [vmem:[#allocation7] ss:$0 sm:$0xff] }
  0x5a   : > { %868 = vmatpush.bf16.msra.mxu2 %v1446_v26  ;;  %vm878_vm7 = vcmask 64512   ;;  %s2064_s22 = smov 120   ;;  %s2065_s24 = smov 112   ;;  %vm913_vm8 = vcmask 1043456   ;;  %vm1114_vm10 = vcmask 130048   ;;  %vm1116_vm11 = vcmask 195584  }
  0x5b   : > { %s2066_s4 = smov 104   ;;  %s2453_s3 = sld [smem:[#allocation26_spill]] }
  0x5c   : > { %s2454_s5 = sld [smem:[#allocation27_spill]]  ;;  %s2068_s7 = smov 8  }
  0x5d   : > { %836 = vmatpush.bf16.msra.mxu1 %v1443_v27  ;;  %s2069_s16 = smov 16   ;;  %s2070_s25 = smov 24  }
  0x5e   : > { %v1618_v5 = vpop.eup %1617  ;;  %869 = vmatpush.bf16.msra.mxu2 %v1445_v28  ;;  %s2455_s6 = sld [smem:[#allocation36_spill]] }
  0x5f   : > { %v693_v6 = vmul.f32 32.0, %v1618_v5  ;;  %vm697_vm1 = vweird.f32 %v1618_v5  ;;  %v1620_v22 = vpop.eup %1619  ;;  %v1442_v34 = vld [vmem:[%s2452_s19 + $0x8] sm:$0xff]  ;;  %v1441_v36 = vld [vmem:[%s2452_s19] sm:$0xff] }
  0x60   : > { %v706_v23 = vmul.f32 31.0, %v1620_v22  ;;  %vm710_vm2 = vweird.f32 %v1620_v22  ;;  %798 = vmatpush.bf16.msra.mxu0 %v1442_v34 }
  0x61   : > { %690 = vadd.xlane.f32.xlu0 %v689_v3  ;;  %v694_v7 = vsub.f32 1.0, %v693_v6  ;;  %p670_p1 = scmp.lt.s32.totalorder %s2453_s3, 1 }
  0x62   : > { %v707_v24 = vsub.f32 1.0, %v706_v23 }
  0x63   : > { %v695_v8 = vmul.f32 %v1618_v5, %v694_v7  ;;  %s2464_s3 = smov (!%p670_p1, %s2453_s3), 1 }
  0x64   : > { %v708_v29 = vmul.f32 %v1620_v22, %v707_v24  ;;  %799 = vmatpush.bf16.msra.mxu0 %v1441_v36  ;;  %s1393_s23 = sshll.u32 %s2464_s3, 3 }
  0x65   : > { %v696_v9 = vadd.f32 %v1618_v5, %v695_v8  ;;  %s676_s17 = scalar_lea.vmem %s2454_s5, %s1393_s23  ;;  %s683_s8 = scalar_lea.vmem %s2455_s6, %s1393_s23 }
  0x66   : > { %v709_v30 = vadd.f32 %v1620_v22, %v708_v29  ;;  %v764_v36 = vld [vmem:[%s676_s17] sm:$0xff] }
  0x67   : > { %v698_v10 = vsel %vm697_vm1, %v1618_v5, %v696_v9  ;;  %v1613_v9 = vld [vmem:[#allocation12] ss:$0 sm:$0xff]  ;;  %vm765_vm9 = vcmp.eq.f32.partialorder %v764_v36, 0.0 }
  0x68   : > { %v711_v31 = vsel %vm710_vm2, %v1620_v22, %v709_v30 }
  0xcc   : > { %v739_v11 = vpop.xlane.xlu0 %738 }
  0xcd   : > { %v740_v12 = vmul.f32 %v739_v11, %v698_v10 }
  0xcf   : > { %v2313_v13 = vsub.f32 %v736_v0, %v740_v12 }
  0xd1   : > { %v742_v14 = vmul.f32 %v2313_v13, %v2313_v13  ;;  %v761_v59 = vmul.f32 %v1611_v55, %v2313_v13  ;;  %v1614_v13 = vld [vmem:[#allocation15] ss:$0 sm:$0xff] }
  0xd3   : > { %v743_v15 = vsel %vm688_vm0, %v742_v14, 0.0 }
  0xd4   : > { %744 = vadd.xlane.f32.xlu1 %v743_v15  ;;  %v691_v16 = vpop.xlane.xlu0 %690  ;;  %v1615_v15 = vld [vmem:[#allocation9] ss:$0 sm:$0xff] }
  0xd5   : > { %v699_v17 = vmul.f32 %v698_v10, %v691_v16 }
  0xd7   : > { %v2319_v18 = vsub.f32 %v2309_v2, %v699_v17 }
  0xd9   : > { %v701_v19 = vmul.f32 %v2319_v18, %v2319_v18  ;;  %v730_v4 = vmul.f32 %v1611_v55, %v2319_v18 }
  0xdb   : > { %v702_v20 = vsel %vm688_vm0, %v701_v19, 0.0 }
  0xdc   : > { %703 = vadd.xlane.f32.xlu1 %v702_v20 }
 0x147   : > { %v745_v32 = vpop.xlane.xlu1 %744 }
 0x148   : > { %v746_v33 = vmul.f32 %v745_v32, %v711_v31 }
 0x14a   : > { %1621 = vrsqrt.f32 %v746_v33  ;;  %vm754_vm3 = vcmp.eq.f32.partialorder %v746_v33, inf  ;;  %v757_v48 = vand.u32 2147483648, %v746_v33  ;;  %vm756_vm4 = vcmp.eq.f32.partialorder %v746_v33, 0.0 }
 0x14f   : > { %v704_v35 = vpop.xlane.xlu1 %703 }
 0x150   : > { %v1622_v37 = vpop.eup %1621  ;;  %v712_v38 = vmul.f32 %v711_v31, %v704_v35 }
 0x151   : > { %v748_v39 = vmul.f32 %v1622_v37, %v746_v33 }
 0x152   : > { %1623 = vrsqrt.f32 %v712_v38  ;;  %vm720_vm5 = vcmp.eq.f32.partialorder %v712_v38, inf  ;;  %v723_v57 = vand.u32 2147483648, %v712_v38  ;;  %vm722_vm6 = vcmp.eq.f32.partialorder %v712_v38, 0.0 }
 0x153   : > { %v749_v40 = vmul.f32 %v1622_v37, %v748_v39 }
 0x155   : > { %v750_v41 = vmul.f32 0.5, %v749_v40 }
 0x157   : > { %v751_v42 = vsub.f32 1.5, %v750_v41 }
 0x158   : > { %v1624_v43 = vpop.eup %1623 }
 0x159   : > { %v714_v44 = vmul.f32 %v1624_v43, %v712_v38  ;;  %v752_v45 = vmul.f32 %v1622_v37, %v751_v42  ;;  %v2067_v37 = vmov 0.0  }
 0x15b   : > { %v753_v46 = vmul.f32 %v752_v45, %v746_v33  ;;  %v715_v47 = vmul.f32 %v1624_v43, %v714_v44 }
 0x15d   : > { %v755_v49 = vsel %vm754_vm3, %v746_v33, %v753_v46  ;;  %v716_v50 = vmul.f32 0.5, %v715_v47 }
 0x15e   : > { %v758_v51 = vsel %vm756_vm4, %v757_v48, %v755_v49 }
 0x15f   : > { %v759_v52 = vadd.f32 1e-06, %v758_v51  ;;  %v717_v53 = vsub.f32 1.5, %v716_v50 }
 0x161   : > { %1625 = vrcp.f32 %v759_v52  ;;  %v718_v54 = vmul.f32 %v1624_v43, %v717_v53 }
 0x163   : > { %v719_v56 = vmul.f32 %v718_v54, %v712_v38 }
 0x165   : > { %v721_v58 = vsel %vm720_vm5, %v712_v38, %v719_v56  ;;  %v766_v38 = vsel %vm765_vm9, -1e+09, %v2067_v37 }
 0x166   : > { %v724_v61 = vsel %vm722_vm6, %v723_v57, %v721_v58 }
 0x167   : > { %v1626_v62 = vpop.eup %1625  ;;  %v725_v63 = vadd.f32 1e-06, %v724_v61 }
 0x168   : > { %v762_v0 = vmul.f32 %v1626_v62, %v761_v59 }
 0x169   : > { %1627 = vrcp.f32 %v725_v63 }
 0x16a   : > { %v763_v1 = vadd.f32 %v1612_v60, %v762_v0 }
 0x16c   : > { %v768_v3 = vpack.c.bf16 %v763_v1, %v763_v1 }
 0x16e   : > { %1412 = vmatmul.msk.bf16.vlgmr.msra.gmra.mxu1 %vm688_vm0, %v768_v3  ;;  %1421 = vmatmul.msk.bf16.vlgmr.msra.gmra.mxu2 %vm688_vm0, %v768_v3 }
 0x16f   : > { %v1628_v5 = vpop.eup %1627 }
 0x170   : > { %v731_v6 = vmul.f32 %v1628_v5, %v730_v4 }
 0x172   : > { %v735_v7 = vadd.f32 %v1612_v60, %v731_v6 }
 0x174   : > { %v767_v8 = vpack.c.bf16 %v735_v7, %v735_v7 }
 0x176   : > { %1403 = vmatmul.msk.bf16.vlgmr.msra.gmra.mxu0 %vm688_vm0, %v767_v8 }
 0x1eb   : > { %v838_v10 = vpop.f32.mrf.mxu1 }
 0x1ec   : > { %v839_v11 = vadd.f32 %v1613_v9, %v838_v10 }
 0x1ee   : > { %v876_v12 = vpack.c.bf16 %v839_v11, %v839_v11 }
 0x1f0   : > { %934 = vrot.lane.b32.xlu2 %v876_v12, %s2064_s22  ;;  %991 = vrot.lane.b32.xlu0 %v876_v12, %s2065_s24  ;;  %v883_v14 = vsel %vm878_vm7, %v876_v12, 0 }
 0x1f1   : > { %1047 = vrot.lane.b32.xlu1 %v876_v12, %s2066_s4  ;;  %v871_v16 = vpop.f32.mrf.mxu2  ;;  %892 = vmatpush.bf16.xpose.msra.mxu3 %v883_v14 }
 0x1f2   : > { %v872_v17 = vadd.f32 %v1614_v13, %v871_v16 }
 0x1f3   : > { %v801_v18 = vpop.f32.mrf.mxu0  ;;  %v840_v19 = vpop.f32.mrf.mxu1 }
 0x1f4   : > { %v2339_v20 = vpack.c.bf16 %v872_v17, %v872_v17  ;;  %v802_v21 = vadd.f32 %v1615_v15, %v801_v18 }
 0x1f6   : > { %v805_v22 = vmul.f32 0.35355338, %v802_v21  ;;  %v915_v23 = vsel %vm913_vm8, %v2339_v20, 0 }
 0x1f7   : > { %924 = vmatpush.bf16.msrb.mxu0 %v915_v23 }
 0x1f8   : > { %v875_v24 = vpack.c.bf16 %v805_v22, %v805_v22 }
 0x1f9   : > { %v873_v25 = vpop.f32.mrf.mxu2 }
 0x1fa   : > { %931 = vrot.lane.b32.xlu2 %v875_v24, %s2064_s22  ;;  %1422 = vmatmul.msk.bf16.vlgmr.msra.gmra.mxu3 %vm878_vm7, %v875_v24 }
 0x1fb   : > { %v803_v26 = vpop.f32.mrf.mxu0 }
 0x202   : > { %989 = vrot.lane.b32.xlu2 %v875_v24, %s2065_s24 }
 0x20a   : > { %1045 = vrot.lane.b32.xlu2 %v875_v24, %s2066_s4 }
 0x24a   : > { %v935_v27 = vpop.permute.xlu2 %934 }
 0x24b   : > { %v940_v28 = vsel %vm878_vm7, %v935_v27, 0 }
 0x24c   : > { %949 = vmatpush.bf16.xpose.msrb.mxu1 %v940_v28 }
 0x254   : > { %v932_v29 = vpop.permute.xlu2 %931 }
 0x255   : > { %1424 = vmatmul.msk.bf16.vlgmr.msrb.gmra.mxu1 %vm878_vm7, %v932_v29 }
 0x25c   : > { %v990_v30 = vpop.permute.xlu2 %989 }
 0x262   : > { %v992_v31 = vpop.permute.xlu0 %991 }
 0x263   : > { %v1048_v32 = vpop.permute.xlu1 %1047  ;;  %v997_v33 = vsel %vm878_vm7, %v992_v31, 0 }
 0x264   : > { %v1053_v34 = vsel %vm878_vm7, %v1048_v32, 0  ;;  %1006 = vmatpush.bf16.xpose.msrb.mxu3 %v997_v33  ;;  %v1046_v35 = vpop.permute.xlu2 %1045 }
 0x265   : > { %1062 = vmatpush.bf16.xpose.msra.mxu1 %v1053_v34 }
 0x26b   : > { %1426 = vmatmul.msk.bf16.vlgmr.msrb.gmra.mxu3 %vm878_vm7, %v990_v30 }
 0x26c   : > { %1428 = vmatmul.msk.bf16.vlgmr.msra.gmra.mxu1 %vm878_vm7, %v1046_v35 }
 0x27d   : > { %v894_v39 = vpop.f32.mrf.mxu3 }
 0x27e   : > { %v895_v40 = vadd.f32 %v894_v39, %v766_v38 }
 0x280   : > { %v898_v41 = vsel %vm878_vm7, %v895_v40, -inf }
 0x281   : > { %899 = vmax.xlane.f32.xlu0 %v898_v41 }
 0x285   : > { %v896_v42 = vpop.f32.mrf.mxu3 }
 0x286   : > { %v1448_v42 = vld [vmem:[#allocation16 + $0x8] sm:$0xff] }
 0x287   : > { %1148 = vmatpush.bf16.msra.mxu3 %v1448_v42 }
 0x2d2   : > { %v951_v43 = vpop.f32.mrf.mxu1 }
 0x2d3   : > { %v952_v44 = vadd.f32 %v951_v43, %v766_v38  ;;  %v1447_v43 = vld [vmem:[#allocation16] sm:$0xff] }
 0x2d4   : > { %1149 = vmatpush.bf16.msra.mxu3 %v1447_v43 }
 0x2d5   : > { %v955_v45 = vsel %vm878_vm7, %v952_v44, -inf }
 0x2d6   : > { %956 = vmax.xlane.f32.xlu2 %v955_v45 }
 0x2da   : > { %v953_v46 = vpop.f32.mrf.mxu1 }
 0x2e9   : > { %v1064_v47 = vpop.f32.mrf.mxu1 }
 0x2ea   : > { %v1065_v48 = vadd.f32 %v1064_v47, %v766_v38 }
 0x2ec   : > { %v1068_v49 = vsel %vm878_vm7, %v1065_v48, -inf }
 0x2ed   : > { %1069 = vmax.xlane.f32.xlu1 %v1068_v49 }
 0x2ee   : > { %v1008_v50 = vpop.f32.mrf.mxu3 }
 0x2ef   : > { %v1009_v51 = vadd.f32 %v1008_v50, %v766_v38 }
 0x2f1   : > { %v1066_v52 = vpop.f32.mrf.mxu1  ;;  %v1012_v53 = vsel %vm878_vm7, %v1009_v51, -inf }
 0x2f2   : > { %1013 = vmax.xlane.f32.xlu2 %v1012_v53 }
 0x2f4   : > { %v900_v54 = vpop.xlane.xlu0 %899 }
 0x2f5   : > { %v901_v55 = vsub.f32 %v895_v40, %v900_v54 }
 0x2f6   : > { %v1010_v56 = vpop.f32.mrf.mxu3 }
 0x2f7   : > { %v902_v57 = vmul.f32 1.442695, %v901_v55 }
 0x2f9   : > { %1629 = vpow2.f32 %v902_v57 }
 0x2ff   : > { %v1630_v58 = vpop.eup %1629 }
 0x300   : > { %v904_v59 = vsel %vm878_vm7, %v1630_v58, 0.0 }
 0x301   : > { %905 = vadd.xlane.f32.xlu2 %v904_v59 }
 0x306   : > { %968 = vrot.lane.b32.xlu1 %v2339_v20, %s2064_s22 }
 0x349   : > { %v957_v60 = vpop.xlane.xlu2 %956 }
 0x34a   : > { %v958_v61 = vsub.f32 %v952_v44, %v957_v60 }
 0x34c   : > { %v959_v62 = vmul.f32 1.442695, %v958_v61 }
 0x34e   : > { %1631 = vpow2.f32 %v959_v62 }
 0x354   : > { %v1632_v63 = vpop.eup %1631 }
 0x355   : > { %v961_v0 = vsel %vm878_vm7, %v1632_v63, 0.0 }
 0x356   : > { %962 = vadd.xlane.f32.xlu0 %v961_v0 }
 0x360   : > { %v1070_v1 = vpop.xlane.xlu1 %1069 }
 0x361   : > { %v1071_v3 = vsub.f32 %v1065_v48, %v1070_v1 }
 0x363   : > { %v1072_v4 = vmul.f32 1.442695, %v1071_v3 }
 0x365   : > { %1633 = vpow2.f32 %v1072_v4  ;;  %v1014_v5 = vpop.xlane.xlu2 %1013 }
 0x366   : > { %v1015_v6 = vsub.f32 %v1009_v51, %v1014_v5  ;;  %v1616_v51 = vld [vmem:[#allocation18] ss:$0 sm:$0xff] }
 0x368   : > { %v1016_v7 = vmul.f32 1.442695, %v1015_v6 }
 0x36a   : > { %1635 = vpow2.f32 %v1016_v7 }
 0x36b   : > { %v1634_v8 = vpop.eup %1633 }
 0x36c   : > { %v1074_v9 = vsel %vm878_vm7, %v1634_v8, 0.0 }
 0x36d   : > { %1075 = vadd.xlane.f32.xlu0 %v1074_v9 }
 0x370   : > { %v1636_v10 = vpop.eup %1635 }
 0x371   : > { %v1018_v11 = vsel %vm878_vm7, %v1636_v10, 0.0 }
 0x372   : > { %1019 = vadd.xlane.f32.xlu2 %v1018_v11 }
 0x374   : > { %v906_v12 = vpop.xlane.xlu2 %905 }
 0x375   : > { %1637 = vrcp.f32 %v906_v12 }
 0x378   : > { %v969_v13 = vpop.permute.xlu1 %968 }
 0x379   : > { %v974_v14 = vsel %vm913_vm8, %v969_v13, 0 }
 0x37a   : > { %983 = vmatpush.bf16.msrb.mxu2 %v974_v14 }
 0x37b   : > { %v1638_v15 = vpop.eup %1637 }
 0x37c   : > { %v908_v16 = vmul.f32 %v1638_v15, %v1630_v58 }
 0x37e   : > { %v909_v17 = vpack.c.bf16 %v908_v16, %v908_v16 }
 0x380   : > { %1423 = vmatmul.msk.bf16.vlgmr.msrb.gmra.mxu0 %vm878_vm7, %v909_v17 }
 0x381   : > { %1080 = vrot.lane.b32.xlu0 %v2339_v20, %s2066_s4 }
 0x38a   : > { %1024 = vrot.lane.b32.xlu2 %v2339_v20, %s2065_s24 }
 0x3c9   : > { %v963_v18 = vpop.xlane.xlu0 %962 }
 0x3ca   : > { %1639 = vrcp.f32 %v963_v18 }
 0x3d0   : > { %v1640_v19 = vpop.eup %1639 }
 0x3d1   : > { %v965_v21 = vmul.f32 %v1640_v19, %v1632_v63 }
 0x3d3   : > { %v966_v22 = vpack.c.bf16 %v965_v21, %v965_v21 }
 0x3d5   : > { %1425 = vmatmul.msk.bf16.vlgmr.msrb.gmra.mxu2 %vm878_vm7, %v966_v22 }
 0x3e0   : > { %v1076_v24 = vpop.xlane.xlu0 %1075 }
 0x3e5   : > { %v1020_v23 = vpop.xlane.xlu2 %1019 }
 0x3e6   : > { %1641 = vrcp.f32 %v1020_v23 }
 0x3e7   : > { %1643 = vrcp.f32 %v1076_v24 }
 0x3ec   : > { %v1642_v25 = vpop.eup %1641 }
 0x3ed   : > { %v1022_v26 = vmul.f32 %v1642_v25, %v1636_v10  ;;  %v1025_v27 = vpop.permute.xlu2 %1024  ;;  %v1644_v29 = vpop.eup %1643 }
 0x3ee   : > { %v1030_v28 = vsel %vm913_vm8, %v1025_v27, 0  ;;  %v1078_v20 = vmul.f32 %v1644_v29, %v1634_v8 }
 0x3ef   : > { %v1023_v30 = vpack.c.bf16 %v1022_v26, %v1022_v26  ;;  %1039 = vmatpush.bf16.msra.mxu0 %v1030_v28 }
 0x3f0   : > { %v1079_v33 = vpack.c.bf16 %v1078_v20, %v1078_v20 }
 0x3f2   : > { %1427 = vmatmul.msk.bf16.vlgmr.msra.gmra.mxu0 %vm878_vm7, %v1023_v30 }
 0x3f3   : > { %v1081_v31 = vpop.permute.xlu0 %1080 }
 0x3f4   : > { %v1086_v32 = vsel %vm913_vm8, %v1081_v31, 0 }
 0x3f5   : > { %1095 = vmatpush.bf16.msra.mxu2 %v1086_v32 }
 0x3f8   : > { %1429 = vmatmul.msk.bf16.vlgmr.msra.gmra.mxu2 %vm878_vm7, %v1079_v33 }
 0x3fd   : > { %v926_v34 = vpop.f32.mrf.mxu0 }
 0x405   : > { %v928_v35 = vpop.f32.mrf.mxu0 }
 0x458   : > { %v985_v36 = vpop.f32.mrf.mxu2 }
 0x459   : > { %1102 = vrot.lane.b32.xlu1 %v985_v36, %s2068_s7 }
 0x460   : > { %v987_v37 = vpop.f32.mrf.mxu2 }
 0x46f   : > { %v1041_v38 = vpop.f32.mrf.mxu0 }
 0x470   : > { %1106 = vrot.lane.b32.xlu0 %v1041_v38, %s2069_s16 }
 0x477   : > { %v1043_v39 = vpop.f32.mrf.mxu0 }
 0x47b   : > { %v1097_v40 = vpop.f32.mrf.mxu2 }
 0x47c   : > { %1110 = vrot.lane.b32.xlu1 %v1097_v40, %s2070_s25 }
 0x483   : > { %v1099_v41 = vpop.f32.mrf.mxu2 }
 0x4cb   : > { %v1103_v44 = vpop.permute.xlu1 %1102 }
 0x4cc   : > { %v1113_v46 = vsel %vm878_vm7, %v926_v34, %v1103_v44 }
 0x4e2   : > { %v1107_v45 = vpop.permute.xlu0 %1106 }
 0x4e3   : > { %v1115_v47 = vsel %vm1114_vm10, %v1113_v46, %v1107_v45 }
 0x4ee   : > { %v1111_v48 = vpop.permute.xlu1 %1110 }
 0x4ef   : > { %v1117_v49 = vsel %vm1116_vm11, %v1115_v47, %v1111_v48 }
 0x4f0   : > { %v1118_v50 = vpack.c.bf16 %v1117_v49, %v1117_v49 }
 0x4f2   : > { %1438 = vmatmul.msk.bf16.vlgmr.msra.gmra.mxu3 %vm688_vm0, %v1118_v50 }
 0x575   : > { %v1151_v52 = vpop.f32.mrf.mxu3 }
 0x576   : > { %v1152_v53 = vadd.f32 %v1616_v51, %v1151_v52 }
 0x578   : > { %v1155_v54 = vadd.f32 %v1152_v53, %v2309_v2 }
 0x57a   : > { %1156 = vst.msk [vmem:[%s683_s8] sm:$0xff] %vm688_vm0, %v1155_v54 }
 0x57d   : > { %v1153_v55 = vpop.f32.mrf.mxu3 }
 0x57e PF: > { %s33_s30 = sadd.s32 1, %s2049_s30   ;;  %s2456_s25 = smov %s2033_s26 }
 0x57f   : > { %p30_p2 = scmp.ge.s32.totalorder %s33_s30, 4   ;;  %s2457_s26 = smov %s2037_s27 }
 0x580   : > { %s2458_s27 = smov %s2262_s2  ;;  %s2459_s28 = smov %s2045_s29 }
 0x581   : > { %s2460_s29 = smov %s2462_s13  ;;  %32 = sbr.rel (!%p30_p2) target bundleno = 21 (0x15), region = 164 }
 0x586   :  { %1182 = vsyncpa [#allocation3], 1 }
 0x587   :  { %1184 = vsyncpa [#allocation3 + $0x1], 1 }
 0x588   :  { %1185 = vsyncpa [#allocation5], 1 }
 0x589   :  { %1187 = vsyncpa [#allocation5 + $0x1], 1 }
 0x58a   :  { %1188 = vsyncpa [#allocation8], 1 }
 0x58b   :  { %1189 = vsyncpa [#allocation11], 1 }
 0x58c   :  { %1190 = vsyncpa [#allocation14], 1 }
 0x58d   :  { %1191 = vsyncpa [#allocation17], 1 }

// kernel: decoder_forward.9
= control target key start
LH: loop header
LB: loop body
LE: loop exit
PB: predicated region body
PF: predicated region fallthrough
CT: control target
= control target key end

     0   :  { %s2099_s0 = inlined_call_operand.vmem [shape: f32[2,8,32], index: 0, kind: input, shape index: {}, may-alias: {0,1}]   ;;  %s2100_s1 = inlined_call_operand.vmem [shape: f32[2,8,32], index: 1, kind: input, shape index: {}, may-alias: {0,1}]   ;;  %s2101_s2 = inlined_call_operand.vmem [shape: f32[2,8,8], index: 2, kind: input, shape index: {}]   ;;  %s2102_s3 = inlined_call_operand.hbm [shape: f32[1,32], index: 3, kind: input, shape index: {}]   ;;  %s2103_s4 = inlined_call_operand.hbm [shape: f32[1,32], index: 4, kind: input, shape index: {}]   ;;  %s2104_s5 = inlined_call_operand.vmem [shape: bf16[32,32], index: 5, kind: input, shape index: {}]   ;;  %s2105_s6 = inlined_call_operand.hbm [shape: f32[1,32], index: 6, kind: input, shape index: {}]   ;;  %s2106_s7 = inlined_call_operand.hbm [shape: bf16[32,32], index: 7, kind: input, shape index: {}]   ;;  %s2107_s8 = inlined_call_operand.hbm [shape: f32[1,32], index: 8, kind: input, shape index: {}]   ;;  %s2108_s9 = inlined_call_operand.vmem [shape: bf16[32,32], index: 9, kind: input, shape index: {}]   ;;  %s2109_s10 = inlined_call_operand.hbm [shape: f32[1,32], index: 10, kind: input, shape index: {}]   ;;  %s2110_s11 = inlined_call_operand.hbm [shape: bf16[32,32], index: 11, kind: input, shape index: {}]   ;;  %s2111_s12 = inlined_call_operand.hbm [shape: f32[1,32], index: 12, kind: input, shape index: {}]   ;;  %s2112_s13 = inlined_call_operand.vmem [shape: f32[2,8,32], index: 13, kind: output, shape index: {}]  }
   0x1   :  { %2115 = sst [smem:[#allocation20_spill]] %s2103_s4 }
   0x2   :  { %2116 = sst [smem:[#allocation21_spill]] %s2106_s7 }
   0x3   :  { %2117 = sst [smem:[#allocation22_spill]] %s2109_s10 }
   0x4   :  { %18 = vsyncpa [#allocation3], 0 }
   0x5   :  { %19 = vsyncpa [#allocation5], 0 }
   0x6   :  { %20 = vsyncpa [#allocation8], 0 }
   0x7   :  { %21 = vsyncpa [#allocation11], 0 }
   0x8   :  { %22 = vsyncpa [#allocation14], 0  ;;  %s1889_s25 = smov 0   ;;  %s1891_s26 = smov 0  }
   0x9   :  { %s1893_s27 = smov 0  }
   0xa LB: > { %s2118_s4 = sld [smem:[#allocation20_spill]]  ;;  %s1287_s14 = sadd.s32 4294967295, %s1798_s27   ;;  %s1798_s27 = sphi %s1893_s27, %s28_s27   ;;  %s1794_s26 = sphi %s1891_s26, %s2127_s26   ;;  %s1790_s25 = sphi %s1889_s25, %s2126_s25  }
   0xb   : > { %p1289_p0 = scmp.ge.s32.totalorder %s1798_s27, 1  ;;  %p365_p1 = scmp.lt.s32.totalorder %s1798_s27, 3 }
   0xc   : > { %p1910_p2 = scmp.eq.s32.totalorder %s1287_s14, 0  ;;  %s1800_s17 = smov [#allocation4]  }
   0xd   : > { %p1914_p3 = pnand %p1289_p0, %p365_p1  ;;  %s391_s18 = sshll.u32 %s1800_s17, 4  ;;  %s392_s18 = int_to_ptr.vmem [resolvable:$true] %s391_s18 }
   0xe   : > { %s2121_s7 = sld [smem:[#allocation21_spill]]  ;;  %s1801_s23 = smov [#allocation7]  }
   0xf   : > { %p1398_p4 = pneg %p1914_p3  ;;  %s417_s24 = sshll.u32 %s1801_s23, 4  ;;  %s418_s24 = int_to_ptr.vmem [resolvable:$true] %s417_s24 }
  0x10   : > { %s389_s30 = sshll.u32 %s2118_s4, 4  ;;  %s2123_s10 = sld [smem:[#allocation22_spill]]  ;;  %s390_s30 = int_to_ptr.hbm [resolvable:$true] %s389_s30 }
  0x11   : > { %p1925_p5 = pnand %p1910_p2, %p1398_p4  ;;  %s2113_s17 = smov 64  }
  0x12   : > { %s2114_s19 = smov 4   ;;  %s1804_s20 = smov [#allocation10]  }
  0x13   : > { %1404 = dma.hbm_to_vmem [thread:$0]  (!%p1925_p5), %s390_s30, 16, %s392_s18, [#allocation5]  }
  0x14   : > { %s415_s21 = sshll.u32 %s2121_s7, 4  ;;  %s447_s4 = sshll.u32 %s1804_s20, 4  ;;  %s416_s21 = int_to_ptr.hbm [resolvable:$true] %s415_s21  ;;  %s448_s4 = int_to_ptr.vmem [resolvable:$true] %s447_s4 }
  0x15   : > { %1410 = dma.hbm_to_vmem [thread:$0]  (!%p1925_p5), %s416_s21, 256, %s418_s24, [#allocation8], %s2113_s17, %s2113_s17, %s2114_s19  }
  0x16   : > { %s445_s14 = sshll.u32 %s2123_s10, 4  ;;  %s40_s23 = sadd.s32 1, %s1794_s26  ;;  %s446_s14 = int_to_ptr.hbm [resolvable:$true] %s445_s14 }
  0x17   : > { %1416 = dma.hbm_to_vmem [thread:$0]  (!%p1925_p5), %s446_s14, 16, %s448_s4, [#allocation11]  }
  0x18   : > { %s377_s30 = sshll.u32 %s2102_s3, 4  ;;  %p42_p6 = scmp.ge.s32.totalorder %s40_s23, 2  ;;  %s378_s30 = int_to_ptr.hbm [resolvable:$true] %s377_s30 }
  0x19   : > { %s404_s10 = sshll.u32 %s2105_s6, 4  ;;  %s1805_s21 = smov [#allocation2]   ;;  %s405_s10 = int_to_ptr.hbm [resolvable:$true] %s404_s10 }
  0x1a   : > { %s2129_s23 = smov (%p42_p6, %s40_s23), 0  ;;  %s379_s24 = sshll.u32 %s1805_s21, 4  ;;  %s380_s24 = int_to_ptr.vmem [resolvable:$true] %s379_s24 }
  0x1b   : > { %1401 = dma.hbm_to_vmem [thread:$0]  (!%p1925_p5), %s378_s30, 16, %s380_s24, [#allocation3]  }
  0x1c   : > { %s1806_s4 = smov [#allocation6]   ;;  %s430_s28 = sshll.u32 %s2107_s8, 4  ;;  %s431_s28 = int_to_ptr.hbm [resolvable:$true] %s430_s28 }
  0x1d   : > { %s406_s7 = sshll.u32 %s1806_s4, 4  ;;  %s456_s21 = sshll.u32 %s2110_s11, 4  ;;  %s407_s7 = int_to_ptr.vmem [resolvable:$true] %s406_s7  ;;  %s457_s21 = int_to_ptr.hbm [resolvable:$true] %s456_s21 }
  0x1e   : > { %1407 = dma.hbm_to_vmem [thread:$0]  (!%p1925_p5), %s405_s10, 16, %s407_s7, [#allocation5]  }
  0x1f   : > { %s1807_s17 = smov [#allocation9]   ;;  %s1808_s30 = smov [#allocation12]  }
  0x20   : > { %s432_s19 = sshll.u32 %s1807_s17, 4  ;;  %s458_s24 = sshll.u32 %s1808_s30, 4  ;;  %s433_s19 = int_to_ptr.vmem [resolvable:$true] %s432_s19  ;;  %s459_s24 = int_to_ptr.vmem [resolvable:$true] %s458_s24 }
  0x21   : > { %1413 = dma.hbm_to_vmem [thread:$0]  (!%p1925_p5), %s431_s28, 16, %s433_s19, [#allocation8]  }
  0x22   : > { %s471_s20 = sshll.u32 %s2111_s12, 4  ;;  %s2124_s10 = smov 4   ;;  %s472_s20 = int_to_ptr.hbm [resolvable:$true] %s471_s20 }
  0x23   : > { %s2125_s7 = smov 64   ;;  %s1809_s18 = smov [#allocation13]  }
  0x24   : > { %1419 = dma.hbm_to_vmem [thread:$0]  (!%p1925_p5), %s457_s21, 256, %s459_s24, [#allocation11], %s2125_s7, %s2125_s7, %s2124_s10  }
  0x25   : > { %s473_s29 = sshll.u32 %s1809_s18, 4  ;;  %513 = sbr.rel (%p1914_p3) target bundleno = 1375 (0x55f), region = 72  ;;  %s474_s29 = int_to_ptr.vmem [resolvable:$true] %s473_s29 }
  0x26   : > { %1422 = dma.hbm_to_vmem [thread:$0]  (!%p1925_p5), %s472_s20, 16, %s474_s29, [#allocation14]  }
  0x2a   : > { %1769 = dma.done.wait (%p1910_p2), [#allocation3], 16  }
  0x2b   : > { %1771 = vsyncadd (%p1910_p2), [#allocation3], 4294967280 }
  0x2c   : > { %1773 = dma.done.wait (%p1910_p2), [#allocation5], 32  }
  0x2d   : > { %1775 = vsyncadd (%p1910_p2), [#allocation5], 4294967264 }
  0x2e   : > { %1777 = dma.done.wait (%p1910_p2), [#allocation8], 272  }
  0x2f   : > { %1779 = vsyncadd (%p1910_p2), [#allocation8], 4294967024 }
  0x30   : > { %1781 = dma.done.wait (%p1910_p2), [#allocation11], 272  }
  0x31   : > { %1783 = vsyncadd (%p1910_p2), [#allocation11], 4294967024 }
  0x32   : > { %1785 = dma.done.wait (%p1910_p2), [#allocation14], 16  }
  0x33   : > { %1787 = vsyncadd (%p1910_p2), [#allocation14], 4294967280  ;;  %p608_p7 = scmp.lt.s32.totalorder %s1790_s25, 1  ;;  %vm637_vm0 = vcmask 261120   ;;  %v1810_v4 = vmov 32.0   ;;  %v1811_v21 = vmov 31.0  }
  0x34   : > { %1488 = vrcp.f32 %v1810_v4  ;;  %v1361_v25 = vld [vmem:[#allocation7 + $0x8] sm:$0xff]  ;;  %v1360_v27 = vld [vmem:[#allocation7] sm:$0xff]  ;;  %v1482_v55 = vld [vmem:[#allocation2] ss:$0 sm:$0xff]  ;;  %vm827_vm7 = vcmask 64512   ;;  %s1812_s18 = smov 120  }
  0x35   : > { %s2131_s25 = smov (!%p608_p7, %s1790_s25), 1  ;;  %1490 = vrcp.f32 %v1811_v21  ;;  %v1363_v26 = vld [vmem:[%s2108_s9 + $0x8] sm:$0xff]  ;;  %784 = vmatpush.bf16.msra.mxu1 %v1361_v25  ;;  %v1362_v28 = vld [vmem:[%s2108_s9] sm:$0xff]  ;;  %s1813_s29 = smov 112   ;;  %vm862_vm8 = vcmask 1043456   ;;  %vm1063_vm10 = vcmask 130048  }
  0x36   : > { %s1996_s16 = sshll.u32 %s2131_s25, 3  ;;  %817 = vmatpush.bf16.msra.mxu2 %v1363_v26  ;;  %v1359_v34 = vld [vmem:[%s2104_s5 + $0x8] sm:$0xff]  ;;  %v1358_v36 = vld [vmem:[%s2104_s5] sm:$0xff]  ;;  %s1814_s22 = smov 104   ;;  %vm1065_vm11 = vcmask 195584  }
  0x37   : > { %s618_s19 = scalar_lea.vmem %s2100_s1, %s1996_s16  ;;  %s614_s15 = scalar_lea.vmem %s2099_s0, %s1996_s16  ;;  %747 = vmatpush.bf16.msra.mxu0 %v1359_v34  ;;  %v1483_v60 = vld [vmem:[#allocation4] ss:$0 sm:$0xff] }
  0x38   : > { %v685_v0 = vld [vmem:[%s618_s19] sm:$0xff]  ;;  %s625_s28 = scalar_lea.vmem %s2101_s2, %s1996_s16  ;;  %s1816_s21 = smov 8  }
  0x39   : > { %v686_v1 = vsel %vm637_vm0, %v685_v0, 0.0  ;;  %v2007_v2 = vld [vmem:[%s614_s15] sm:$0xff]  ;;  %785 = vmatpush.bf16.msra.mxu1 %v1360_v27  ;;  %s1817_s15 = smov 16   ;;  %s1818_s25 = smov 24  }
  0x3a   : > { %687 = vadd.xlane.f32.xlu0 %v686_v1  ;;  %v638_v3 = vsel %vm637_vm0, %v2007_v2, 0.0  ;;  %v1489_v5 = vpop.eup %1488  ;;  %818 = vmatpush.bf16.msra.mxu2 %v1362_v28  ;;  %s632_s4 = scalar_lea.vmem %s2112_s13, %s1996_s16 }
  0x3b   : > { %v642_v6 = vmul.f32 32.0, %v1489_v5  ;;  %vm646_vm1 = vweird.f32 %v1489_v5  ;;  %v1491_v22 = vpop.eup %1490  ;;  %748 = vmatpush.bf16.msra.mxu0 %v1358_v36  ;;  %v713_v36 = vld [vmem:[%s625_s28] sm:$0xff] }
  0x3c   : > { %v655_v23 = vmul.f32 31.0, %v1491_v22  ;;  %vm659_vm2 = vweird.f32 %v1491_v22  ;;  %vm714_vm9 = vcmp.eq.f32.partialorder %v713_v36, 0.0 }
  0x3d   : > { %v643_v7 = vsub.f32 1.0, %v642_v6 }
  0x3e   : > { %v656_v24 = vsub.f32 1.0, %v655_v23 }
  0x3f   : > { %v644_v8 = vmul.f32 %v1489_v5, %v643_v7 }
  0x40   : > { %v657_v29 = vmul.f32 %v1491_v22, %v656_v24 }
  0x41   : > { %v645_v9 = vadd.f32 %v1489_v5, %v644_v8 }
  0x42   : > { %639 = vadd.xlane.f32.xlu0 %v638_v3  ;;  %v658_v30 = vadd.f32 %v1491_v22, %v657_v29 }
  0x43   : > { %v647_v10 = vsel %vm646_vm1, %v1489_v5, %v645_v9  ;;  %v1484_v9 = vld [vmem:[#allocation9] ss:$0 sm:$0xff] }
  0x44   : > { %v660_v31 = vsel %vm659_vm2, %v1491_v22, %v658_v30 }
  0xad   : > { %v688_v11 = vpop.xlane.xlu0 %687 }
  0xae   : > { %v689_v12 = vmul.f32 %v688_v11, %v647_v10 }
  0xb0   : > { %v2011_v13 = vsub.f32 %v685_v0, %v689_v12 }
  0xb2   : > { %v691_v14 = vmul.f32 %v2011_v13, %v2011_v13  ;;  %v710_v59 = vmul.f32 %v1482_v55, %v2011_v13  ;;  %v1485_v13 = vld [vmem:[#allocation10] ss:$0 sm:$0xff] }
  0xb4   : > { %v692_v15 = vsel %vm637_vm0, %v691_v14, 0.0 }
  0xb5   : > { %693 = vadd.xlane.f32.xlu1 %v692_v15  ;;  %v640_v16 = vpop.xlane.xlu0 %639  ;;  %v1486_v15 = vld [vmem:[#allocation6] ss:$0 sm:$0xff] }
  0xb6   : > { %v648_v17 = vmul.f32 %v647_v10, %v640_v16 }
  0xb8   : > { %v2017_v18 = vsub.f32 %v2007_v2, %v648_v17 }
  0xba   : > { %v650_v19 = vmul.f32 %v2017_v18, %v2017_v18  ;;  %v679_v4 = vmul.f32 %v1482_v55, %v2017_v18 }
  0xbc   : > { %v651_v20 = vsel %vm637_vm0, %v650_v19, 0.0 }
  0xbd   : > { %652 = vadd.xlane.f32.xlu1 %v651_v20 }
 0x128   : > { %v694_v32 = vpop.xlane.xlu1 %693 }
 0x129   : > { %v695_v33 = vmul.f32 %v694_v32, %v660_v31 }
 0x12b   : > { %1492 = vrsqrt.f32 %v695_v33  ;;  %vm703_vm3 = vcmp.eq.f32.partialorder %v695_v33, inf  ;;  %v706_v48 = vand.u32 2147483648, %v695_v33  ;;  %vm705_vm4 = vcmp.eq.f32.partialorder %v695_v33, 0.0 }
 0x130   : > { %v653_v35 = vpop.xlane.xlu1 %652 }
 0x131   : > { %v1493_v37 = vpop.eup %1492  ;;  %v661_v38 = vmul.f32 %v660_v31, %v653_v35 }
 0x132   : > { %v697_v39 = vmul.f32 %v1493_v37, %v695_v33 }
 0x133   : > { %1494 = vrsqrt.f32 %v661_v38  ;;  %vm669_vm5 = vcmp.eq.f32.partialorder %v661_v38, inf  ;;  %v672_v57 = vand.u32 2147483648, %v661_v38  ;;  %vm671_vm6 = vcmp.eq.f32.partialorder %v661_v38, 0.0 }
 0x134   : > { %v698_v40 = vmul.f32 %v1493_v37, %v697_v39 }
 0x136   : > { %v699_v41 = vmul.f32 0.5, %v698_v40 }
 0x138   : > { %v700_v42 = vsub.f32 1.5, %v699_v41 }
 0x139   : > { %v1495_v43 = vpop.eup %1494 }
 0x13a   : > { %v663_v44 = vmul.f32 %v1495_v43, %v661_v38  ;;  %v701_v45 = vmul.f32 %v1493_v37, %v700_v42  ;;  %v1815_v37 = vmov 0.0  }
 0x13c   : > { %v702_v46 = vmul.f32 %v701_v45, %v695_v33  ;;  %v664_v47 = vmul.f32 %v1495_v43, %v663_v44 }
 0x13e   : > { %v704_v49 = vsel %vm703_vm3, %v695_v33, %v702_v46  ;;  %v665_v50 = vmul.f32 0.5, %v664_v47 }
 0x13f   : > { %v707_v51 = vsel %vm705_vm4, %v706_v48, %v704_v49 }
 0x140   : > { %v708_v52 = vadd.f32 1e-06, %v707_v51  ;;  %v666_v53 = vsub.f32 1.5, %v665_v50 }
 0x142   : > { %1496 = vrcp.f32 %v708_v52  ;;  %v667_v54 = vmul.f32 %v1495_v43, %v666_v53 }
 0x144   : > { %v668_v56 = vmul.f32 %v667_v54, %v661_v38 }
 0x146   : > { %v670_v58 = vsel %vm669_vm5, %v661_v38, %v668_v56  ;;  %v715_v38 = vsel %vm714_vm9, -1e+09, %v1815_v37 }
 0x147   : > { %v673_v61 = vsel %vm671_vm6, %v672_v57, %v670_v58 }
 0x148   : > { %v1497_v62 = vpop.eup %1496  ;;  %v674_v63 = vadd.f32 1e-06, %v673_v61 }
 0x149   : > { %v711_v0 = vmul.f32 %v1497_v62, %v710_v59 }
 0x14a   : > { %1498 = vrcp.f32 %v674_v63 }
 0x14b   : > { %v712_v1 = vadd.f32 %v1483_v60, %v711_v0 }
 0x14d   : > { %v717_v3 = vpack.c.bf16 %v712_v1, %v712_v1 }
 0x14f   : > { %1329 = vmatmul.msk.bf16.vlgmr.msra.gmra.mxu1 %vm637_vm0, %v717_v3  ;;  %1338 = vmatmul.msk.bf16.vlgmr.msra.gmra.mxu2 %vm637_vm0, %v717_v3 }
 0x150   : > { %v1499_v5 = vpop.eup %1498 }
 0x151   : > { %v680_v6 = vmul.f32 %v1499_v5, %v679_v4 }
 0x153   : > { %v684_v7 = vadd.f32 %v1483_v60, %v680_v6 }
 0x155   : > { %v716_v8 = vpack.c.bf16 %v684_v7, %v684_v7 }
 0x157   : > { %1320 = vmatmul.msk.bf16.vlgmr.msra.gmra.mxu0 %vm637_vm0, %v716_v8 }
 0x1cc   : > { %v787_v10 = vpop.f32.mrf.mxu1 }
 0x1cd   : > { %v788_v11 = vadd.f32 %v1484_v9, %v787_v10 }
 0x1cf   : > { %v825_v12 = vpack.c.bf16 %v788_v11, %v788_v11 }
 0x1d1   : > { %883 = vrot.lane.b32.xlu2 %v825_v12, %s1812_s18  ;;  %940 = vrot.lane.b32.xlu0 %v825_v12, %s1813_s29  ;;  %v832_v14 = vsel %vm827_vm7, %v825_v12, 0 }
 0x1d2   : > { %996 = vrot.lane.b32.xlu1 %v825_v12, %s1814_s22  ;;  %v820_v16 = vpop.f32.mrf.mxu2  ;;  %841 = vmatpush.bf16.xpose.msra.mxu3 %v832_v14 }
 0x1d3   : > { %v821_v17 = vadd.f32 %v1485_v13, %v820_v16 }
 0x1d4   : > { %v750_v18 = vpop.f32.mrf.mxu0  ;;  %v789_v19 = vpop.f32.mrf.mxu1 }
 0x1d5   : > { %v2043_v20 = vpack.c.bf16 %v821_v17, %v821_v17  ;;  %v751_v21 = vadd.f32 %v1486_v15, %v750_v18 }
 0x1d7   : > { %v754_v22 = vmul.f32 0.35355338, %v751_v21  ;;  %v864_v23 = vsel %vm862_vm8, %v2043_v20, 0 }
 0x1d8   : > { %873 = vmatpush.bf16.msrb.mxu0 %v864_v23 }
 0x1d9   : > { %v824_v24 = vpack.c.bf16 %v754_v22, %v754_v22 }
 0x1da   : > { %v822_v25 = vpop.f32.mrf.mxu2 }
 0x1db   : > { %880 = vrot.lane.b32.xlu2 %v824_v24, %s1812_s18  ;;  %1339 = vmatmul.msk.bf16.vlgmr.msra.gmra.mxu3 %vm827_vm7, %v824_v24 }
 0x1dc   : > { %v752_v26 = vpop.f32.mrf.mxu0 }
 0x1e3   : > { %938 = vrot.lane.b32.xlu2 %v824_v24, %s1813_s29 }
 0x1eb   : > { %994 = vrot.lane.b32.xlu2 %v824_v24, %s1814_s22 }
 0x22b   : > { %v884_v27 = vpop.permute.xlu2 %883 }
 0x22c   : > { %v889_v28 = vsel %vm827_vm7, %v884_v27, 0 }
 0x22d   : > { %898 = vmatpush.bf16.xpose.msrb.mxu1 %v889_v28 }
 0x235   : > { %v881_v29 = vpop.permute.xlu2 %880 }
 0x236   : > { %1341 = vmatmul.msk.bf16.vlgmr.msrb.gmra.mxu1 %vm827_vm7, %v881_v29 }
 0x23d   : > { %v939_v30 = vpop.permute.xlu2 %938 }
 0x243   : > { %v941_v31 = vpop.permute.xlu0 %940 }
 0x244   : > { %v997_v32 = vpop.permute.xlu1 %996  ;;  %v946_v33 = vsel %vm827_vm7, %v941_v31, 0 }
 0x245   : > { %v1002_v34 = vsel %vm827_vm7, %v997_v32, 0  ;;  %955 = vmatpush.bf16.xpose.msrb.mxu3 %v946_v33  ;;  %v995_v35 = vpop.permute.xlu2 %994 }
 0x246   : > { %1011 = vmatpush.bf16.xpose.msra.mxu1 %v1002_v34 }
 0x24c   : > { %1343 = vmatmul.msk.bf16.vlgmr.msrb.gmra.mxu3 %vm827_vm7, %v939_v30 }
 0x24d   : > { %1345 = vmatmul.msk.bf16.vlgmr.msra.gmra.mxu1 %vm827_vm7, %v995_v35 }
 0x25e   : > { %v843_v39 = vpop.f32.mrf.mxu3 }
 0x25f   : > { %v844_v40 = vadd.f32 %v843_v39, %v715_v38 }
 0x261   : > { %v847_v41 = vsel %vm827_vm7, %v844_v40, -inf }
 0x262   : > { %848 = vmax.xlane.f32.xlu0 %v847_v41 }
 0x266   : > { %v845_v42 = vpop.f32.mrf.mxu3 }
 0x267   : > { %v1365_v42 = vld [vmem:[#allocation12 + $0x8] sm:$0xff] }
 0x268   : > { %1097 = vmatpush.bf16.msra.mxu3 %v1365_v42 }
 0x2b3   : > { %v900_v43 = vpop.f32.mrf.mxu1 }
 0x2b4   : > { %v901_v44 = vadd.f32 %v900_v43, %v715_v38  ;;  %v1364_v43 = vld [vmem:[#allocation12] sm:$0xff] }
 0x2b5   : > { %1098 = vmatpush.bf16.msra.mxu3 %v1364_v43 }
 0x2b6   : > { %v904_v45 = vsel %vm827_vm7, %v901_v44, -inf }
 0x2b7   : > { %905 = vmax.xlane.f32.xlu2 %v904_v45 }
 0x2bb   : > { %v902_v46 = vpop.f32.mrf.mxu1 }
 0x2ca   : > { %v1013_v47 = vpop.f32.mrf.mxu1 }
 0x2cb   : > { %v1014_v48 = vadd.f32 %v1013_v47, %v715_v38 }
 0x2cd   : > { %v1017_v49 = vsel %vm827_vm7, %v1014_v48, -inf }
 0x2ce   : > { %1018 = vmax.xlane.f32.xlu1 %v1017_v49 }
 0x2cf   : > { %v957_v50 = vpop.f32.mrf.mxu3 }
 0x2d0   : > { %v958_v51 = vadd.f32 %v957_v50, %v715_v38 }
 0x2d2   : > { %v1015_v52 = vpop.f32.mrf.mxu1  ;;  %v961_v53 = vsel %vm827_vm7, %v958_v51, -inf }
 0x2d3   : > { %962 = vmax.xlane.f32.xlu2 %v961_v53 }
 0x2d5   : > { %v849_v54 = vpop.xlane.xlu0 %848 }
 0x2d6   : > { %v850_v55 = vsub.f32 %v844_v40, %v849_v54 }
 0x2d7   : > { %v959_v56 = vpop.f32.mrf.mxu3 }
 0x2d8   : > { %v851_v57 = vmul.f32 1.442695, %v850_v55 }
 0x2da   : > { %1500 = vpow2.f32 %v851_v57 }
 0x2e0   : > { %v1501_v58 = vpop.eup %1500 }
 0x2e1   : > { %v853_v59 = vsel %vm827_vm7, %v1501_v58, 0.0 }
 0x2e2   : > { %854 = vadd.xlane.f32.xlu2 %v853_v59 }
 0x2e7   : > { %917 = vrot.lane.b32.xlu1 %v2043_v20, %s1812_s18 }
 0x32a   : > { %v906_v60 = vpop.xlane.xlu2 %905 }
 0x32b   : > { %v907_v61 = vsub.f32 %v901_v44, %v906_v60 }
 0x32d   : > { %v908_v62 = vmul.f32 1.442695, %v907_v61 }
 0x32f   : > { %1502 = vpow2.f32 %v908_v62 }
 0x335   : > { %v1503_v63 = vpop.eup %1502 }
 0x336   : > { %v910_v0 = vsel %vm827_vm7, %v1503_v63, 0.0 }
 0x337   : > { %911 = vadd.xlane.f32.xlu0 %v910_v0 }
 0x341   : > { %v1019_v1 = vpop.xlane.xlu1 %1018 }
 0x342   : > { %v1020_v3 = vsub.f32 %v1014_v48, %v1019_v1 }
 0x344   : > { %v1021_v4 = vmul.f32 1.442695, %v1020_v3 }
 0x346   : > { %1504 = vpow2.f32 %v1021_v4  ;;  %v963_v5 = vpop.xlane.xlu2 %962 }
 0x347   : > { %v964_v6 = vsub.f32 %v958_v51, %v963_v5  ;;  %v1487_v51 = vld [vmem:[#allocation13] ss:$0 sm:$0xff] }
 0x349   : > { %v965_v7 = vmul.f32 1.442695, %v964_v6 }
 0x34b   : > { %1506 = vpow2.f32 %v965_v7 }
 0x34c   : > { %v1505_v8 = vpop.eup %1504 }
 0x34d   : > { %v1023_v9 = vsel %vm827_vm7, %v1505_v8, 0.0 }
 0x34e   : > { %1024 = vadd.xlane.f32.xlu0 %v1023_v9 }
 0x351   : > { %v1507_v10 = vpop.eup %1506 }
 0x352   : > { %v967_v11 = vsel %vm827_vm7, %v1507_v10, 0.0 }
 0x353   : > { %968 = vadd.xlane.f32.xlu2 %v967_v11 }
 0x355   : > { %v855_v12 = vpop.xlane.xlu2 %854 }
 0x356   : > { %1508 = vrcp.f32 %v855_v12 }
 0x359   : > { %v918_v13 = vpop.permute.xlu1 %917 }
 0x35a   : > { %v923_v14 = vsel %vm862_vm8, %v918_v13, 0 }
 0x35b   : > { %932 = vmatpush.bf16.msrb.mxu2 %v923_v14 }
 0x35c   : > { %v1509_v15 = vpop.eup %1508 }
 0x35d   : > { %v857_v16 = vmul.f32 %v1509_v15, %v1501_v58 }
 0x35f   : > { %v858_v17 = vpack.c.bf16 %v857_v16, %v857_v16 }
 0x361   : > { %1340 = vmatmul.msk.bf16.vlgmr.msrb.gmra.mxu0 %vm827_vm7, %v858_v17 }
 0x362   : > { %1029 = vrot.lane.b32.xlu0 %v2043_v20, %s1814_s22 }
 0x36b   : > { %973 = vrot.lane.b32.xlu2 %v2043_v20, %s1813_s29 }
 0x3aa   : > { %v912_v18 = vpop.xlane.xlu0 %911 }
 0x3ab   : > { %1510 = vrcp.f32 %v912_v18 }
 0x3b1   : > { %v1511_v19 = vpop.eup %1510 }
 0x3b2   : > { %v914_v21 = vmul.f32 %v1511_v19, %v1503_v63 }
 0x3b4   : > { %v915_v22 = vpack.c.bf16 %v914_v21, %v914_v21 }
 0x3b6   : > { %1342 = vmatmul.msk.bf16.vlgmr.msrb.gmra.mxu2 %vm827_vm7, %v915_v22 }
 0x3c1   : > { %v1025_v24 = vpop.xlane.xlu0 %1024 }
 0x3c6   : > { %v969_v23 = vpop.xlane.xlu2 %968 }
 0x3c7   : > { %1512 = vrcp.f32 %v969_v23 }
 0x3c8   : > { %1514 = vrcp.f32 %v1025_v24 }
 0x3cd   : > { %v1513_v25 = vpop.eup %1512 }
 0x3ce   : > { %v971_v26 = vmul.f32 %v1513_v25, %v1507_v10  ;;  %v974_v27 = vpop.permute.xlu2 %973  ;;  %v1515_v29 = vpop.eup %1514 }
 0x3cf   : > { %v979_v28 = vsel %vm862_vm8, %v974_v27, 0  ;;  %v1027_v20 = vmul.f32 %v1515_v29, %v1505_v8 }
 0x3d0   : > { %v972_v30 = vpack.c.bf16 %v971_v26, %v971_v26  ;;  %988 = vmatpush.bf16.msra.mxu0 %v979_v28 }
 0x3d1   : > { %v1028_v33 = vpack.c.bf16 %v1027_v20, %v1027_v20 }
 0x3d3   : > { %1344 = vmatmul.msk.bf16.vlgmr.msra.gmra.mxu0 %vm827_vm7, %v972_v30 }
 0x3d4   : > { %v1030_v31 = vpop.permute.xlu0 %1029 }
 0x3d5   : > { %v1035_v32 = vsel %vm862_vm8, %v1030_v31, 0 }
 0x3d6   : > { %1044 = vmatpush.bf16.msra.mxu2 %v1035_v32 }
 0x3d9   : > { %1346 = vmatmul.msk.bf16.vlgmr.msra.gmra.mxu2 %vm827_vm7, %v1028_v33 }
 0x3de   : > { %v875_v34 = vpop.f32.mrf.mxu0 }
 0x3e6   : > { %v877_v35 = vpop.f32.mrf.mxu0 }
 0x439   : > { %v934_v36 = vpop.f32.mrf.mxu2 }
 0x43a   : > { %1051 = vrot.lane.b32.xlu1 %v934_v36, %s1816_s21 }
 0x441   : > { %v936_v37 = vpop.f32.mrf.mxu2 }
 0x450   : > { %v990_v38 = vpop.f32.mrf.mxu0 }
 0x451   : > { %1055 = vrot.lane.b32.xlu0 %v990_v38, %s1817_s15 }
 0x458   : > { %v992_v39 = vpop.f32.mrf.mxu0 }
 0x45c   : > { %v1046_v40 = vpop.f32.mrf.mxu2 }
 0x45d   : > { %1059 = vrot.lane.b32.xlu1 %v1046_v40, %s1818_s25 }
 0x464   : > { %v1048_v41 = vpop.f32.mrf.mxu2 }
 0x4ac   : > { %v1052_v44 = vpop.permute.xlu1 %1051 }
 0x4ad   : > { %v1062_v46 = vsel %vm827_vm7, %v875_v34, %v1052_v44 }
 0x4c3   : > { %v1056_v45 = vpop.permute.xlu0 %1055 }
 0x4c4   : > { %v1064_v47 = vsel %vm1063_vm10, %v1062_v46, %v1056_v45 }
 0x4cf   : > { %v1060_v48 = vpop.permute.xlu1 %1059 }
 0x4d0   : > { %v1066_v49 = vsel %vm1065_vm11, %v1064_v47, %v1060_v48 }
 0x4d1   : > { %v1067_v50 = vpack.c.bf16 %v1066_v49, %v1066_v49 }
 0x4d3   : > { %1355 = vmatmul.msk.bf16.vlgmr.msra.gmra.mxu3 %vm637_vm0, %v1067_v50 }
 0x556   : > { %v1100_v52 = vpop.f32.mrf.mxu3 }
 0x557   : > { %v1101_v53 = vadd.f32 %v1487_v51, %v1100_v52 }
 0x559   : > { %v1104_v54 = vadd.f32 %v1101_v53, %v2007_v2 }
 0x55b   : > { %1105 = vst.msk [vmem:[%s632_s4] sm:$0xff] %vm637_vm0, %v1104_v54 }
 0x55e   : > { %v1102_v55 = vpop.f32.mrf.mxu3 }
 0x55f PF: > { %s28_s27 = sadd.s32 1, %s1798_s27   ;;  %s2126_s25 = smov %s1794_s26 }
 0x560   : > { %p25_p8 = scmp.ge.s32.totalorder %s28_s27, 4   ;;  %s2127_s26 = smov %s2129_s23 }
 0x562   :  { %27 = sbr.rel (!%p25_p8) target bundleno = 10 (0xa), region = 141 }
 0x567   :  { %1131 = vsyncpa [#allocation3], 1 }
 0x568   :  { %1133 = vsyncpa [#allocation3 + $0x1], 1 }
 0x569   :  { %1134 = vsyncpa [#allocation5], 1 }
 0x56a   :  { %1135 = vsyncpa [#allocation8], 1 }
 0x56b   :  { %1136 = vsyncpa [#allocation11], 1 }
 0x56c   :  { %1137 = vsyncpa [#allocation14], 1 }

// kernel: decoder_forward.11
= control target key start
LH: loop header
LB: loop body
LE: loop exit
PB: predicated region body
PF: predicated region fallthrough
CT: control target
= control target key end

     0   :  { %vm38_vm0 = vcmask 261120   ;;  %s516_s0 = inlined_call_operand.vmem [shape: f32[16,32], index: 0, kind: input, shape index: {}]   ;;  %s517_s1 = inlined_call_operand.vmem [shape: f32[1,32], index: 1, kind: input, shape index: {}]   ;;  %s518_s2 = inlined_call_operand.vmem [shape: f32[1,32], index: 2, kind: input, shape index: {}]   ;;  %s519_s3 = inlined_call_operand.vmem [shape: bf16[32,64], index: 3, kind: input, shape index: {}]   ;;  %s520_s4 = inlined_call_operand.vmem [shape: f32[1,64], index: 4, kind: input, shape index: {}]   ;;  %s521_s5 = inlined_call_operand.vmem [shape: bf16[64,32], index: 5, kind: input, shape index: {}]   ;;  %s522_s6 = inlined_call_operand.vmem [shape: f32[1,32], index: 6, kind: input, shape index: {}]   ;;  %s523_s7 = inlined_call_operand.vmem [shape: f32[1,32], index: 7, kind: input, shape index: {}]   ;;  %s524_s8 = inlined_call_operand.vmem [shape: f32[1,32], index: 8, kind: input, shape index: {}]   ;;  %s525_s9 = inlined_call_operand.hbm [shape: f32[16,32], index: 9, kind: output, shape index: {}]  }
   0x1   :  { %v441_v0 = vld [vmem:[%s516_s0] sm:$0xff] }
   0x2   :  { %v39_v1 = vsel %vm38_vm0, %v441_v0, 0.0 }
   0x3   :  { %40 = vadd.xlane.f32.xlu0 %v39_v1 }
   0x4   :  { %14 = vsyncpa [#allocation3], 0  ;;  %v448_v2 = vld [vmem:[%s516_s0 + $0x8] sm:$0xff]  ;;  %v383_v4 = vmov 32.0   ;;  %v384_v21 = vmov 31.0   ;;  %v320_v27 = vld [vmem:[%s519_s3] sm:$0xff] }
   0x5   :  { %v42_v3 = vsel %vm38_vm0, %v448_v2, 0.0  ;;  %337 = vrcp.f32 %v383_v4  ;;  %v321_v25 = vld [vmem:[%s519_s3 + $0x8] sm:$0xff]  ;;  %v331_v56 = vld [vmem:[%s517_s1] ss:$0 sm:$0xff]  ;;  %vm186_vm7 = vcmask 523264   ;;  %s282_s12 = sshll.u32 %s525_s9, 4  ;;  %s283_s12 = int_to_ptr.hbm [resolvable:$true] %s282_s12 }
   0x6   :  { %339 = vrcp.f32 %v384_v21  ;;  %143 = vmatpush.bf16.msra.mxu0 %v321_v25  ;;  %v332_v61 = vld [vmem:[%s518_s2] ss:$0 sm:$0xff]  ;;  %s387_s0 = smov 8  }
   0xa   :  { %144 = vmatpush.bf16.msra.mxu0 %v320_v27 }
   0xb   :  { %43 = vadd.xlane.f32.xlu0 %v42_v3  ;;  %v338_v5 = vpop.eup %337 }
   0xc   :  { %v46_v6 = vmul.f32 32.0, %v338_v5  ;;  %vm50_vm1 = vweird.f32 %v338_v5  ;;  %v340_v22 = vpop.eup %339 }
   0xd   :  { %v65_v23 = vmul.f32 31.0, %v340_v22  ;;  %vm69_vm2 = vweird.f32 %v340_v22 }
   0xe   :  { %v47_v7 = vsub.f32 1.0, %v46_v6  ;;  %v324_v6 = vld [vmem:[%s521_s5 + $0x10] sm:$0xff] }
   0xf   :  { %v66_v24 = vsub.f32 1.0, %v65_v23 }
  0x10   :  { %v48_v8 = vmul.f32 %v338_v5, %v47_v7  ;;  %v323_v7 = vld [vmem:[%s521_s5 + $0x8] sm:$0xff] }
  0x11   :  { %v67_v26 = vmul.f32 %v340_v22, %v66_v24 }
  0x12   :  { %v49_v9 = vadd.f32 %v338_v5, %v48_v8  ;;  %v322_v8 = vld [vmem:[%s521_s5] sm:$0xff] }
  0x13   :  { %v68_v28 = vadd.f32 %v340_v22, %v67_v26 }
  0x14   :  { %v452_v10 = vsel %vm50_vm1, %v338_v5, %v49_v9  ;;  %v325_v5 = vld [vmem:[%s521_s5 + $0x18] sm:$0xff] }
  0x15   :  { %v466_v29 = vsel %vm69_vm2, %v340_v22, %v68_v28  ;;  %194 = vmatpush.bf16.msra.mxu1 %v325_v5 }
  0x19   :  { %195 = vmatpush.bf16.msra.mxu1 %v324_v6 }
  0x1d   :  { %196 = vmatpush.bf16.msra.mxu1 %v323_v7 }
  0x21   :  { %197 = vmatpush.bf16.msra.mxu1 %v322_v8 }
  0x76   :  { %v41_v11 = vpop.xlane.xlu0 %40 }
  0x77   :  { %v52_v12 = vmul.f32 %v452_v10, %v41_v11  ;;  %v333_v11 = vld [vmem:[%s520_s4] ss:$0 sm:$0xff] }
  0x79   :  { %v54_v13 = vsub.f32 %v441_v0, %v52_v12 }
  0x7b   :  { %v56_v14 = vmul.f32 %v54_v13, %v54_v13  ;;  %v104_v58 = vmul.f32 %v331_v56, %v54_v13 }
  0x7d   :  { %v58_v15 = vsel %vm38_vm0, %v56_v14, 0.0 }
  0x7e   :  { %59 = vadd.xlane.f32.xlu1 %v58_v15  ;;  %v44_v16 = vpop.xlane.xlu0 %43 }
  0x7f   :  { %v53_v17 = vmul.f32 %v452_v10, %v44_v16 }
  0x81   :  { %v55_v18 = vsub.f32 %v448_v2, %v53_v17 }
  0x83   :  { %v57_v19 = vmul.f32 %v55_v18, %v55_v18  ;;  %v105_v59 = vmul.f32 %v331_v56, %v55_v18  ;;  %v334_v18 = vld [vmem:[%s522_s6] ss:$0 sm:$0xff] }
  0x85   :  { %v61_v20 = vsel %vm38_vm0, %v57_v19, 0.0 }
  0x86   :  { %62 = vadd.xlane.f32.xlu1 %v61_v20 }
  0xf1   :  { %v60_v30 = vpop.xlane.xlu1 %59 }
  0xf2   :  { %v71_v31 = vmul.f32 %v466_v29, %v60_v30 }
  0xf4   :  { %341 = vrsqrt.f32 %v71_v31  ;;  %vm80_vm3 = vcmp.eq.f32.partialorder %v71_v31, inf  ;;  %v83_v44 = vand.u32 2147483648, %v71_v31  ;;  %vm82_vm4 = vcmp.eq.f32.partialorder %v71_v31, 0.0 }
  0xf9   :  { %v63_v32 = vpop.xlane.xlu1 %62 }
  0xfa   :  { %v342_v33 = vpop.eup %341  ;;  %v72_v34 = vmul.f32 %v466_v29, %v63_v32 }
  0xfb   :  { %v74_v35 = vmul.f32 %v342_v33, %v71_v31 }
  0xfc   :  { %343 = vrsqrt.f32 %v72_v34  ;;  %vm92_vm5 = vcmp.eq.f32.partialorder %v72_v34, inf  ;;  %v95_v52 = vand.u32 2147483648, %v72_v34  ;;  %vm94_vm6 = vcmp.eq.f32.partialorder %v72_v34, 0.0 }
  0xfd   :  { %v75_v36 = vmul.f32 %v342_v33, %v74_v35 }
  0xff   :  { %v76_v37 = vmul.f32 0.5, %v75_v36 }
 0x101   :  { %v77_v38 = vsub.f32 1.5, %v76_v37 }
 0x102   :  { %v344_v39 = vpop.eup %343 }
 0x103   :  { %v86_v40 = vmul.f32 %v344_v39, %v72_v34  ;;  %v78_v41 = vmul.f32 %v342_v33, %v77_v38 }
 0x105   :  { %v87_v42 = vmul.f32 %v344_v39, %v86_v40  ;;  %v79_v43 = vmul.f32 %v78_v41, %v71_v31 }
 0x107   :  { %v81_v45 = vsel %vm80_vm3, %v71_v31, %v79_v43  ;;  %v88_v46 = vmul.f32 0.5, %v87_v42 }
 0x108   :  { %v84_v47 = vsel %vm82_vm4, %v83_v44, %v81_v45 }
 0x109   :  { %v89_v48 = vsub.f32 1.5, %v88_v46  ;;  %v97_v50 = vadd.f32 1e-06, %v84_v47 }
 0x10b   :  { %v90_v49 = vmul.f32 %v344_v39, %v89_v48  ;;  %345 = vrcp.f32 %v97_v50 }
 0x10d   :  { %v91_v51 = vmul.f32 %v90_v49, %v72_v34 }
 0x10f   :  { %v93_v53 = vsel %vm92_vm5, %v72_v34, %v91_v51 }
 0x110   :  { %v96_v54 = vsel %vm94_vm6, %v95_v52, %v93_v53 }
 0x111   :  { %v98_v55 = vadd.f32 1e-06, %v96_v54  ;;  %v346_v57 = vpop.eup %345 }
 0x112   :  { %v106_v60 = vmul.f32 %v346_v57, %v104_v58 }
 0x113   :  { %347 = vrcp.f32 %v98_v55 }
 0x114   :  { %v111_v1 = vadd.f32 %v332_v61, %v106_v60 }
 0x119   :  { %v348_v62 = vpop.eup %347 }
 0x11a   :  { %v107_v63 = vmul.f32 %v348_v62, %v105_v59 }
 0x11c   :  { %v112_v3 = vadd.f32 %v332_v61, %v107_v63  ;;  %v336_v61 = vld [vmem:[%s524_s8] ss:$0 sm:$0xff]  ;;  %s386_s8 = smov 128  }
 0x11e   :  { %v113_v4 = vpack.c.bf16 %v112_v3, %v111_v1 }
 0x120   :  { %302 = vmatmul.msk.bf16.vlgmr.msra.gmra.mxu0 %vm38_vm0, %v113_v4 }
 0x19d   :  { %v146_v9 = vpop.f32.mrf.mxu0 }
 0x19e   :  { %v147_v12 = vadd.f32 %v333_v11, %v146_v9 }
 0x1a0   :  { %v151_v15 = vmax.f32 %v147_v12, 0.0 }
 0x1a5   :  { %v148_v13 = vpop.f32.mrf.mxu0 }
 0x1a6   :  { %v149_v14 = vadd.f32 %v333_v11, %v148_v13 }
 0x1a8   :  { %v152_v16 = vmax.f32 %v149_v14, 0.0 }
 0x1aa   :  { %v153_v17 = vpack.c.bf16 %v152_v16, %v151_v15 }
 0x1ac   :  { %319 = vmatmul.msk.bf16.vlgmr.msra.gmra.mxu1 %vm186_vm7, %v153_v17 }
 0x229   :  { %v199_v19 = vpop.f32.mrf.mxu1 }
 0x22a   :  { %v204_v20 = vadd.f32 %v199_v19, %v441_v0 }
 0x22c   :  { %v210_v21 = vadd.f32 %v334_v18, %v204_v20 }
 0x22e   :  { %v214_v22 = vsel %vm38_vm0, %v210_v21, 0.0 }
 0x22f   :  { %215 = vadd.xlane.f32.xlu2 %v214_v22 }
 0x231   :  { %v201_v23 = vpop.f32.mrf.mxu1 }
 0x232   :  { %v205_v24 = vadd.f32 %v201_v23, %v448_v2 }
 0x234   :  { %v211_v25 = vadd.f32 %v334_v18, %v205_v24 }
 0x236   :  { %v217_v26 = vsel %vm38_vm0, %v211_v25, 0.0 }
 0x237   :  { %218 = vadd.xlane.f32.xlu2 %v217_v26 }
 0x2a2   :  { %v216_v27 = vpop.xlane.xlu2 %215 }
 0x2a3   :  { %v220_v28 = vmul.f32 %v216_v27, %v452_v10 }
 0x2a5   :  { %v222_v30 = vsub.f32 %v210_v21, %v220_v28 }
 0x2a7   :  { %v224_v31 = vmul.f32 %v222_v30, %v222_v30 }
 0x2a9   :  { %v226_v32 = vsel %vm38_vm0, %v224_v31, 0.0 }
 0x2aa   :  { %227 = vadd.xlane.f32.xlu0 %v226_v32  ;;  %v219_v0 = vpop.xlane.xlu2 %218 }
 0x2ab   :  { %v221_v33 = vmul.f32 %v219_v0, %v452_v10 }
 0x2ad   :  { %v223_v34 = vsub.f32 %v211_v25, %v221_v33 }
 0x2af   :  { %v225_v35 = vmul.f32 %v223_v34, %v223_v34 }
 0x2b1   :  { %v229_v36 = vsel %vm38_vm0, %v225_v35, 0.0 }
 0x2b2   :  { %230 = vadd.xlane.f32.xlu1 %v229_v36 }
 0x31d   :  { %v228_v2 = vpop.xlane.xlu0 %227 }
 0x31e   :  { %v232_v37 = vmul.f32 %v228_v2, %v466_v29 }
 0x320   :  { %349 = vrsqrt.f32 %v232_v37  ;;  %vm241_vm8 = vcmp.eq.f32.partialorder %v232_v37, inf  ;;  %v244_v49 = vand.u32 2147483648, %v232_v37  ;;  %vm243_vm9 = vcmp.eq.f32.partialorder %v232_v37, 0.0 }
 0x325   :  { %v231_v38 = vpop.xlane.xlu1 %230 }
 0x326   :  { %v350_v39 = vpop.eup %349  ;;  %v233_v40 = vmul.f32 %v231_v38, %v466_v29  ;;  %v335_v29 = vld [vmem:[%s523_s7] ss:$0 sm:$0xff]  ;;  %s385_s7 = smov [#allocation2]  }
 0x327   :  { %v235_v41 = vmul.f32 %v350_v39, %v232_v37  ;;  %v265_v59 = vmul.f32 %v335_v29, %v222_v30  ;;  %v266_v4 = vmul.f32 %v335_v29, %v223_v34  ;;  %s280_s30 = sshll.u32 %s385_s7, 4  ;;  %s281_s30 = int_to_ptr.vmem [resolvable:$true] %s280_s30 }
 0x328   :  { %351 = vrsqrt.f32 %v233_v40  ;;  %vm253_vm10 = vcmp.eq.f32.partialorder %v233_v40, inf  ;;  %v256_v57 = vand.u32 2147483648, %v233_v40  ;;  %vm255_vm11 = vcmp.eq.f32.partialorder %v233_v40, 0.0 }
 0x329   :  { %v236_v42 = vmul.f32 %v350_v39, %v235_v41 }
 0x32b   :  { %v237_v43 = vmul.f32 0.5, %v236_v42 }
 0x32d   :  { %v238_v44 = vsub.f32 1.5, %v237_v43 }
 0x32e   :  { %v352_v45 = vpop.eup %351 }
 0x32f   :  { %v239_v10 = vmul.f32 %v350_v39, %v238_v44  ;;  %v247_v46 = vmul.f32 %v352_v45, %v233_v40 }
 0x331   :  { %v240_v47 = vmul.f32 %v239_v10, %v232_v37  ;;  %v248_v48 = vmul.f32 %v352_v45, %v247_v46 }
 0x333   :  { %v242_v50 = vsel %vm241_vm8, %v232_v37, %v240_v47  ;;  %v249_v51 = vmul.f32 0.5, %v248_v48 }
 0x334   :  { %v245_v52 = vsel %vm243_vm9, %v244_v49, %v242_v50 }
 0x335   :  { %v250_v53 = vsub.f32 1.5, %v249_v51  ;;  %v258_v54 = vadd.f32 1e-06, %v245_v52 }
 0x337   :  { %v251_v55 = vmul.f32 %v352_v45, %v250_v53  ;;  %353 = vrcp.f32 %v258_v54 }
 0x339   :  { %v252_v56 = vmul.f32 %v251_v55, %v233_v40 }
 0x33b   :  { %v254_v58 = vsel %vm253_vm10, %v233_v40, %v252_v56 }
 0x33c   :  { %v257_v60 = vsel %vm255_vm11, %v256_v57, %v254_v58 }
 0x33d   :  { %v354_v62 = vpop.eup %353  ;;  %v259_v63 = vadd.f32 1e-06, %v257_v60 }
 0x33e   :  { %v267_v1 = vmul.f32 %v354_v62, %v265_v59 }
 0x33f   :  { %355 = vrcp.f32 %v259_v63 }
 0x340   :  { %v272_v3 = vadd.f32 %v336_v61, %v267_v1 }
 0x342   :  { %274 = vst.msk [vmem:[#allocation2] sm:$0xff] %vm38_vm0, %v272_v3 }
 0x345   :  { %v356_v5 = vpop.eup %355 }
 0x346   :  { %v268_v6 = vmul.f32 %v356_v5, %v266_v4 }
 0x348   :  { %v273_v7 = vadd.f32 %v336_v61, %v268_v6 }
 0x34a   :  { %275 = vst.msk [vmem:[#allocation2 + $0x8] sm:$0xff] %vm38_vm0, %v273_v7 }
 0x34b   :  { %288 = dma.vmem_to_hbm [thread:$0]  %s281_s30, 256, %s283_s12, [#allocation3], %s386_s8, %s386_s8, %s387_s0  }
 0x34c   :  { %381 = dma.done.wait [#allocation3], 256  }
 0x34d   :  { %382 = vsyncadd [#allocation3], 4294967040 }
 0x34e   :  { %293 = vsyncpa [#allocation3], 1 }

</bundles_post_ra>
